<compile_context>
chip_gen: v5e
topology: v5e:2x2
jax: 0.10.0
libtpu: 0.0.40
codegen_flags: <defaults>
</compile_context>

<pallas_src>
import functools

import numpy as np
import jax
import jax.numpy as jnp
from jax.experimental import pallas as pl
from jax.experimental.pallas import tpu as pltpu


_TB = 64  # batch tile (multiple of 16); safe for v5e's 16 MiB scoped VMEM.


def _round_up(a, b):
    return (a + b - 1) // b * b


# ------------------------------ fused kernel ------------------------------- #

def _lenet5_kernel(xs_ref,                      # (26, TB, 150) bf16 conv1 taps
                   t1_ref, b1_ref,              # (150,156) bf16, (1,156) f32
                   t2_ref, b2_ref,              # (5,156,144) bf16, (1,144) f32
                   t3_ref, b3_ref,              # (5,144,120) bf16, (1,120) f32
                   w4_ref, b4_ref,              # (120,84) bf16, (1,84) f32
                   w5_ref, b5_ref,              # (84,CP) bf16, (1,CP) f32
                   o_ref):                      # (TB, CP) f32
    f32, bf16 = jnp.float32, jnp.bfloat16
    tb = xs_ref.shape[1]

    # conv1 (+pad, 5 taps pre-concatenated along K) + bias + ReLU; M = 26*TB.
    a1 = jnp.dot(xs_ref[...].reshape(26 * tb, 150), t1_ref[...],
                 preferred_element_type=f32)
    a1 = jnp.maximum(a1 + b1_ref[...], 0.0)                        # (26*tb,156)

    # pool1: vertical half as a 2-tap VPU average; horizontal half is in t2.
    a1 = a1.reshape(13, 2 * tb, 156)
    v1 = ((a1[:, :tb, :] + a1[:, tb:, :]) * 0.5).astype(bf16)      # (13,tb,156)

    # conv2 + ReLU: 5 row taps, M = 9*TB.
    a2 = jnp.dot(v1[0:9].reshape(9 * tb, 156), t2_ref[0],
                 preferred_element_type=f32)
    for i in range(1, 5):
        a2 += jnp.dot(v1[i:i + 9].reshape(9 * tb, 156), t2_ref[i],
                      preferred_element_type=f32)
    a2 = jnp.maximum(a2 + b2_ref[...], 0.0)                        # (9*tb,144)

    # pool2 (pad=1, count_include_pad=True): vertical half on the VPU.
    a2 = a2.reshape(9, tb, 144)
    v2 = (a2[0] * 0.5,
          (a2[1] + a2[2]) * 0.5,
          (a2[3] + a2[4]) * 0.5,
          (a2[5] + a2[6]) * 0.5,
          (a2[7] + a2[8]) * 0.5)

    # conv3 (5x5 valid -> 1x1x120) + ReLU; horizontal pool2 half is in t3.
    f = jnp.dot(v2[0].astype(bf16), t3_ref[0], preferred_element_type=f32)
    for i in range(1, 5):
        f += jnp.dot(v2[i].astype(bf16), t3_ref[i], preferred_element_type=f32)
    f = jnp.maximum(f + b3_ref[...], 0.0)                          # (tb, 120)

    # FC head + softmax over a lane-dense, 128-padded class axis.
    h = jnp.maximum(jnp.dot(f.astype(bf16), w4_ref[...],
                            preferred_element_type=f32) + b4_ref[...], 0.0)
    y = jnp.dot(h.astype(bf16), w5_ref[...],
                preferred_element_type=f32) + b5_ref[...]          # (tb, CP)
    y = y - jnp.max(y, axis=-1, keepdims=True)
    e = jnp.exp(y)
    o_ref[...] = e * pl.reciprocal(jnp.sum(e, axis=-1, keepdims=True),
                                   approx=False)


# ------------------------ one-time parameter prep -------------------------- #

def _conv_toeplitz(w, w_in):
    # w: (Cout, Cin, KH, KW) (PyTorch layout).  Returns (KH, W_in*Cin,
    # W_out*Cout) slabs T such that, with rows laid out as (H, W*Cin):
    #   out[ho, wo*Cout+co] = sum_i (in[ho+i, :] @ T[i])[wo*Cout+co]
    cout, cin, kh, kw = w.shape
    w_out = w_in - kw + 1
    place = np.zeros((kw, w_in, w_out), np.float32)
    for j in range(kw):
        for o in range(w_out):
            place[j, o + j, o] = 1.0
    wt = jnp.transpose(w.astype(jnp.float32), (2, 3, 1, 0))  # (KH,KW,Cin,Cout)
    t = jnp.einsum("jpo,ijcd->ipcod", jnp.asarray(place), wt)
    return t.reshape(kh, w_in * cin, w_out * cout)


def _pool_matrices(h_in, w_in, c, pad):
    # 2x2 / stride-2 average pool (count_include_pad=True) split into a
    # vertical half (Pv, 0.5) and a horizontal half (Ph, 0.5) on the (H, W*C)
    # interleaved layout.  Only Ph is used (folded into the next conv slab).
    h_out = (h_in + 2 * pad - 2) // 2 + 1
    w_out = (w_in + 2 * pad - 2) // 2 + 1
    pv = np.zeros((h_out, h_in), np.float32)
    for r in range(h_out):
        for d in (0, 1):
            h = 2 * r + d - pad
            if 0 <= h < h_in:
                pv[r, h] = 0.5
    ph = np.zeros((w_in * c, w_out * c), np.float32)
    for s in range(w_out):
        for d in (0, 1):
            w = 2 * s + d - pad
            if 0 <= w < w_in:
                for ch in range(c):
                    ph[w * c + ch, s * c + ch] = 0.5
    return jnp.asarray(pv), jnp.asarray(ph)


def prepare_params(params):
    """One-time weight re-layout (hoisted out of the jitted forward)."""
    f32, bf16 = jnp.float32, jnp.bfloat16
    _, ph1 = _pool_matrices(26, 26, 6, pad=0)                  # (156, 78)
    _, ph2 = _pool_matrices(9, 9, 16, pad=1)                   # (144, 80)

    t1 = _conv_toeplitz(params["w1"], 30).reshape(150, 156)    # taps along K
    t2 = _conv_toeplitz(params["w2"], 13)                      # (5, 78, 144)
    t2p = jnp.einsum("pk,ikn->ipn", ph1, t2)                   # (5,156,144)
    t3 = jnp.transpose(params["w3"].astype(f32),
                       (2, 3, 1, 0)).reshape(5, 80, 120)
    t3p = jnp.einsum("pk,ikn->ipn", ph2, t3)                   # (5,144,120)

    c = params["fw2"].shape[0]
    cp = _round_up(c, 128)                                     # lane-dense
    w5 = jnp.zeros((84, cp), f32).at[:, :c].set(params["fw2"].astype(f32).T)
    b5 = jnp.full((1, cp), -1e30, f32).at[0, :c].set(params["fb2"].astype(f32))

    return {
        "t1": t1.astype(bf16),
        "b1": jnp.tile(params["b1"].astype(f32), 26).reshape(1, 156),
        "t2": t2p.astype(bf16),
        "b2": jnp.tile(params["b2"].astype(f32), 9).reshape(1, 144),
        "t3": t3p.astype(bf16),
        "b3": params["b3"].astype(f32).reshape(1, 120),
        "w4": jnp.transpose(params["fw1"].astype(f32)).astype(bf16),
        "b4": params["fb1"].astype(f32).reshape(1, -1),
        "w5": w5.astype(bf16),
        "b5": b5,
    }


# ------------------------------ forward pass ------------------------------- #

_ARG_ORDER = ("t1", "b1", "t2", "b2", "t3", "b3", "w4", "b4", "w5", "b5")


def _resident_spec(arr):
    nd = arr.ndim
    return pl.BlockSpec(arr.shape, lambda b, _nd=nd: (0,) * _nd)


@functools.partial(jax.jit, static_argnames=("nof_classes",))
def lenet5_forward(x_nchw, prepped, *, nof_classes):
    n = x_nchw.shape[0]
    cp = prepped["b5"].shape[-1]
    tb = _TB if n >= _TB else _round_up(max(n, 1), 16)
    n_pad = _round_up(n, tb)

    # conv1 input: pad=1 plus the 5 row taps pre-shifted and concatenated
    # along K -> (26, n_pad, 150); rows-leading / batch-on-sublane layout so
    # every in-kernel reshape/slice is tile aligned.
    x = jnp.pad(x_nchw.reshape(n, 28, 28).astype(jnp.float32),
                ((0, n_pad - n), (1, 1), (1, 1)))                # (n_pad,30,30)
    xs = jnp.stack([x[:, h:h + 5, :] for h in range(26)], axis=0)
    xs = xs.reshape(26, n_pad, 150).astype(jnp.bfloat16)

    weights = [prepped[k] for k in _ARG_ORDER]
    out = pl.pallas_call(
        _lenet5_kernel,
        out_shape=jax.ShapeDtypeStruct((n_pad, cp), jnp.float32),
        grid=(n_pad // tb,),
        in_specs=[pl.BlockSpec((26, tb, 150), lambda b: (0, b, 0))]
                 + [_resident_spec(w) for w in weights],
        out_specs=pl.BlockSpec((tb, cp), lambda b: (b, 0)),
        compiler_params=pltpu.CompilerParams(
            dimension_semantics=("parallel",)),
    )(xs, *weights)
    return out[:n, :nof_classes]


# --------------------------- init & reference ------------------------------ #

def init_params(key, nof_classes):
    # Deterministic synthetic init; weights kept in PyTorch layouts:
    # conv (Cout,Cin,KH,KW), linear (out,in).
    ks = jax.random.split(key, 10)

    def u(k, shape, fan_in):
        bound = 1.0 / float(fan_in) ** 0.5
        return jax.random.uniform(k, shape, jnp.float32, -bound, bound)

    return {
        "w1": u(ks[0], (6, 1, 5, 5), 25),       "b1": u(ks[1], (6,), 25),
        "w2": u(ks[2], (16, 6, 5, 5), 150),     "b2": u(ks[3], (16,), 150),
        "w3": u(ks[4], (120, 16, 5, 5), 400),   "b3": u(ks[5], (120,), 400),
        "fw1": u(ks[6], (84, 120), 120),        "fb1": u(ks[7], (84,), 120),
        "fw2": u(ks[8], (nof_classes, 84), 84), "fb2": u(ks[9], (nof_classes,), 84),
    }


def _reference_forward(x_nchw, params):
    # Pure-JAX (XLA, f32) reference, used only as a correctness self-check.
    hi = jax.lax.Precision.HIGHEST
    x = jnp.transpose(x_nchw, (0, 2, 3, 1)).astype(jnp.float32)

    def conv(x, w, b, pad):
        y = jax.lax.conv_general_dilated(
            x, jnp.transpose(w, (2, 3, 1, 0)), (1, 1),
            [(pad, pad), (pad, pad)],
            dimension_numbers=("NHWC", "HWIO", "NHWC"), precision=hi)
        return jnp.maximum(y + b, 0.0)

    def pool(x, pad):
        if pad:
            x = jnp.pad(x, ((0, 0), (pad, pad), (pad, pad), (0, 0)))
        s = jax.lax.reduce_window(x, 0.0, jax.lax.add,
                                  (1, 2, 2, 1), (1, 2, 2, 1), "VALID")
        return s * 0.25

    x = conv(x, params["w1"], params["b1"], 1)
    x = pool(x, 0)
    x = conv(x, params["w2"], params["b2"], 0)
    x = pool(x, 1)
    x = conv(x, params["w3"], params["b3"], 0)
    f = x.reshape(x.shape[0], -1)
    h = jnp.maximum(jnp.dot(f, params["fw1"].T, precision=hi) + params["fb1"], 0.0)
    y = jnp.dot(h, params["fw2"].T, precision=hi) + params["fb2"]
    return jax.nn.softmax(y, axis=-1)


if __name__ == "__main__":
    nof_classes = 10
    key = jax.random.PRNGKey(0)
    kx, kp, kb = jax.random.split(key, 3)
    params = init_params(kp, nof_classes)
    prepped = prepare_params(params)

    # Small batch (single grid block).  LeNet-5 geometry needs 28x28 inputs.
    x = jax.random.normal(kx, (2, 1, 28, 28), dtype=jnp.float32)
    out = jax.block_until_ready(lenet5_forward(x, prepped,
                                               nof_classes=nof_classes))
    assert out.shape == (2, nof_classes), out.shape
    assert bool(jnp.all(jnp.isfinite(out)))
    assert bool(jnp.allclose(jnp.sum(out, axis=-1), 1.0, atol=1e-5))
    ref = jax.block_until_ready(_reference_forward(x, params))
    err = float(jnp.max(jnp.abs(out - ref)))
    assert err < 1e-2, err   # bf16 matmul operands, f32 accumulation

    # Larger batch: exercises batch padding and a multi-block grid.
    xb = jax.random.normal(kb, (72, 1, 28, 28), dtype=jnp.float32)
    outb = jax.block_until_ready(lenet5_forward(xb, prepped,
                                                nof_classes=nof_classes))
    assert outb.shape == (72, nof_classes), outb.shape
    refb = jax.block_until_ready(_reference_forward(xb, params))
    errb = float(jnp.max(jnp.abs(outb - refb)))
    assert errb < 1e-2, errb

    print("KERNEL_OK")
</pallas_src>

<mosaic_0001>
module attributes {stable_mosaic.version = 11 : i64} {
  func.func @_lenet5_kernel(%arg0: i32, %arg1: memref<26x16x150xbf16, #tpu.memory_space<vmem>>, %arg2: memref<150x156xbf16, #tpu.memory_space<vmem>>, %arg3: memref<1x156xf32, #tpu.memory_space<vmem>>, %arg4: memref<5x156x144xbf16, #tpu.memory_space<vmem>>, %arg5: memref<1x144xf32, #tpu.memory_space<vmem>>, %arg6: memref<5x144x120xbf16, #tpu.memory_space<vmem>>, %arg7: memref<1x120xf32, #tpu.memory_space<vmem>>, %arg8: memref<120x84xbf16, #tpu.memory_space<vmem>>, %arg9: memref<1x84xf32, #tpu.memory_space<vmem>>, %arg10: memref<84x128xbf16, #tpu.memory_space<vmem>>, %arg11: memref<1x128xf32, #tpu.memory_space<vmem>>, %arg12: memref<16x128xf32, #tpu.memory_space<vmem>>) attributes {dimension_semantics = [#tpu.dimension_semantics<parallel>], iteration_bounds = array<i64: 1>, scalar_prefetch = 0 : i64, scratch_operands = 0 : i64, tpu.core_type = #tpu.core_type<tc>, window_params = [{transform_indices = @transform_0, window_bounds = array<i64: 26, 16, 150>}, {pipeline_mode = #tpu.pipeline_mode<synchronous>, transform_indices = @transform_1, window_bounds = array<i64: 150, 156>}, {pipeline_mode = #tpu.pipeline_mode<synchronous>, transform_indices = @transform_2, window_bounds = array<i64: 1, 156>}, {pipeline_mode = #tpu.pipeline_mode<synchronous>, transform_indices = @transform_3, window_bounds = array<i64: 5, 156, 144>}, {pipeline_mode = #tpu.pipeline_mode<synchronous>, transform_indices = @transform_4, window_bounds = array<i64: 1, 144>}, {pipeline_mode = #tpu.pipeline_mode<synchronous>, transform_indices = @transform_5, window_bounds = array<i64: 5, 144, 120>}, {pipeline_mode = #tpu.pipeline_mode<synchronous>, transform_indices = @transform_6, window_bounds = array<i64: 1, 120>}, {pipeline_mode = #tpu.pipeline_mode<synchronous>, transform_indices = @transform_7, window_bounds = array<i64: 120, 84>}, {pipeline_mode = #tpu.pipeline_mode<synchronous>, transform_indices = @transform_8, window_bounds = array<i64: 1, 84>}, {pipeline_mode = #tpu.pipeline_mode<synchronous>, transform_indices = @transform_9, window_bounds = array<i64: 84, 128>}, {pipeline_mode = #tpu.pipeline_mode<synchronous>, transform_indices = @transform_10, window_bounds = array<i64: 1, 128>}, {transform_indices = @transform_11, window_bounds = array<i64: 16, 128>}]} {
    %c0 = arith.constant 0 : index
    %c0_0 = arith.constant 0 : index
    %c0_1 = arith.constant 0 : index
    %0 = vector.load %arg1[%c0, %c0_0, %c0_1] : memref<26x16x150xbf16, #tpu.memory_space<vmem>>, vector<26x16x150xbf16>
    %1 = vector.shape_cast %0 : vector<26x16x150xbf16> to vector<416x150xbf16>
    %c0_2 = arith.constant 0 : index
    %c0_3 = arith.constant 0 : index
    %2 = vector.load %arg2[%c0_2, %c0_3] : memref<150x156xbf16, #tpu.memory_space<vmem>>, vector<150x156xbf16>
    %cst = arith.constant dense<0.000000e+00> : vector<416x156xf32>
    %3 = tpu.matmul %1, %2, %cst {dimension_numbers = #tpu.dot_dimension_numbers<[1], [0], [0], [1], [0, 0, 1, 1], [], []>} : vector<416x150xbf16>, vector<150x156xbf16>, vector<416x156xf32> -> vector<416x156xf32>
    %c0_4 = arith.constant 0 : index
    %c0_5 = arith.constant 0 : index
    %4 = vector.load %arg3[%c0_4, %c0_5] : memref<1x156xf32, #tpu.memory_space<vmem>>, vector<1x156xf32>
    %5 = vector.broadcast %4 : vector<1x156xf32> to vector<416x156xf32>
    %6 = arith.addf %3, %5 : vector<416x156xf32>
    %cst_6 = arith.constant 0.000000e+00 : f32
    %7 = vector.broadcast %cst_6 : f32 to vector<416x156xf32>
    %8 = arith.maximumf %6, %7 : vector<416x156xf32>
    %9 = vector.shape_cast %8 : vector<416x156xf32> to vector<13x32x156xf32>
    %10 = vector.extract_strided_slice %9 {offsets = [0, 0, 0], sizes = [13, 16, 156], strides = [1, 1, 1]} : vector<13x32x156xf32> to vector<13x16x156xf32>
    %11 = vector.extract_strided_slice %9 {offsets = [0, 16, 0], sizes = [13, 16, 156], strides = [1, 1, 1]} : vector<13x32x156xf32> to vector<13x16x156xf32>
    %12 = arith.addf %10, %11 : vector<13x16x156xf32>
    %cst_7 = arith.constant 5.000000e-01 : f32
    %13 = vector.broadcast %cst_7 : f32 to vector<13x16x156xf32>
    %14 = arith.mulf %12, %13 : vector<13x16x156xf32>
    %15 = arith.truncf %14 : vector<13x16x156xf32> to vector<13x16x156xbf16>
    %16 = vector.extract_strided_slice %15 {offsets = [0, 0, 0], sizes = [9, 16, 156], strides = [1, 1, 1]} : vector<13x16x156xbf16> to vector<9x16x156xbf16>
    %17 = vector.shape_cast %16 : vector<9x16x156xbf16> to vector<144x156xbf16>
    %c0_8 = arith.constant 0 : index
    %c0_9 = arith.constant 0 : index
    %c0_10 = arith.constant 0 : index
    %18 = vector.load %arg4[%c0_8, %c0_9, %c0_10] : memref<5x156x144xbf16, #tpu.memory_space<vmem>>, vector<1x156x144xbf16>
    %19 = vector.shape_cast %18 : vector<1x156x144xbf16> to vector<156x144xbf16>
    %cst_11 = arith.constant dense<0.000000e+00> : vector<144x144xf32>
    %20 = tpu.matmul %17, %19, %cst_11 {dimension_numbers = #tpu.dot_dimension_numbers<[1], [0], [0], [1], [0, 0, 1, 1], [], []>} : vector<144x156xbf16>, vector<156x144xbf16>, vector<144x144xf32> -> vector<144x144xf32>
    %21 = vector.extract_strided_slice %15 {offsets = [1, 0, 0], sizes = [9, 16, 156], strides = [1, 1, 1]} : vector<13x16x156xbf16> to vector<9x16x156xbf16>
    %22 = vector.shape_cast %21 : vector<9x16x156xbf16> to vector<144x156xbf16>
    %c1 = arith.constant 1 : index
    %c0_12 = arith.constant 0 : index
    %c0_13 = arith.constant 0 : index
    %23 = vector.load %arg4[%c1, %c0_12, %c0_13] : memref<5x156x144xbf16, #tpu.memory_space<vmem>>, vector<1x156x144xbf16>
    %24 = vector.shape_cast %23 : vector<1x156x144xbf16> to vector<156x144xbf16>
    %cst_14 = arith.constant dense<0.000000e+00> : vector<144x144xf32>
    %25 = tpu.matmul %22, %24, %cst_14 {dimension_numbers = #tpu.dot_dimension_numbers<[1], [0], [0], [1], [0, 0, 1, 1], [], []>} : vector<144x156xbf16>, vector<156x144xbf16>, vector<144x144xf32> -> vector<144x144xf32>
    %26 = arith.addf %20, %25 : vector<144x144xf32>
    %27 = vector.extract_strided_slice %15 {offsets = [2, 0, 0], sizes = [9, 16, 156], strides = [1, 1, 1]} : vector<13x16x156xbf16> to vector<9x16x156xbf16>
    %28 = vector.shape_cast %27 : vector<9x16x156xbf16> to vector<144x156xbf16>
    %c2 = arith.constant 2 : index
    %c0_15 = arith.constant 0 : index
    %c0_16 = arith.constant 0 : index
    %29 = vector.load %arg4[%c2, %c0_15, %c0_16] : memref<5x156x144xbf16, #tpu.memory_space<vmem>>, vector<1x156x144xbf16>
    %30 = vector.shape_cast %29 : vector<1x156x144xbf16> to vector<156x144xbf16>
    %cst_17 = arith.constant dense<0.000000e+00> : vector<144x144xf32>
    %31 = tpu.matmul %28, %30, %cst_17 {dimension_numbers = #tpu.dot_dimension_numbers<[1], [0], [0], [1], [0, 0, 1, 1], [], []>} : vector<144x156xbf16>, vector<156x144xbf16>, vector<144x144xf32> -> vector<144x144xf32>
    %32 = arith.addf %26, %31 : vector<144x144xf32>
    %33 = vector.extract_strided_slice %15 {offsets = [3, 0, 0], sizes = [9, 16, 156], strides = [1, 1, 1]} : vector<13x16x156xbf16> to vector<9x16x156xbf16>
    %34 = vector.shape_cast %33 : vector<9x16x156xbf16> to vector<144x156xbf16>
    %c3 = arith.constant 3 : index
    %c0_18 = arith.constant 0 : index
    %c0_19 = arith.constant 0 : index
    %35 = vector.load %arg4[%c3, %c0_18, %c0_19] : memref<5x156x144xbf16, #tpu.memory_space<vmem>>, vector<1x156x144xbf16>
    %36 = vector.shape_cast %35 : vector<1x156x144xbf16> to vector<156x144xbf16>
    %cst_20 = arith.constant dense<0.000000e+00> : vector<144x144xf32>
    %37 = tpu.matmul %34, %36, %cst_20 {dimension_numbers = #tpu.dot_dimension_numbers<[1], [0], [0], [1], [0, 0, 1, 1], [], []>} : vector<144x156xbf16>, vector<156x144xbf16>, vector<144x144xf32> -> vector<144x144xf32>
    %38 = arith.addf %32, %37 : vector<144x144xf32>
    %39 = vector.extract_strided_slice %15 {offsets = [4, 0, 0], sizes = [9, 16, 156], strides = [1, 1, 1]} : vector<13x16x156xbf16> to vector<9x16x156xbf16>
    %40 = vector.shape_cast %39 : vector<9x16x156xbf16> to vector<144x156xbf16>
    %c4 = arith.constant 4 : index
    %c0_21 = arith.constant 0 : index
    %c0_22 = arith.constant 0 : index
    %41 = vector.load %arg4[%c4, %c0_21, %c0_22] : memref<5x156x144xbf16, #tpu.memory_space<vmem>>, vector<1x156x144xbf16>
    %42 = vector.shape_cast %41 : vector<1x156x144xbf16> to vector<156x144xbf16>
    %cst_23 = arith.constant dense<0.000000e+00> : vector<144x144xf32>
    %43 = tpu.matmul %40, %42, %cst_23 {dimension_numbers = #tpu.dot_dimension_numbers<[1], [0], [0], [1], [0, 0, 1, 1], [], []>} : vector<144x156xbf16>, vector<156x144xbf16>, vector<144x144xf32> -> vector<144x144xf32>
    %44 = arith.addf %38, %43 : vector<144x144xf32>
    %c0_24 = arith.constant 0 : index
    %c0_25 = arith.constant 0 : index
    %45 = vector.load %arg5[%c0_24, %c0_25] : memref<1x144xf32, #tpu.memory_space<vmem>>, vector<1x144xf32>
    %46 = vector.broadcast %45 : vector<1x144xf32> to vector<144x144xf32>
    %47 = arith.addf %44, %46 : vector<144x144xf32>
    %cst_26 = arith.constant 0.000000e+00 : f32
    %48 = vector.broadcast %cst_26 : f32 to vector<144x144xf32>
    %49 = arith.maximumf %47, %48 : vector<144x144xf32>
    %50 = vector.shape_cast %49 : vector<144x144xf32> to vector<9x16x144xf32>
    %51 = vector.extract_strided_slice %50 {offsets = [0, 0, 0], sizes = [1, 16, 144], strides = [1, 1, 1]} : vector<9x16x144xf32> to vector<1x16x144xf32>
    %52 = vector.shape_cast %51 : vector<1x16x144xf32> to vector<16x144xf32>
    %cst_27 = arith.constant 5.000000e-01 : f32
    %53 = vector.broadcast %cst_27 : f32 to vector<16x144xf32>
    %54 = arith.mulf %52, %53 : vector<16x144xf32>
    %55 = vector.extract_strided_slice %50 {offsets = [1, 0, 0], sizes = [1, 16, 144], strides = [1, 1, 1]} : vector<9x16x144xf32> to vector<1x16x144xf32>
    %56 = vector.shape_cast %55 : vector<1x16x144xf32> to vector<16x144xf32>
    %57 = vector.extract_strided_slice %50 {offsets = [2, 0, 0], sizes = [1, 16, 144], strides = [1, 1, 1]} : vector<9x16x144xf32> to vector<1x16x144xf32>
    %58 = vector.shape_cast %57 : vector<1x16x144xf32> to vector<16x144xf32>
    %59 = arith.addf %56, %58 : vector<16x144xf32>
    %cst_28 = arith.constant 5.000000e-01 : f32
    %60 = vector.broadcast %cst_28 : f32 to vector<16x144xf32>
    %61 = arith.mulf %59, %60 : vector<16x144xf32>
    %62 = vector.extract_strided_slice %50 {offsets = [3, 0, 0], sizes = [1, 16, 144], strides = [1, 1, 1]} : vector<9x16x144xf32> to vector<1x16x144xf32>
    %63 = vector.shape_cast %62 : vector<1x16x144xf32> to vector<16x144xf32>
    %64 = vector.extract_strided_slice %50 {offsets = [4, 0, 0], sizes = [1, 16, 144], strides = [1, 1, 1]} : vector<9x16x144xf32> to vector<1x16x144xf32>
    %65 = vector.shape_cast %64 : vector<1x16x144xf32> to vector<16x144xf32>
    %66 = arith.addf %63, %65 : vector<16x144xf32>
    %cst_29 = arith.constant 5.000000e-01 : f32
    %67 = vector.broadcast %cst_29 : f32 to vector<16x144xf32>
    %68 = arith.mulf %66, %67 : vector<16x144xf32>
    %69 = vector.extract_strided_slice %50 {offsets = [5, 0, 0], sizes = [1, 16, 144], strides = [1, 1, 1]} : vector<9x16x144xf32> to vector<1x16x144xf32>
    %70 = vector.shape_cast %69 : vector<1x16x144xf32> to vector<16x144xf32>
    %71 = vector.extract_strided_slice %50 {offsets = [6, 0, 0], sizes = [1, 16, 144], strides = [1, 1, 1]} : vector<9x16x144xf32> to vector<1x16x144xf32>
    %72 = vector.shape_cast %71 : vector<1x16x144xf32> to vector<16x144xf32>
    %73 = arith.addf %70, %72 : vector<16x144xf32>
    %cst_30 = arith.constant 5.000000e-01 : f32
    %74 = vector.broadcast %cst_30 : f32 to vector<16x144xf32>
    %75 = arith.mulf %73, %74 : vector<16x144xf32>
    %76 = vector.extract_strided_slice %50 {offsets = [7, 0, 0], sizes = [1, 16, 144], strides = [1, 1, 1]} : vector<9x16x144xf32> to vector<1x16x144xf32>
    %77 = vector.shape_cast %76 : vector<1x16x144xf32> to vector<16x144xf32>
    %78 = vector.extract_strided_slice %50 {offsets = [8, 0, 0], sizes = [1, 16, 144], strides = [1, 1, 1]} : vector<9x16x144xf32> to vector<1x16x144xf32>
    %79 = vector.shape_cast %78 : vector<1x16x144xf32> to vector<16x144xf32>
    %80 = arith.addf %77, %79 : vector<16x144xf32>
    %cst_31 = arith.constant 5.000000e-01 : f32
    %81 = vector.broadcast %cst_31 : f32 to vector<16x144xf32>
    %82 = arith.mulf %80, %81 : vector<16x144xf32>
    %83 = arith.truncf %54 : vector<16x144xf32> to vector<16x144xbf16>
    %c0_32 = arith.constant 0 : index
    %c0_33 = arith.constant 0 : index
    %c0_34 = arith.constant 0 : index
    %84 = vector.load %arg6[%c0_32, %c0_33, %c0_34] : memref<5x144x120xbf16, #tpu.memory_space<vmem>>, vector<1x144x120xbf16>
    %85 = vector.shape_cast %84 : vector<1x144x120xbf16> to vector<144x120xbf16>
    %cst_35 = arith.constant dense<0.000000e+00> : vector<16x120xf32>
    %86 = tpu.matmul %83, %85, %cst_35 {dimension_numbers = #tpu.dot_dimension_numbers<[1], [0], [0], [1], [0, 0, 1, 1], [], []>} : vector<16x144xbf16>, vector<144x120xbf16>, vector<16x120xf32> -> vector<16x120xf32>
    %87 = arith.truncf %61 : vector<16x144xf32> to vector<16x144xbf16>
    %c1_36 = arith.constant 1 : index
    %c0_37 = arith.constant 0 : index
    %c0_38 = arith.constant 0 : index
    %88 = vector.load %arg6[%c1_36, %c0_37, %c0_38] : memref<5x144x120xbf16, #tpu.memory_space<vmem>>, vector<1x144x120xbf16>
    %89 = vector.shape_cast %88 : vector<1x144x120xbf16> to vector<144x120xbf16>
    %cst_39 = arith.constant dense<0.000000e+00> : vector<16x120xf32>
    %90 = tpu.matmul %87, %89, %cst_39 {dimension_numbers = #tpu.dot_dimension_numbers<[1], [0], [0], [1], [0, 0, 1, 1], [], []>} : vector<16x144xbf16>, vector<144x120xbf16>, vector<16x120xf32> -> vector<16x120xf32>
    %91 = arith.addf %86, %90 : vector<16x120xf32>
    %92 = arith.truncf %68 : vector<16x144xf32> to vector<16x144xbf16>
    %c2_40 = arith.constant 2 : index
    %c0_41 = arith.constant 0 : index
    %c0_42 = arith.constant 0 : index
    %93 = vector.load %arg6[%c2_40, %c0_41, %c0_42] : memref<5x144x120xbf16, #tpu.memory_space<vmem>>, vector<1x144x120xbf16>
    %94 = vector.shape_cast %93 : vector<1x144x120xbf16> to vector<144x120xbf16>
    %cst_43 = arith.constant dense<0.000000e+00> : vector<16x120xf32>
    %95 = tpu.matmul %92, %94, %cst_43 {dimension_numbers = #tpu.dot_dimension_numbers<[1], [0], [0], [1], [0, 0, 1, 1], [], []>} : vector<16x144xbf16>, vector<144x120xbf16>, vector<16x120xf32> -> vector<16x120xf32>
    %96 = arith.addf %91, %95 : vector<16x120xf32>
    %97 = arith.truncf %75 : vector<16x144xf32> to vector<16x144xbf16>
    %c3_44 = arith.constant 3 : index
    %c0_45 = arith.constant 0 : index
    %c0_46 = arith.constant 0 : index
    %98 = vector.load %arg6[%c3_44, %c0_45, %c0_46] : memref<5x144x120xbf16, #tpu.memory_space<vmem>>, vector<1x144x120xbf16>
    %99 = vector.shape_cast %98 : vector<1x144x120xbf16> to vector<144x120xbf16>
    %cst_47 = arith.constant dense<0.000000e+00> : vector<16x120xf32>
    %100 = tpu.matmul %97, %99, %cst_47 {dimension_numbers = #tpu.dot_dimension_numbers<[1], [0], [0], [1], [0, 0, 1, 1], [], []>} : vector<16x144xbf16>, vector<144x120xbf16>, vector<16x120xf32> -> vector<16x120xf32>
    %101 = arith.addf %96, %100 : vector<16x120xf32>
    %102 = arith.truncf %82 : vector<16x144xf32> to vector<16x144xbf16>
    %c4_48 = arith.constant 4 : index
    %c0_49 = arith.constant 0 : index
    %c0_50 = arith.constant 0 : index
    %103 = vector.load %arg6[%c4_48, %c0_49, %c0_50] : memref<5x144x120xbf16, #tpu.memory_space<vmem>>, vector<1x144x120xbf16>
    %104 = vector.shape_cast %103 : vector<1x144x120xbf16> to vector<144x120xbf16>
    %cst_51 = arith.constant dense<0.000000e+00> : vector<16x120xf32>
    %105 = tpu.matmul %102, %104, %cst_51 {dimension_numbers = #tpu.dot_dimension_numbers<[1], [0], [0], [1], [0, 0, 1, 1], [], []>} : vector<16x144xbf16>, vector<144x120xbf16>, vector<16x120xf32> -> vector<16x120xf32>
    %106 = arith.addf %101, %105 : vector<16x120xf32>
    %c0_52 = arith.constant 0 : index
    %c0_53 = arith.constant 0 : index
    %107 = vector.load %arg7[%c0_52, %c0_53] : memref<1x120xf32, #tpu.memory_space<vmem>>, vector<1x120xf32>
    %108 = vector.broadcast %107 : vector<1x120xf32> to vector<16x120xf32>
    %109 = arith.addf %106, %108 : vector<16x120xf32>
    %cst_54 = arith.constant 0.000000e+00 : f32
    %110 = vector.broadcast %cst_54 : f32 to vector<16x120xf32>
    %111 = arith.maximumf %109, %110 : vector<16x120xf32>
    %112 = arith.truncf %111 : vector<16x120xf32> to vector<16x120xbf16>
    %c0_55 = arith.constant 0 : index
    %c0_56 = arith.constant 0 : index
    %113 = vector.load %arg8[%c0_55, %c0_56] : memref<120x84xbf16, #tpu.memory_space<vmem>>, vector<120x84xbf16>
    %cst_57 = arith.constant dense<0.000000e+00> : vector<16x84xf32>
    %114 = tpu.matmul %112, %113, %cst_57 {dimension_numbers = #tpu.dot_dimension_numbers<[1], [0], [0], [1], [0, 0, 1, 1], [], []>} : vector<16x120xbf16>, vector<120x84xbf16>, vector<16x84xf32> -> vector<16x84xf32>
    %c0_58 = arith.constant 0 : index
    %c0_59 = arith.constant 0 : index
    %115 = vector.load %arg9[%c0_58, %c0_59] : memref<1x84xf32, #tpu.memory_space<vmem>>, vector<1x84xf32>
    %116 = vector.broadcast %115 : vector<1x84xf32> to vector<16x84xf32>
    %117 = arith.addf %114, %116 : vector<16x84xf32>
    %cst_60 = arith.constant 0.000000e+00 : f32
    %118 = vector.broadcast %cst_60 : f32 to vector<16x84xf32>
    %119 = arith.maximumf %117, %118 : vector<16x84xf32>
    %120 = arith.truncf %119 : vector<16x84xf32> to vector<16x84xbf16>
    %c0_61 = arith.constant 0 : index
    %c0_62 = arith.constant 0 : index
    %121 = vector.load %arg10[%c0_61, %c0_62] : memref<84x128xbf16, #tpu.memory_space<vmem>>, vector<84x128xbf16>
    %cst_63 = arith.constant dense<0.000000e+00> : vector<16x128xf32>
    %122 = tpu.matmul %120, %121, %cst_63 {dimension_numbers = #tpu.dot_dimension_numbers<[1], [0], [0], [1], [0, 0, 1, 1], [], []>} : vector<16x84xbf16>, vector<84x128xbf16>, vector<16x128xf32> -> vector<16x128xf32>
    %c0_64 = arith.constant 0 : index
    %c0_65 = arith.constant 0 : index
    %123 = vector.load %arg11[%c0_64, %c0_65] : memref<1x128xf32, #tpu.memory_space<vmem>>, vector<1x128xf32>
    %124 = vector.broadcast %123 : vector<1x128xf32> to vector<16x128xf32>
    %125 = arith.addf %122, %124 : vector<16x128xf32>
    %cst_66 = arith.constant dense<0xFF800000> : vector<16xf32>
    %126 = vector.multi_reduction <maximumf>, %125, %cst_66 [1] : vector<16x128xf32> to vector<16xf32>
    %127 = vector.shape_cast %126 : vector<16xf32> to vector<16x1xf32>
    %128 = vector.broadcast %127 : vector<16x1xf32> to vector<16x128xf32>
    %129 = arith.subf %125, %128 : vector<16x128xf32>
    %130 = math.exp %129 : vector<16x128xf32>
    %cst_67 = arith.constant dense<0.000000e+00> : vector<16xf32>
    %131 = vector.multi_reduction <add>, %130, %cst_67 [1] : vector<16x128xf32> to vector<16xf32>
    %132 = vector.shape_cast %131 : vector<16xf32> to vector<16x1xf32>
    %133 = tpu.reciprocal %132 : vector<16x1xf32> -> vector<16x1xf32>
    %134 = vector.broadcast %133 : vector<16x1xf32> to vector<16x128xf32>
    %135 = arith.mulf %130, %134 : vector<16x128xf32>
    %c0_68 = arith.constant 0 : index
    %c0_69 = arith.constant 0 : index
    %136 = vector.load %arg12[%c0_68, %c0_69] : memref<16x128xf32, #tpu.memory_space<vmem>>, vector<16x128xf32>
    tpu.vector_store %arg12[%c0_68, %c0_69], %135 {strides = array<i32>} : memref<16x128xf32, #tpu.memory_space<vmem>>, vector<16x128xf32>,
    return
  }
  func.func @transform_0(%arg0: i32) -> (i32, i32, i32) {
    %c0_i32 = arith.constant 0 : i32
    %c0_i32_0 = arith.constant 0 : i32
    %c0_i32_1 = arith.constant 0 : i32
    return %c0_i32, %arg0, %c0_i32_0 : i32, i32, i32
  }
  func.func @transform_1(%arg0: i32) -> (i32, i32) {
    %c0_i32 = arith.constant 0 : i32
    %c0_i32_0 = arith.constant 0 : i32
    %c0_i32_1 = arith.constant 0 : i32
    return %c0_i32, %c0_i32_0 : i32, i32
  }
  func.func @transform_2(%arg0: i32) -> (i32, i32) {
    %c0_i32 = arith.constant 0 : i32
    %c0_i32_0 = arith.constant 0 : i32
    %c0_i32_1 = arith.constant 0 : i32
    return %c0_i32, %c0_i32_0 : i32, i32
  }
  func.func @transform_3(%arg0: i32) -> (i32, i32, i32) {
    %c0_i32 = arith.constant 0 : i32
    %c0_i32_0 = arith.constant 0 : i32
    %c0_i32_1 = arith.constant 0 : i32
    %c0_i32_2 = arith.constant 0 : i32
    return %c0_i32, %c0_i32_0, %c0_i32_1 : i32, i32, i32
  }
  func.func @transform_4(%arg0: i32) -> (i32, i32) {
    %c0_i32 = arith.constant 0 : i32
    %c0_i32_0 = arith.constant 0 : i32
    %c0_i32_1 = arith.constant 0 : i32
    return %c0_i32, %c0_i32_0 : i32, i32
  }
  func.func @transform_5(%arg0: i32) -> (i32, i32, i32) {
    %c0_i32 = arith.constant 0 : i32
    %c0_i32_0 = arith.constant 0 : i32
    %c0_i32_1 = arith.constant 0 : i32
    %c0_i32_2 = arith.constant 0 : i32
    return %c0_i32, %c0_i32_0, %c0_i32_1 : i32, i32, i32
  }
  func.func @transform_6(%arg0: i32) -> (i32, i32) {
    %c0_i32 = arith.constant 0 : i32
    %c0_i32_0 = arith.constant 0 : i32
    %c0_i32_1 = arith.constant 0 : i32
    return %c0_i32, %c0_i32_0 : i32, i32
  }
  func.func @transform_7(%arg0: i32) -> (i32, i32) {
    %c0_i32 = arith.constant 0 : i32
    %c0_i32_0 = arith.constant 0 : i32
    %c0_i32_1 = arith.constant 0 : i32
    return %c0_i32, %c0_i32_0 : i32, i32
  }
  func.func @transform_8(%arg0: i32) -> (i32, i32) {
    %c0_i32 = arith.constant 0 : i32
    %c0_i32_0 = arith.constant 0 : i32
    %c0_i32_1 = arith.constant 0 : i32
    return %c0_i32, %c0_i32_0 : i32, i32
  }
  func.func @transform_9(%arg0: i32) -> (i32, i32) {
    %c0_i32 = arith.constant 0 : i32
    %c0_i32_0 = arith.constant 0 : i32
    %c0_i32_1 = arith.constant 0 : i32
    return %c0_i32, %c0_i32_0 : i32, i32
  }
  func.func @transform_10(%arg0: i32) -> (i32, i32) {
    %c0_i32 = arith.constant 0 : i32
    %c0_i32_0 = arith.constant 0 : i32
    %c0_i32_1 = arith.constant 0 : i32
    return %c0_i32, %c0_i32_0 : i32, i32
  }
  func.func @transform_11(%arg0: i32) -> (i32, i32) {
    %c0_i32 = arith.constant 0 : i32
    %c0_i32_0 = arith.constant 0 : i32
    return %arg0, %c0_i32 : i32, i32
  }
}

</mosaic_0001>

<bundles_post_ra>
// kernel: lenet5_forward.1
= control target key start
LH: loop header
LB: loop body
LE: loop exit
PB: predicated region body
PF: predicated region fallthrough
CT: control target
= control target key end

     0   :  { %vm524_vm0 = vcmask 1042432   ;;  %vm445_vm1 = vcmask 179200   ;;  %vm1569_vm2 = vcmask 1045504   ;;  %vm1541_vm3 = vcmask 228352   ;;  %s7972_s1 = inlined_call_operand.vmem [shape: bf16[150,156], index: 1, kind: input, shape index: {}]   ;;  %s7973_s0 = inlined_call_operand.vmem [shape: bf16[26,16,150], index: 0, kind: input, shape index: {}]   ;;  %s7974_s3 = inlined_call_operand.vmem [shape: bf16[5,156,144], index: 3, kind: input, shape index: {}]   ;;  %s7975_s2 = inlined_call_operand.vmem [shape: f32[1,156], index: 2, kind: input, shape index: {}]   ;;  %s7976_s5 = inlined_call_operand.vmem [shape: bf16[5,144,120], index: 5, kind: input, shape index: {}]   ;;  %s7977_s4 = inlined_call_operand.vmem [shape: f32[1,144], index: 4, kind: input, shape index: {}]   ;;  %s7978_s6 = inlined_call_operand.vmem [shape: f32[1,120], index: 6, kind: input, shape index: {}]   ;;  %s7979_s8 = inlined_call_operand.vmem [shape: f32[1,84], index: 8, kind: input, shape index: {}]   ;;  %s7980_s7 = inlined_call_operand.vmem [shape: bf16[120,84], index: 7, kind: input, shape index: {}]   ;;  %s7981_s9 = inlined_call_operand.vmem [shape: bf16[84,128], index: 9, kind: input, shape index: {}]   ;;  %s7982_s10 = inlined_call_operand.vmem [shape: f32[1,128], index: 10, kind: input, shape index: {}]   ;;  %s7983_s11 = inlined_call_operand.vmem [shape: f32[16,128], index: 11, kind: output, shape index: {}]  }
   0x1   :  { %v4425_v0 = vld [vmem:[%s7972_s1 + $0x70] sm:$0xf]  ;;  %v5435_v1 = vld [vmem:[%s7972_s1 + $0x74] sm:$0xf0]  ;;  %v5434_v2 = vld [vmem:[%s7972_s1 + $0x74] sm:$0xf] }
   0x2   :  { %v4426_v3 = vor.u32 %v5435_v1, %v4425_v0  ;;  %v4427_v4 = vld [vmem:[%s7972_s1 + $0x78] sm:$0xf0]  ;;  %v109_v5 = vld [vmem:[%s7972_s1 + $0x90] sm:$0x77]  ;;  %v4417_v6 = vld [vmem:[%s7972_s1 + $0x60] sm:$0xf] }
   0x3   :  { %v4430_v7 = vor.u32 %v5434_v2, %v4427_v4  ;;  %v405_v8 = vunpack.c.l.b16 %v109_v5  ;;  %v406_v9 = vunpack.c.h.b16 %v109_v5  ;;  %v5433_v10 = vld [vmem:[%s7972_s1 + $0x64] sm:$0xf0]  ;;  %v5432_v11 = vld [vmem:[%s7972_s1 + $0x64] sm:$0xf]  ;;  %v4419_v12 = vld [vmem:[%s7972_s1 + $0x68] sm:$0xf0] }
   0x4   :  { %531 = vmatpush.bf16.msra.mxu0 %v4426_v3  ;;  %v4433_v13 = vld [vmem:[%s7972_s1 + $0x80] sm:$0xf]  ;;  %v5437_v14 = vld [vmem:[%s7972_s1 + $0x84] sm:$0xf0]  ;;  %v4418_v17 = vor.u32 %v5433_v10, %v4417_v6  ;;  %v4422_v18 = vor.u32 %v5432_v11, %v4419_v12  ;;  %v5436_v19 = vld [vmem:[%s7972_s1 + $0x84] sm:$0xf] }
   0x5   :  { %809 = vmatpush.bf16.msra.mxu2 %v4430_v7  ;;  %v425_v15 = vpack.c.b16 %v405_v8, %v405_v8  ;;  %v426_v16 = vpack.c.b16 %v406_v9, %v406_v9  ;;  %v4435_v20 = vld [vmem:[%s7972_s1 + $0x88] sm:$0xf0]  ;;  %v4409_v21 = vld [vmem:[%s7972_s1 + $0x50] sm:$0xf]  ;;  %v5431_v22 = vld [vmem:[%s7972_s1 + $0x54] sm:$0xf0]  ;;  %v4434_v27 = vor.u32 %v5437_v14, %v4433_v13 }
   0x6   :  { %v5430_v23 = vld [vmem:[%s7972_s1 + $0x54] sm:$0xf]  ;;  %v4411_v24 = vld [vmem:[%s7972_s1 + $0x58] sm:$0xf0]  ;;  %v4438_v28 = vor.u32 %v5436_v19, %v4435_v20  ;;  %v5368_v29 = vld [vmem:[%s7973_s0 + $0x4] sm:$0xf]  ;;  %v4410_v31 = vor.u32 %v5431_v22, %v4409_v21 }
   0x7   :  { %v526_v25 = vsel %vm524_vm0, %v425_v15, 0  ;;  %v529_v26 = vsel %vm524_vm0, %v426_v16, 0  ;;  %v4163_v30 = vld [vmem:[%s7973_s0 + $0x8] sm:$0xf0]  ;;  %v4414_v32 = vor.u32 %v5430_v23, %v4411_v24  ;;  %v4401_v33 = vld [vmem:[%s7972_s1 + $0x40] sm:$0xf] }
   0x8   :  { %676 = vmatpush.bf16.msra.mxu1 %v526_v25  ;;  %954 = vmatpush.bf16.msra.mxu3 %v529_v26  ;;  %v5429_v34 = vld [vmem:[%s7972_s1 + $0x44] sm:$0xf0]  ;;  %v5428_v35 = vld [vmem:[%s7972_s1 + $0x44] sm:$0xf]  ;;  %v4403_v36 = vld [vmem:[%s7972_s1 + $0x48] sm:$0xf0]  ;;  %v4166_v37 = vor.u32 %v5368_v29, %v4163_v30 }
   0x9   :  { %532 = vmatpush.bf16.msra.mxu0 %v4418_v17  ;;  %810 = vmatpush.bf16.msra.mxu2 %v4422_v18  ;;  %v4402_v38 = vor.u32 %v5429_v34, %v4401_v33  ;;  %v4406_v39 = vor.u32 %v5428_v35, %v4403_v36  ;;  %v4393_v40 = vld [vmem:[%s7972_s1 + $0x30] sm:$0xf]  ;;  %v5427_v41 = vld [vmem:[%s7972_s1 + $0x34] sm:$0xf0]  ;;  %v5426_v42 = vld [vmem:[%s7972_s1 + $0x34] sm:$0xf] }
   0xa   :  { %v4395_v43 = vld [vmem:[%s7972_s1 + $0x38] sm:$0xf0]  ;;  %v4385_v44 = vld [vmem:[%s7972_s1 + $0x20] sm:$0xf]  ;;  %v4585_v45 = vld [vmem:[%s7974_s3 + $0x130] sm:$0xf]  ;;  %v4394_v46 = vor.u32 %v5427_v41, %v4393_v40 }
   0xb   :  { %v4398_v47 = vor.u32 %v5426_v42, %v4395_v43  ;;  %v5425_v48 = vld [vmem:[%s7972_s1 + $0x24] sm:$0xf0]  ;;  %v5477_v49 = vld [vmem:[%s7974_s3 + $0x134] sm:$0x30]  ;;  %v5424_v50 = vld [vmem:[%s7972_s1 + $0x24] sm:$0xf] }
   0xc   :  { %677 = vmatpush.bf16.msra.mxu1 %v4434_v27  ;;  %955 = vmatpush.bf16.msra.mxu3 %v4438_v28  ;;  %v4387_v51 = vld [vmem:[%s7972_s1 + $0x28] sm:$0xf0]  ;;  %v4586_v52 = vor.u32 %v5477_v49, %v4585_v45  ;;  %v4569_v53 = vld [vmem:[%s7974_s3 + $0x110] sm:$0xf]  ;;  %v5473_v54 = vld [vmem:[%s7974_s3 + $0x114] sm:$0xf0]  ;;  %v4386_v57 = vor.u32 %v5425_v48, %v4385_v44 }
   0xd   :  { %533 = vmatpush.bf16.msra.mxu0 %v4410_v31  ;;  %811 = vmatpush.bf16.msra.mxu2 %v4414_v32  ;;  %v4570_v56 = vor.u32 %v5473_v54, %v4569_v53  ;;  %v4390_v58 = vor.u32 %v5424_v50, %v4387_v51  ;;  %v4377_v59 = vld [vmem:[%s7972_s1 + $0x10] sm:$0xf]  ;;  %v5423_v60 = vld [vmem:[%s7972_s1 + $0x14] sm:$0xf0]  ;;  %v5422_v61 = vld [vmem:[%s7972_s1 + $0x14] sm:$0xf] }
   0xe   :  { %v1571_v55 = vsel %vm1569_vm2, %v4586_v52, 0  ;;  %v4379_v62 = vld [vmem:[%s7972_s1 + $0x18] sm:$0xf0]  ;;  %v5370_v63 = vld [vmem:[%s7973_s0 + $0x14] sm:$0xf]  ;;  %v4378_v3 = vor.u32 %v5423_v60, %v4377_v59  ;;  %vm3500_vm4 = vcmask 130048  }
   0xf   :  { %4439 = vmatmul.msk.bf16.vlgmr.msra.gmra.mxu1 %vm445_vm1, %v4166_v37  ;;  %4465 = vmatmul.msk.bf16.vlgmr.msra.gmra.mxu3 %vm445_vm1, %v4166_v37  ;;  %v4171_v0 = vld [vmem:[%s7973_s0 + $0x18] sm:$0xf0]  ;;  %v5476_v1 = vld [vmem:[%s7974_s3 + $0x134] sm:$0xf]  ;;  %v4382_v4 = vor.u32 %v5422_v61, %v4379_v62  ;;  %v4369_v5 = vld [vmem:[%s7972_s1] sm:$0xf] }
  0x10   :  { %1636 = vmatpush.bf16.msrb.mxu3 %v1571_v55  ;;  %1576 = vmatpush.bf16.msrb.mxu1 %v4570_v56  ;;  %v4587_v2 = vld [vmem:[%s7974_s3 + $0x138] sm:$0x30]  ;;  %v5421_v6 = vld [vmem:[%s7972_s1 + $0x4] sm:$0xf0]  ;;  %v5420_v7 = vld [vmem:[%s7972_s1 + $0x4] sm:$0xf]  ;;  %v4174_v9 = vor.u32 %v5370_v63, %v4171_v0 }
  0x11   :  { %534 = vmatpush.bf16.msra.mxu0 %v4402_v38  ;;  %812 = vmatpush.bf16.msra.mxu2 %v4406_v39  ;;  %v4371_v8 = vld [vmem:[%s7972_s1 + $0x8] sm:$0xf0]  ;;  %v4590_v10 = vor.u32 %v5476_v1, %v4587_v2  ;;  %v5472_v11 = vld [vmem:[%s7974_s3 + $0x114] sm:$0xf]  ;;  %v4571_v12 = vld [vmem:[%s7974_s3 + $0x118] sm:$0xf0]  ;;  %v4370_v13 = vor.u32 %v5421_v6, %v4369_v5 }
  0x12   :  { %v4374_v14 = vor.u32 %v5420_v7, %v4371_v8  ;;  %v4161_v15 = vld [vmem:[%s7973_s0] sm:$0xf]  ;;  %v5369_v16 = vld [vmem:[%s7973_s0 + $0x4] sm:$0xf0]  ;;  %v4574_v17 = vor.u32 %v5472_v11, %v4571_v12  ;;  %v5372_v20 = vld [vmem:[%s7973_s0 + $0x24] sm:$0xf] }
  0x13   :  { %v1574_v18 = vsel %vm1569_vm2, %v4590_v10, 0  ;;  %v4162_v19 = vor.u32 %v5369_v16, %v4161_v15  ;;  %v4179_v21 = vld [vmem:[%s7973_s0 + $0x28] sm:$0xf0]  ;;  %v4169_v23 = vld [vmem:[%s7973_s0 + $0x10] sm:$0xf]  ;;  %vm4018_vm5 = vcmask 1043456  }
  0x14   :  { %v4182_v22 = vor.u32 %v5372_v20, %v4179_v21  ;;  %v5371_v24 = vld [vmem:[%s7973_s0 + $0x14] sm:$0xf0]  ;;  %v5470_v26 = vld [vmem:[%s7974_s3 + $0x104] sm:$0xf]  ;;  %v4563_v27 = vld [vmem:[%s7974_s3 + $0x108] sm:$0xf0] }
  0x15   :  { %535 = vmatpush.bf16.msra.mxu0 %v4394_v46  ;;  %813 = vmatpush.bf16.msra.mxu2 %v4398_v47  ;;  %v4170_v25 = vor.u32 %v5371_v24, %v4169_v23  ;;  %v4566_v28 = vor.u32 %v5470_v26, %v4563_v27  ;;  %v5374_v29 = vld [vmem:[%s7973_s0 + $0x34] sm:$0xf]  ;;  %v4187_v30 = vld [vmem:[%s7973_s0 + $0x38] sm:$0xf0]  ;;  %v4177_v32 = vld [vmem:[%s7973_s0 + $0x20] sm:$0xf] }
  0x16   :  { %v4190_v31 = vor.u32 %v5374_v29, %v4187_v30  ;;  %v5373_v33 = vld [vmem:[%s7973_s0 + $0x24] sm:$0xf0]  ;;  %v4561_v35 = vld [vmem:[%s7974_s3 + $0x100] sm:$0xf]  ;;  %v5376_v38 = vld [vmem:[%s7973_s0 + $0x44] sm:$0xf] }
  0x17   :  { %v4178_v34 = vor.u32 %v5373_v33, %v4177_v32  ;;  %v5471_v36 = vld [vmem:[%s7974_s3 + $0x104] sm:$0xf0]  ;;  %v4195_v39 = vld [vmem:[%s7973_s0 + $0x48] sm:$0xf0]  ;;  %v4185_v41 = vld [vmem:[%s7973_s0 + $0x30] sm:$0xf] }
  0x18   :  { %v4562_v37 = vor.u32 %v5471_v36, %v4561_v35  ;;  %v4198_v40 = vor.u32 %v5376_v38, %v4195_v39  ;;  %v5375_v42 = vld [vmem:[%s7973_s0 + $0x34] sm:$0xf0]  ;;  %v5378_v44 = vld [vmem:[%s7973_s0 + $0x54] sm:$0xf]  ;;  %v4203_v45 = vld [vmem:[%s7973_s0 + $0x58] sm:$0xf0] }
  0x19   :  { %536 = vmatpush.bf16.msra.mxu0 %v4386_v57  ;;  %814 = vmatpush.bf16.msra.mxu2 %v4390_v58  ;;  %v4186_v43 = vor.u32 %v5375_v42, %v4185_v41  ;;  %v4206_v46 = vor.u32 %v5378_v44, %v4203_v45  ;;  %v4193_v47 = vld [vmem:[%s7973_s0 + $0x40] sm:$0xf]  ;;  %v5377_v48 = vld [vmem:[%s7973_s0 + $0x44] sm:$0xf0]  ;;  %v5380_v50 = vld [vmem:[%s7973_s0 + $0x64] sm:$0xf] }
  0x1a   :  { %1577 = vmatpush.bf16.msrb.mxu1 %v4562_v37  ;;  %v4194_v49 = vor.u32 %v5377_v48, %v4193_v47  ;;  %v4211_v51 = vld [vmem:[%s7973_s0 + $0x68] sm:$0xf0]  ;;  %v4201_v53 = vld [vmem:[%s7973_s0 + $0x50] sm:$0xf]  ;;  %v5379_v54 = vld [vmem:[%s7973_s0 + $0x54] sm:$0xf0] }
  0x1b   :  { %v4214_v52 = vor.u32 %v5380_v50, %v4211_v51  ;;  %v4202_v55 = vor.u32 %v5379_v54, %v4201_v53  ;;  %v5468_v56 = vld [vmem:[%s7974_s3 + $0xf4] sm:$0xf]  ;;  %v4555_v57 = vld [vmem:[%s7974_s3 + $0xf8] sm:$0xf0]  ;;  %v4553_v59 = vld [vmem:[%s7974_s3 + $0xf0] sm:$0xf] }
  0x1c   :  { %v4558_v58 = vor.u32 %v5468_v56, %v4555_v57  ;;  %v5469_v60 = vld [vmem:[%s7974_s3 + $0xf4] sm:$0xf0]  ;;  %v5382_v62 = vld [vmem:[%s7973_s0 + $0x74] sm:$0xf]  ;;  %v4219_v63 = vld [vmem:[%s7973_s0 + $0x78] sm:$0xf0] }
  0x1d   :  { %537 = vmatpush.bf16.msra.mxu0 %v4378_v3  ;;  %815 = vmatpush.bf16.msra.mxu2 %v4382_v4  ;;  %v4554_v61 = vor.u32 %v5469_v60, %v4553_v59  ;;  %v4222_v0 = vor.u32 %v5382_v62, %v4219_v63  ;;  %v4209_v1 = vld [vmem:[%s7973_s0 + $0x60] sm:$0xf]  ;;  %v5381_v2 = vld [vmem:[%s7973_s0 + $0x64] sm:$0xf0]  ;;  %v5384_v4 = vld [vmem:[%s7973_s0 + $0x84] sm:$0xf] }
  0x1e   :  { %v4210_v3 = vor.u32 %v5381_v2, %v4209_v1  ;;  %v4227_v5 = vld [vmem:[%s7973_s0 + $0x88] sm:$0xf0]  ;;  %v4217_v8 = vld [vmem:[%s7973_s0 + $0x70] sm:$0xf]  ;;  %v5385_v20 = vld [vmem:[%s7973_s0 + $0x84] sm:$0xf0] }
  0x1f   :  { %4440 = vmatmul.msk.bf16.gmra.mxu1 %vm445_vm1, %v4174_v9  ;;  %4466 = vmatmul.msk.bf16.gmra.mxu3 %vm445_vm1, %v4174_v9  ;;  %v4230_v6 = vor.u32 %v5384_v4, %v4227_v5  ;;  %v5383_v9 = vld [vmem:[%s7973_s0 + $0x74] sm:$0xf0]  ;;  %v4243_v32 = vld [vmem:[%s7973_s0 + $0xa8] sm:$0xf0]  ;;  %v5466_v42 = vld [vmem:[%s7974_s3 + $0xe4] sm:$0xf] }
  0x20   :  { %1578 = vmatpush.bf16.msrb.mxu1 %v4554_v61  ;;  %v4218_v10 = vor.u32 %v5383_v9, %v4217_v8  ;;  %v5387_v41 = vld [vmem:[%s7973_s0 + $0x94] sm:$0xf0]  ;;  %v5467_v47 = vld [vmem:[%s7974_s3 + $0xe4] sm:$0xf0]  ;;  %v5390_v62 = vld [vmem:[%s7973_s0 + $0xb4] sm:$0xf] }
  0x21   :  { %538 = vmatpush.bf16.msra.mxu0 %v4370_v13  ;;  %816 = vmatpush.bf16.msra.mxu2 %v4374_v14  ;;  %v5386_v13 = vld [vmem:[%s7973_s0 + $0x94] sm:$0xf]  ;;  %v4235_v14 = vld [vmem:[%s7973_s0 + $0x98] sm:$0xf0]  ;;  %v4241_v9 = vld [vmem:[%s7973_s0 + $0xa0] sm:$0xf] }
  0x22   :  { %v4238_v16 = vor.u32 %v5386_v13, %v4235_v14  ;;  %v4251_v63 = vld [vmem:[%s7973_s0 + $0xb8] sm:$0xf0]  ;;  %vm4091_vm6 = vcmask 1041408   ;;  %vm4014_vm7 = vcmask 982016   ;;  %vm4087_vm8 = vcmask 687104  }
  0x23   :  { %v4254_v4 = vor.u32 %v5390_v62, %v4251_v63 }
  0x24   :  { %539 = vmatmul.bf16.vlgmr.msra.gmra.mxu0 %v4162_v19  ;;  %817 = vmatmul.bf16.vlgmr.msra.gmra.mxu2 %v4162_v19  ;;  %v4225_v19 = vld [vmem:[%s7973_s0 + $0x80] sm:$0xf] }
  0x25   :  { %1744 = vmatpush.bf16.msrb.mxu2 %v1574_v18  ;;  %1684 = vmatpush.bf16.msrb.mxu0 %v4574_v17  ;;  %v110_v17 = vld [vmem:[%s7975_s2] sm:$0x3] }
  0x26   :  { %v5964_v21 = vperm.slane %v110_v17, 0 }
  0x29   :  { %1685 = vmatpush.bf16.msrb.mxu0 %v4566_v28  ;;  %v5969_v28 = vperm.slane %v110_v17, 1 }
  0x2d   :  { %1686 = vmatpush.bf16.msrb.mxu0 %v4558_v58 }
  0x2f   :  { %4441 = vmatmul.msk.bf16.gmra.mxu1 %vm445_vm1, %v4182_v22  ;;  %4467 = vmatmul.msk.bf16.gmra.mxu3 %vm445_vm1, %v4182_v22  ;;  %v4226_v22 = vor.u32 %v5385_v20, %v4225_v19 }
  0x34   :  { %544 = vmatmul.bf16.gmra.mxu0 %v4170_v25  ;;  %822 = vmatmul.bf16.gmra.mxu2 %v4170_v25 }
  0x3f   :  { %4442 = vmatmul.msk.bf16.gmra.mxu1 %vm445_vm1, %v4190_v31  ;;  %4468 = vmatmul.msk.bf16.gmra.mxu3 %vm445_vm1, %v4190_v31  ;;  %v5388_v31 = vld [vmem:[%s7973_s0 + $0xa4] sm:$0xf] }
  0x40   :  { %v4246_v37 = vor.u32 %v5388_v31, %v4243_v32 }
  0x44   :  { %549 = vmatmul.bf16.gmra.mxu0 %v4178_v34  ;;  %827 = vmatmul.bf16.gmra.mxu2 %v4178_v34 }
  0x4f   :  { %4443 = vmatmul.msk.bf16.gmra.mxu1 %vm445_vm1, %v4198_v40  ;;  %4469 = vmatmul.msk.bf16.gmra.mxu3 %vm445_vm1, %v4198_v40  ;;  %v4233_v40 = vld [vmem:[%s7973_s0 + $0x90] sm:$0xf] }
  0x54   :  { %554 = vmatmul.bf16.gmra.mxu0 %v4186_v43  ;;  %832 = vmatmul.bf16.gmra.mxu2 %v4186_v43  ;;  %v4547_v43 = vld [vmem:[%s7974_s3 + $0xe8] sm:$0xf0] }
  0x55   :  { %v4550_v45 = vor.u32 %v5466_v42, %v4547_v43 }
  0x57   :  { %1687 = vmatpush.bf16.msrb.mxu0 %v4550_v45 }
  0x5f   :  { %4444 = vmatmul.msk.bf16.gmra.mxu1 %vm445_vm1, %v4206_v46  ;;  %4470 = vmatmul.msk.bf16.gmra.mxu3 %vm445_vm1, %v4206_v46  ;;  %v4545_v46 = vld [vmem:[%s7974_s3 + $0xe0] sm:$0xf] }
  0x60   :  { %v4546_v50 = vor.u32 %v5467_v47, %v4545_v46 }
  0x62   :  { %1579 = vmatpush.bf16.msrb.mxu1 %v4546_v50  ;;  %v4249_v50 = vld [vmem:[%s7973_s0 + $0xb0] sm:$0xf] }
  0x64   :  { %559 = vmatmul.bf16.gmra.mxu0 %v4194_v49  ;;  %837 = vmatmul.bf16.gmra.mxu2 %v4194_v49  ;;  %v4234_v49 = vor.u32 %v5387_v41, %v4233_v40 }
  0x6f   :  { %4445 = vmatmul.msk.bf16.gmra.mxu1 %vm445_vm1, %v4214_v52  ;;  %4471 = vmatmul.msk.bf16.gmra.mxu3 %vm445_vm1, %v4214_v52 }
  0x74   :  { %564 = vmatmul.bf16.gmra.mxu0 %v4202_v55  ;;  %842 = vmatmul.bf16.gmra.mxu2 %v4202_v55 }
  0x7f   :  { %4446 = vmatmul.msk.bf16.gmra.mxu1 %vm445_vm1, %v4222_v0  ;;  %4472 = vmatmul.msk.bf16.gmra.mxu3 %vm445_vm1, %v4222_v0 }
  0x84   :  { %569 = vmatmul.bf16.gmra.mxu0 %v4210_v3  ;;  %847 = vmatmul.bf16.gmra.mxu2 %v4210_v3 }
  0x8c   :  { %v679_v7 = vpop.f32.mrf.mxu1 }
  0x8f   :  { %4447 = vmatmul.msk.bf16.gmra.mxu1 %vm445_vm1, %v4230_v6  ;;  %4473 = vmatmul.msk.bf16.gmra.mxu3 %vm445_vm1, %v4230_v6 }
  0x92   :  { %v957_v11 = vpop.f32.mrf.mxu3 }
  0x94   :  { %574 = vmatmul.bf16.gmra.mxu0 %v4218_v10  ;;  %v681_v12 = vpop.f32.mrf.mxu1  ;;  %852 = vmatmul.bf16.gmra.mxu2 %v4218_v10  ;;  %v5389_v10 = vld [vmem:[%s7973_s0 + $0xa4] sm:$0xf0] }
  0x9a   :  { %v959_v15 = vpop.f32.mrf.mxu3 }
  0x9c   :  { %v684_v18 = vpop.f32.mrf.mxu1 }
  0x9f   :  { %4448 = vmatmul.msk.bf16.gmra.mxu1 %vm445_vm1, %v4238_v16  ;;  %4474 = vmatmul.msk.bf16.gmra.mxu3 %vm445_vm1, %v4238_v16 }
  0xa1   :  { %v540_v23 = vpop.f32.mrf.mxu0 }
  0xa2   :  { %v541_v24 = vadd.f32 %v540_v23, %v5964_v21  ;;  %v962_v25 = vpop.f32.mrf.mxu3 }
  0xa4   :  { %v680_v26 = vadd.f32 %v679_v7, %v541_v24  ;;  %579 = vmatmul.bf16.gmra.mxu0 %v4226_v22  ;;  %v686_v27 = vpop.f32.mrf.mxu1  ;;  %857 = vmatmul.bf16.gmra.mxu2 %v4226_v22 }
  0xa6   :  { %v1087_v57 = vmax.f32 %v680_v26, 0.0 }
  0xa7   :  { %v818_v29 = vpop.f32.mrf.mxu2 }
  0xa8   :  { %v819_v30 = vadd.f32 %v818_v29, %v5969_v28 }
  0xa9   :  { %v542_v33 = vpop.f32.mrf.mxu0 }
  0xaa   :  { %v958_v34 = vadd.f32 %v957_v11, %v819_v30  ;;  %v543_v35 = vadd.f32 %v542_v33, %v5964_v21  ;;  %v964_v36 = vpop.f32.mrf.mxu3 }
  0xac   :  { %v682_v38 = vadd.f32 %v681_v12, %v543_v35  ;;  %v689_v39 = vpop.f32.mrf.mxu1  ;;  %v1088_v5 = vmax.f32 %v958_v34, 0.0 }
  0xae   :  { %v1089_v11 = vmax.f32 %v682_v38, 0.0 }
  0xaf   :  { %4449 = vmatmul.msk.bf16.gmra.mxu1 %vm445_vm1, %v4246_v37  ;;  %v820_v44 = vpop.f32.mrf.mxu2  ;;  %4475 = vmatmul.msk.bf16.gmra.mxu3 %vm445_vm1, %v4246_v37  ;;  %v5392_v37 = vld [vmem:[%s7973_s0 + $0xc4] sm:$0xf] }
  0xb0   :  { %v821_v48 = vadd.f32 %v820_v44, %v5969_v28 }
  0xb1   :  { %v545_v51 = vpop.f32.mrf.mxu0 }
  0xb2   :  { %v960_v52 = vadd.f32 %v959_v15, %v821_v48  ;;  %v546_v53 = vadd.f32 %v545_v51, %v5964_v21  ;;  %v967_v54 = vpop.f32.mrf.mxu3  ;;  %v4242_v15 = vor.u32 %v5389_v10, %v4241_v9  ;;  %v5391_v51 = vld [vmem:[%s7973_s0 + $0xb4] sm:$0xf0]  ;;  %v5474_v10 = vld [vmem:[%s7974_s3 + $0x124] sm:$0xf] }
  0xb4   :  { %v685_v55 = vadd.f32 %v684_v18, %v546_v53  ;;  %584 = vmatmul.bf16.gmra.mxu0 %v4234_v49  ;;  %v691_v56 = vpop.f32.mrf.mxu1  ;;  %862 = vmatmul.bf16.gmra.mxu2 %v4234_v49  ;;  %v1090_v26 = vmax.f32 %v960_v52, 0.0 }
  0xb6   :  { %v1091_v58 = vmax.f32 %v685_v55, 0.0 }
  0xb7   :  { %v823_v59 = vpop.f32.mrf.mxu2 }
  0xb8   :  { %v1191_v60 = vadd.f32 %v1091_v58, %v1087_v57  ;;  %v824_v61 = vadd.f32 %v823_v59, %v5969_v28 }
  0xb9   :  { %v547_v0 = vpop.f32.mrf.mxu0 }
  0xba   :  { %v963_v1 = vadd.f32 %v962_v25, %v824_v61  ;;  %v548_v2 = vadd.f32 %v547_v0, %v5964_v21  ;;  %v969_v3 = vpop.f32.mrf.mxu3  ;;  %v1243_v16 = vmul.f32 0.5, %v1191_v60 }
  0xbc   :  { %v1092_v6 = vmax.f32 %v963_v1, 0.0  ;;  %v687_v7 = vadd.f32 %v686_v27, %v548_v2  ;;  %v694_v8 = vpop.f32.mrf.mxu1 }
  0xbe   :  { %v1192_v12 = vadd.f32 %v1092_v6, %v1088_v5  ;;  %v1093_v13 = vmax.f32 %v687_v7, 0.0  ;;  %v5394_v5 = vld [vmem:[%s7973_s0 + $0xd4] sm:$0xf] }
  0xbf   :  { %4450 = vmatmul.msk.bf16.gmra.mxu1 %vm445_vm1, %v4254_v4  ;;  %v825_v14 = vpop.f32.mrf.mxu2  ;;  %4476 = vmatmul.msk.bf16.gmra.mxu3 %vm445_vm1, %v4254_v4 }
  0xc0   :  { %v1244_v17 = vmul.f32 0.5, %v1192_v12  ;;  %v1193_v18 = vadd.f32 %v1093_v13, %v1089_v11  ;;  %v826_v19 = vadd.f32 %v825_v14, %v5969_v28  ;;  %v4579_v11 = vld [vmem:[%s7974_s3 + $0x128] sm:$0xf0] }
  0xc1   :  { %v550_v20 = vpop.f32.mrf.mxu0  ;;  %v4582_v13 = vor.u32 %v5474_v10, %v4579_v11 }
  0xc2   :  { %v1295_v22 = vpack.c.bf16 %v1244_v17, %v1243_v16  ;;  %v965_v23 = vadd.f32 %v964_v36, %v826_v19  ;;  %v551_v24 = vadd.f32 %v550_v20, %v5964_v21  ;;  %v972_v25 = vpop.f32.mrf.mxu3  ;;  %v1245_v33 = vmul.f32 0.5, %v1193_v18  ;;  %v4259_v36 = vld [vmem:[%s7973_s0 + $0xc8] sm:$0xf0]  ;;  %v4257_v18 = vld [vmem:[%s7973_s0 + $0xc0] sm:$0xf] }
  0xc3   :  { %v4262_v44 = vor.u32 %v5392_v37, %v4259_v36  ;;  %v5393_v19 = vld [vmem:[%s7973_s0 + $0xc4] sm:$0xf0]  ;;  %1745 = vmatpush.bf16.msrb.mxu2 %v4582_v13 }
  0xc4   :  { %v1094_v27 = vmax.f32 %v965_v23, 0.0  ;;  %v690_v29 = vadd.f32 %v689_v39, %v551_v24  ;;  %589 = vmatmul.bf16.gmra.mxu0 %v4242_v15  ;;  %v696_v30 = vpop.f32.mrf.mxu1  ;;  %867 = vmatmul.bf16.gmra.mxu2 %v4242_v15  ;;  %v1794_v43 = vunpack.c.l.b16 %v1295_v22  ;;  %v1795_v45 = vunpack.c.h.b16 %v1295_v22 }
  0xc6   :  { %v1194_v31 = vadd.f32 %v1094_v27, %v1090_v26  ;;  %v1095_v63 = vmax.f32 %v690_v29, 0.0 }
  0xc7   :  { %v828_v32 = vpop.f32.mrf.mxu2 }
  0xc8   :  { %v1246_v34 = vmul.f32 0.5, %v1194_v31  ;;  %v829_v35 = vadd.f32 %v828_v32, %v5969_v28 }
  0xc9   :  { %v552_v38 = vpop.f32.mrf.mxu0 }
  0xca   :  { %v1296_v40 = vpack.c.bf16 %v1246_v34, %v1245_v33  ;;  %v968_v39 = vadd.f32 %v967_v54, %v829_v35  ;;  %v553_v41 = vadd.f32 %v552_v38, %v5964_v21  ;;  %v974_v42 = vpop.f32.mrf.mxu3 }
  0xcc   :  { %v1796_v46 = vunpack.c.l.b16 %v1296_v40  ;;  %v1797_v47 = vunpack.c.h.b16 %v1296_v40  ;;  %v692_v48 = vadd.f32 %v691_v56, %v553_v41  ;;  %v699_v49 = vpop.f32.mrf.mxu1  ;;  %v4250_v56 = vor.u32 %v5391_v51, %v4249_v50  ;;  %v5475_v41 = vld [vmem:[%s7974_s3 + $0x124] sm:$0xf0]  ;;  %v5396_v51 = vld [vmem:[%s7973_s0 + $0xe4] sm:$0xf] }
  0xcd   :  { %v1096_v14 = vmax.f32 %v968_v39, 0.0  ;;  %v4577_v39 = vld [vmem:[%s7974_s3 + $0x120] sm:$0xf] }
  0xce   :  { %v6033_v52 = vpack.c.b16 %v1797_v47, %v1795_v45  ;;  %v6035_v53 = vpack.c.b16 %v1796_v46, %v1794_v43  ;;  %v1097_v20 = vmax.f32 %v692_v48, 0.0  ;;  %v5464_v43 = vld [vmem:[%s7974_s3 + $0xd4] sm:$0xf] }
  0xcf   :  { %4451 = vmatmul.msk.bf16.gmra.mxu1 %vm445_vm1, %v4262_v44  ;;  %v830_v54 = vpop.f32.mrf.mxu2  ;;  %4477 = vmatmul.msk.bf16.gmra.mxu3 %vm445_vm1, %v4262_v44  ;;  %v4539_v44 = vld [vmem:[%s7974_s3 + $0xd8] sm:$0xf0] }
  0xd0   :  { %v831_v55 = vadd.f32 %v830_v54, %v5969_v28  ;;  %v4542_v46 = vor.u32 %v5464_v43, %v4539_v44  ;;  %v4275_v54 = vld [vmem:[%s7973_s0 + $0xe8] sm:$0xf0] }
  0xd1   :  { %v555_v57 = vpop.f32.mrf.mxu0 }
  0xd2   :  { %v970_v58 = vadd.f32 %v969_v3, %v831_v55  ;;  %v556_v59 = vadd.f32 %v555_v57, %v5964_v21  ;;  %v6041_v60 = vpop.f32.mrf.mxu3  ;;  %v4267_v3 = vld [vmem:[%s7973_s0 + $0xd8] sm:$0xf0]  ;;  %1688 = vmatpush.bf16.msrb.mxu0 %v4542_v46 }
  0xd3   :  { %v4270_v12 = vor.u32 %v5394_v5, %v4267_v3  ;;  %v4265_v3 = vld [vmem:[%s7973_s0 + $0xd0] sm:$0xf] }
  0xd4   :  { %v695_v61 = vadd.f32 %v694_v8, %v556_v59  ;;  %594 = vmatmul.bf16.gmra.mxu0 %v4250_v56  ;;  %v6043_v62 = vpop.f32.mrf.mxu1  ;;  %872 = vmatmul.bf16.gmra.mxu2 %v4250_v56  ;;  %v1098_v37 = vmax.f32 %v970_v58, 0.0 }
  0xd6   :  { %v1099_v0 = vmax.f32 %v695_v61, 0.0 }
  0xd7   :  { %v833_v1 = vpop.f32.mrf.mxu2 }
  0xd8   :  { %v1195_v2 = vadd.f32 %v1099_v0, %v1095_v63  ;;  %v834_v4 = vadd.f32 %v833_v1, %v5969_v28  ;;  %v4278_v63 = vor.u32 %v5396_v51, %v4275_v54 }
  0xd9   :  { %v557_v6 = vpop.f32.mrf.mxu0 }
  0xda   :  { %v973_v7 = vadd.f32 %v972_v25, %v834_v4  ;;  %v558_v8 = vadd.f32 %v557_v6, %v5964_v21  ;;  %v6053_v9 = vpop.f32.mrf.mxu3  ;;  %v4258_v25 = vor.u32 %v5393_v19, %v4257_v18  ;;  %v1247_v26 = vmul.f32 0.5, %v1195_v2  ;;  %v5395_v6 = vld [vmem:[%s7973_s0 + $0xd4] sm:$0xf0] }
  0xdb   :  { %v4266_v13 = vor.u32 %v5395_v6, %v4265_v3 }
  0xdc   :  { %v1100_v15 = vmax.f32 %v973_v7, 0.0  ;;  %v697_v16 = vadd.f32 %v696_v30, %v558_v8  ;;  %v6061_v17 = vpop.f32.mrf.mxu1  ;;  %v5465_v7 = vld [vmem:[%s7974_s3 + $0xd4] sm:$0xf0] }
  0xde   :  { %v1196_v22 = vadd.f32 %v1100_v15, %v1096_v14  ;;  %v1101_v23 = vmax.f32 %v697_v16, 0.0 }
  0xdf   :  { %4452 = vmatmul.msk.bf16.gmra.mxu1 %vm445_vm1, %v4270_v12  ;;  %v835_v24 = vpop.f32.mrf.mxu2  ;;  %4478 = vmatmul.msk.bf16.gmra.mxu3 %vm445_vm1, %v4270_v12 }
  0xe0   :  { %v1248_v27 = vmul.f32 0.5, %v1196_v22  ;;  %v1197_v29 = vadd.f32 %v1101_v23, %v1097_v20  ;;  %v836_v30 = vadd.f32 %v835_v24, %v5969_v28 }
  0xe1   :  { %v560_v31 = vpop.f32.mrf.mxu0 }
  0xe2   :  { %v1297_v32 = vpack.c.bf16 %v1248_v27, %v1247_v26  ;;  %v975_v33 = vadd.f32 %v974_v42, %v836_v30  ;;  %v561_v34 = vadd.f32 %v560_v31, %v5964_v21  ;;  %v6073_v35 = vpop.f32.mrf.mxu3  ;;  %v4578_v42 = vor.u32 %v5475_v41, %v4577_v39  ;;  %v5398_v27 = vld [vmem:[%s7973_s0 + $0xf4] sm:$0xf]  ;;  %v5397_v39 = vld [vmem:[%s7973_s0 + $0xe4] sm:$0xf0] }
  0xe3   :  { %v1249_v48 = vmul.f32 0.5, %v1197_v29 }
  0xe4   :  { %v1102_v36 = vmax.f32 %v975_v33, 0.0  ;;  %v700_v38 = vadd.f32 %v699_v49, %v561_v34  ;;  %599 = vmatmul.bf16.gmra.mxu0 %v4258_v25  ;;  %v6075_v40 = vpop.f32.mrf.mxu1  ;;  %877 = vmatmul.bf16.gmra.mxu2 %v4258_v25  ;;  %v1381_v61 = vunpack.c.h.b16 %v1297_v32  ;;  %v1380_v4 = vunpack.c.l.b16 %v1297_v32 }
  0xe5   :  { %1637 = vmatpush.bf16.msrb.mxu3 %v4578_v42 }
  0xe6   :  { %v1198_v45 = vadd.f32 %v1102_v36, %v1098_v37  ;;  %v1103_v22 = vmax.f32 %v700_v38, 0.0  ;;  %v4273_v38 = vld [vmem:[%s7973_s0 + $0xe0] sm:$0xf] }
  0xe7   :  { %v838_v47 = vpop.f32.mrf.mxu2  ;;  %v4274_v44 = vor.u32 %v5397_v39, %v4273_v38 }
  0xe8   :  { %v1250_v49 = vmul.f32 0.5, %v1198_v45  ;;  %v839_v50 = vadd.f32 %v838_v47, %v5969_v28 }
  0xe9   :  { %v562_v55 = vpop.f32.mrf.mxu0 }
  0xea   :  { %v1298_v56 = vpack.c.bf16 %v1250_v49, %v1249_v48  ;;  %v978_v57 = vadd.f32 %v6041_v60, %v839_v50  ;;  %v563_v58 = vadd.f32 %v562_v55, %v5964_v21  ;;  %v984_v59 = vpop.f32.mrf.mxu3  ;;  %v4537_v60 = vld [vmem:[%s7974_s3 + $0xd0] sm:$0xf] }
  0xeb   :  { %v4538_v11 = vor.u32 %v5465_v7, %v4537_v60 }
  0xec   :  { %v1383_v0 = vunpack.c.h.b16 %v1298_v56  ;;  %v702_v1 = vadd.f32 %v6043_v62, %v563_v58  ;;  %v709_v2 = vpop.f32.mrf.mxu1  ;;  %v1382_v5 = vunpack.c.l.b16 %v1298_v56  ;;  %v1104_v33 = vmax.f32 %v978_v57, 0.0 }
  0xed   :  { %1580 = vmatpush.bf16.msrb.mxu1 %v4538_v11 }
  0xee   :  { %v6111_v62 = vpack.c.b16 %v1382_v5, %v1380_v4  ;;  %v6113_v8 = vpack.c.b16 %v1383_v0, %v1381_v61  ;;  %v1105_v41 = vmax.f32 %v702_v1, 0.0  ;;  %v5400_v5 = vld [vmem:[%s7973_s0 + $0x104] sm:$0xf] }
  0xef   :  { %4453 = vmatmul.msk.bf16.gmra.mxu1 %vm445_vm1, %v4278_v63  ;;  %v840_v10 = vpop.f32.mrf.mxu2  ;;  %4479 = vmatmul.msk.bf16.gmra.mxu3 %vm445_vm1, %v4278_v63 }
  0xf0   :  { %v841_v12 = vadd.f32 %v840_v10, %v5969_v28 }
  0xf1   :  { %v565_v14 = vpop.f32.mrf.mxu0 }
  0xf2   :  { %v980_v15 = vadd.f32 %v6053_v9, %v841_v12  ;;  %v566_v16 = vadd.f32 %v565_v14, %v5964_v21  ;;  %v987_v18 = vpop.f32.mrf.mxu3  ;;  %v4283_v9 = vld [vmem:[%s7973_s0 + $0xf8] sm:$0xf0] }
  0xf3   :  { %v4286_v32 = vor.u32 %v5398_v27, %v4283_v9 }
  0xf4   :  { %v705_v19 = vadd.f32 %v6061_v17, %v566_v16  ;;  %604 = vmatmul.bf16.gmra.mxu0 %v4266_v13  ;;  %v711_v20 = vpop.f32.mrf.mxu1  ;;  %882 = vmatmul.bf16.gmra.mxu2 %v4266_v13  ;;  %v1106_v55 = vmax.f32 %v980_v15, 0.0 }
  0xf6   :  { %v1107_v23 = vmax.f32 %v705_v19, 0.0  ;;  %v4281_v19 = vld [vmem:[%s7973_s0 + $0xf0] sm:$0xf] }
  0xf7   :  { %v843_v24 = vpop.f32.mrf.mxu2 }
  0xf8   :  { %v1199_v25 = vadd.f32 %v1107_v23, %v1103_v22  ;;  %v844_v26 = vadd.f32 %v843_v24, %v5969_v28  ;;  %v5399_v22 = vld [vmem:[%s7973_s0 + $0xf4] sm:$0xf0]  ;;  %v5462_v24 = vld [vmem:[%s7974_s3 + $0xc4] sm:$0xf] }
  0xf9   :  { %v567_v29 = vpop.f32.mrf.mxu0  ;;  %v4282_v9 = vor.u32 %v5399_v22, %v4281_v19 }
  0xfa   :  { %v983_v17 = vadd.f32 %v6073_v35, %v844_v26  ;;  %v568_v30 = vadd.f32 %v567_v29, %v5964_v21  ;;  %v6130_v31 = vpop.f32.mrf.mxu3  ;;  %v1251_v45 = vmul.f32 0.5, %v1199_v25 }
  0xfc   :  { %v1108_v34 = vmax.f32 %v983_v17, 0.0  ;;  %v707_v37 = vadd.f32 %v6075_v40, %v568_v30  ;;  %v714_v36 = vpop.f32.mrf.mxu1 }
  0xfe   :  { %v1200_v35 = vadd.f32 %v1108_v34, %v1104_v33  ;;  %v1109_v42 = vmax.f32 %v707_v37, 0.0 }
  0xff   :  { %4454 = vmatmul.msk.bf16.gmra.mxu1 %vm445_vm1, %v4286_v32  ;;  %v845_v43 = vpop.f32.mrf.mxu2  ;;  %4480 = vmatmul.msk.bf16.gmra.mxu3 %vm445_vm1, %v4286_v32 }
 0x100   :  { %v1252_v40 = vmul.f32 0.5, %v1200_v35  ;;  %v1201_v46 = vadd.f32 %v1109_v42, %v1105_v41  ;;  %v846_v47 = vadd.f32 %v845_v43, %v5969_v28  ;;  %v5402_v42 = vld [vmem:[%s7973_s0 + $0x114] sm:$0xf] }
 0x101   :  { %v570_v48 = vpop.f32.mrf.mxu0 }
 0x102   :  { %v1299_v49 = vpack.c.bf16 %v1252_v40, %v1251_v45  ;;  %v985_v50 = vadd.f32 %v984_v59, %v846_v47  ;;  %v571_v51 = vadd.f32 %v570_v48, %v5964_v21  ;;  %v992_v54 = vpop.f32.mrf.mxu3  ;;  %v1253_v0 = vmul.f32 0.5, %v1201_v46  ;;  %v4291_v59 = vld [vmem:[%s7973_s0 + $0x108] sm:$0xf0]  ;;  %v4529_v40 = vld [vmem:[%s7974_s3 + $0xc0] sm:$0xf] }
 0x103   :  { %v4294_v11 = vor.u32 %v5400_v5, %v4291_v59  ;;  %v5463_v46 = vld [vmem:[%s7974_s3 + $0xc4] sm:$0xf0] }
 0x104   :  { %v1110_v56 = vmax.f32 %v985_v50, 0.0  ;;  %v710_v57 = vadd.f32 %v709_v2, %v571_v51  ;;  %609 = vmatmul.bf16.gmra.mxu0 %v4274_v44  ;;  %v716_v58 = vpop.f32.mrf.mxu1  ;;  %887 = vmatmul.bf16.gmra.mxu2 %v4274_v44  ;;  %v1384_v10 = vunpack.c.l.b16 %v1299_v49  ;;  %v1385_v12 = vunpack.c.h.b16 %v1299_v49 }
 0x105   :  { %v4530_v48 = vor.u32 %v5463_v46, %v4529_v40 }
 0x106   :  { %v1202_v61 = vadd.f32 %v1110_v56, %v1106_v55  ;;  %v1111_v37 = vmax.f32 %v710_v57, 0.0  ;;  %v5401_v56 = vld [vmem:[%s7973_s0 + $0x104] sm:$0xf0] }
 0x107   :  { %v848_v63 = vpop.f32.mrf.mxu2  ;;  %1581 = vmatpush.bf16.msrb.mxu1 %v4530_v48 }
 0x108   :  { %v1254_v1 = vmul.f32 0.5, %v1202_v61  ;;  %v849_v4 = vadd.f32 %v848_v63, %v5969_v28 }
 0x109   :  { %v572_v3 = vpop.f32.mrf.mxu0 }
 0x10a   :  { %v1300_v6 = vpack.c.bf16 %v1254_v1, %v1253_v0  ;;  %v988_v2 = vadd.f32 %v987_v18, %v849_v4  ;;  %v573_v60 = vadd.f32 %v572_v3, %v5964_v21  ;;  %v6151_v7 = vpop.f32.mrf.mxu3 }
 0x10c   :  { %v1386_v13 = vunpack.c.l.b16 %v1300_v6  ;;  %v1387_v14 = vunpack.c.h.b16 %v1300_v6  ;;  %v712_v15 = vadd.f32 %v711_v20, %v573_v60  ;;  %v719_v16 = vpop.f32.mrf.mxu1  ;;  %v4531_v20 = vld [vmem:[%s7974_s3 + $0xc8] sm:$0xf0]  ;;  %v1112_v49 = vmax.f32 %v988_v2, 0.0 }
 0x10d   :  { %v4534_v26 = vor.u32 %v5462_v24, %v4531_v20 }
 0x10e   :  { %v6159_v18 = vpack.c.b16 %v1386_v13, %v1384_v10  ;;  %v6161_v23 = vpack.c.b16 %v1387_v14, %v1385_v12  ;;  %v1113_v57 = vmax.f32 %v712_v15, 0.0 }
 0x10f   :  { %4455 = vmatmul.msk.bf16.gmra.mxu1 %vm445_vm1, %v4294_v11  ;;  %v850_v25 = vpop.f32.mrf.mxu2  ;;  %4481 = vmatmul.msk.bf16.gmra.mxu3 %vm445_vm1, %v4294_v11 }
 0x110   :  { %v851_v27 = vadd.f32 %v850_v25, %v5969_v28  ;;  %1689 = vmatpush.bf16.msrb.mxu0 %v4534_v26  ;;  %v5404_v25 = vld [vmem:[%s7973_s0 + $0x124] sm:$0xf] }
 0x111   :  { %v575_v29 = vpop.f32.mrf.mxu0 }
 0x112   :  { %v990_v17 = vadd.f32 %v6130_v31, %v851_v27  ;;  %v576_v30 = vadd.f32 %v575_v29, %v5964_v21  ;;  %v997_v32 = vpop.f32.mrf.mxu3  ;;  %v4299_v31 = vld [vmem:[%s7973_s0 + $0x118] sm:$0xf0] }
 0x113   :  { %v4302_v47 = vor.u32 %v5402_v42, %v4299_v31  ;;  %v5403_v42 = vld [vmem:[%s7973_s0 + $0x114] sm:$0xf0] }
 0x114   :  { %v715_v33 = vadd.f32 %v714_v36, %v576_v30  ;;  %614 = vmatmul.bf16.gmra.mxu0 %v4282_v9  ;;  %v6174_v34 = vpop.f32.mrf.mxu1  ;;  %892 = vmatmul.bf16.gmra.mxu2 %v4282_v9  ;;  %v1114_v11 = vmax.f32 %v990_v17, 0.0 }
 0x116   :  { %v1115_v38 = vmax.f32 %v715_v33, 0.0 }
 0x117   :  { %v853_v39 = vpop.f32.mrf.mxu2 }
 0x118   :  { %v1203_v41 = vadd.f32 %v1115_v38, %v1111_v37  ;;  %v854_v35 = vadd.f32 %v853_v39, %v5969_v28 }
 0x119   :  { %v577_v43 = vpop.f32.mrf.mxu0 }
 0x11a   :  { %v993_v36 = vadd.f32 %v992_v54, %v854_v35  ;;  %v578_v44 = vadd.f32 %v577_v43, %v5964_v21  ;;  %v6184_v45 = vpop.f32.mrf.mxu3  ;;  %v4289_v54 = vld [vmem:[%s7973_s0 + $0x100] sm:$0xf]  ;;  %v4297_v35 = vld [vmem:[%s7973_s0 + $0x110] sm:$0xf] }
 0x11b   :  { %v4290_v1 = vor.u32 %v5401_v56, %v4289_v54 }
 0x11c   :  { %v1116_v50 = vmax.f32 %v993_v36, 0.0  ;;  %v717_v51 = vadd.f32 %v716_v58, %v578_v44  ;;  %v724_v55 = vpop.f32.mrf.mxu1  ;;  %v1255_v58 = vmul.f32 0.5, %v1203_v41  ;;  %v4298_v36 = vor.u32 %v5403_v42, %v4297_v35  ;;  %v5408_v35 = vld [vmem:[%s7973_s0 + $0x144] sm:$0xf] }
 0x11e   :  { %v1204_v61 = vadd.f32 %v1116_v50, %v1112_v49  ;;  %v1117_v63 = vmax.f32 %v717_v51, 0.0 }
 0x11f   :  { %4456 = vmatmul.msk.bf16.gmra.mxu1 %vm445_vm1, %v4302_v47  ;;  %v855_v0 = vpop.f32.mrf.mxu2  ;;  %4482 = vmatmul.msk.bf16.gmra.mxu3 %vm445_vm1, %v4302_v47 }
 0x120   :  { %v1256_v4 = vmul.f32 0.5, %v1204_v61  ;;  %v1205_v5 = vadd.f32 %v1117_v63, %v1113_v57  ;;  %v856_v59 = vadd.f32 %v855_v0, %v5969_v28  ;;  %v5406_v61 = vld [vmem:[%s7973_s0 + $0x134] sm:$0xf] }
 0x121   :  { %v580_v3 = vpop.f32.mrf.mxu0 }
 0x122   :  { %v1301_v6 = vpack.c.bf16 %v1256_v4, %v1255_v58  ;;  %v995_v2 = vadd.f32 %v6151_v7, %v856_v59  ;;  %v581_v60 = vadd.f32 %v580_v3, %v5964_v21  ;;  %v1002_v10 = vpop.f32.mrf.mxu3  ;;  %v1257_v22 = vmul.f32 0.5, %v1205_v5  ;;  %v4307_v7 = vld [vmem:[%s7973_s0 + $0x128] sm:$0xf0] }
 0x123   :  { %v4310_v30 = vor.u32 %v5404_v25, %v4307_v7 }
 0x124   :  { %v1118_v12 = vmax.f32 %v995_v2, 0.0  ;;  %v720_v13 = vadd.f32 %v719_v16, %v581_v60  ;;  %619 = vmatmul.bf16.gmra.mxu0 %v4290_v1  ;;  %v726_v14 = vpop.f32.mrf.mxu1  ;;  %897 = vmatmul.bf16.gmra.mxu2 %v4290_v1  ;;  %v1388_v17 = vunpack.c.l.b16 %v1301_v6  ;;  %v1389_v33 = vunpack.c.h.b16 %v1301_v6  ;;  %v4305_v6 = vld [vmem:[%s7973_s0 + $0x120] sm:$0xf]  ;;  %v5405_v2 = vld [vmem:[%s7973_s0 + $0x124] sm:$0xf0] }
 0x126   :  { %v1206_v15 = vadd.f32 %v1118_v12, %v1114_v11  ;;  %v1119_v50 = vmax.f32 %v720_v13, 0.0  ;;  %v4306_v13 = vor.u32 %v5405_v2, %v4305_v6 }
 0x127   :  { %v858_v19 = vpop.f32.mrf.mxu2 }
 0x128   :  { %v1258_v24 = vmul.f32 0.5, %v1206_v15  ;;  %v859_v20 = vadd.f32 %v858_v19, %v5969_v28 }
 0x129   :  { %v582_v26 = vpop.f32.mrf.mxu0 }
 0x12a   :  { %v1302_v27 = vpack.c.bf16 %v1258_v24, %v1257_v22  ;;  %v998_v16 = vadd.f32 %v997_v32, %v859_v20  ;;  %v583_v9 = vadd.f32 %v582_v26, %v5964_v21  ;;  %v1004_v29 = vpop.f32.mrf.mxu3 }
 0x12c   :  { %v1390_v37 = vunpack.c.l.b16 %v1302_v27  ;;  %v1391_v38 = vunpack.c.h.b16 %v1302_v27  ;;  %v722_v39 = vadd.f32 %v6174_v34, %v583_v9  ;;  %v729_v41 = vpop.f32.mrf.mxu1  ;;  %v1120_v4 = vmax.f32 %v998_v16, 0.0 }
 0x12e   :  { %v6218_v32 = vpack.c.b16 %v1390_v37, %v1388_v17  ;;  %v6220_v31 = vpack.c.b16 %v1391_v38, %v1389_v33  ;;  %v1121_v60 = vmax.f32 %v722_v39, 0.0 }
 0x12f   :  { %4457 = vmatmul.msk.bf16.gmra.mxu1 %vm445_vm1, %v4310_v30  ;;  %v860_v43 = vpop.f32.mrf.mxu2  ;;  %4483 = vmatmul.msk.bf16.gmra.mxu3 %vm445_vm1, %v4310_v30 }
 0x130   :  { %v861_v34 = vadd.f32 %v860_v43, %v5969_v28 }
 0x131   :  { %v585_v44 = vpop.f32.mrf.mxu0 }
 0x132   :  { %v1000_v40 = vadd.f32 %v6184_v45, %v861_v34  ;;  %v586_v46 = vadd.f32 %v585_v44, %v5964_v21  ;;  %v1007_v47 = vpop.f32.mrf.mxu3  ;;  %v4315_v45 = vld [vmem:[%s7973_s0 + $0x138] sm:$0xf0] }
 0x133   :  { %v4318_v58 = vor.u32 %v5406_v61, %v4315_v45  ;;  %v5460_v45 = vld [vmem:[%s7974_s3 + $0xb4] sm:$0xf] }
 0x134   :  { %v725_v48 = vadd.f32 %v724_v55, %v586_v46  ;;  %624 = vmatmul.bf16.gmra.mxu0 %v4298_v36  ;;  %v731_v49 = vpop.f32.mrf.mxu1  ;;  %902 = vmatmul.bf16.gmra.mxu2 %v4298_v36  ;;  %v1122_v27 = vmax.f32 %v1000_v40, 0.0 }
 0x136   :  { %v1123_v51 = vmax.f32 %v725_v48, 0.0 }
 0x137   :  { %v863_v54 = vpop.f32.mrf.mxu2 }
 0x138   :  { %v1207_v56 = vadd.f32 %v1123_v51, %v1119_v50  ;;  %v864_v57 = vadd.f32 %v863_v54, %v5969_v28 }
 0x139   :  { %v587_v63 = vpop.f32.mrf.mxu0 }
 0x13a   :  { %v1003_v0 = vadd.f32 %v1002_v10, %v864_v57  ;;  %v588_v55 = vadd.f32 %v587_v63, %v5964_v21  ;;  %v6235_v1 = vpop.f32.mrf.mxu3  ;;  %v5407_v57 = vld [vmem:[%s7973_s0 + $0x134] sm:$0xf0] }
 0x13c   :  { %v1124_v5 = vmax.f32 %v1003_v0, 0.0  ;;  %v727_v59 = vadd.f32 %v726_v14, %v588_v55  ;;  %v6237_v3 = vpop.f32.mrf.mxu1  ;;  %v1259_v14 = vmul.f32 0.5, %v1207_v56  ;;  %v4313_v56 = vld [vmem:[%s7973_s0 + $0x130] sm:$0xf] }
 0x13d   :  { %v4521_v55 = vld [vmem:[%s7974_s3 + $0xb0] sm:$0xf] }
 0x13e   :  { %v1208_v10 = vadd.f32 %v1124_v5, %v1120_v4  ;;  %v1125_v11 = vmax.f32 %v727_v59, 0.0  ;;  %v4314_v5 = vor.u32 %v5407_v57, %v4313_v56 }
 0x13f   :  { %4458 = vmatmul.msk.bf16.gmra.mxu1 %vm445_vm1, %v4318_v58  ;;  %v865_v12 = vpop.f32.mrf.mxu2  ;;  %4484 = vmatmul.msk.bf16.gmra.mxu3 %vm445_vm1, %v4318_v58  ;;  %v5461_v58 = vld [vmem:[%s7974_s3 + $0xb4] sm:$0xf0] }
 0x140   :  { %v1260_v15 = vmul.f32 0.5, %v1208_v10  ;;  %v1209_v19 = vadd.f32 %v1125_v11, %v1121_v60  ;;  %v866_v22 = vadd.f32 %v865_v12, %v5969_v28  ;;  %v4522_v59 = vor.u32 %v5461_v58, %v4521_v55 }
 0x141   :  { %v590_v24 = vpop.f32.mrf.mxu0 }
 0x142   :  { %v1303_v20 = vpack.c.bf16 %v1260_v15, %v1259_v14  ;;  %v1005_v25 = vadd.f32 %v1004_v29, %v866_v22  ;;  %v591_v7 = vadd.f32 %v590_v24, %v5964_v21  ;;  %v1012_v26 = vpop.f32.mrf.mxu3  ;;  %v1261_v37 = vmul.f32 0.5, %v1209_v19  ;;  %v4323_v29 = vld [vmem:[%s7973_s0 + $0x148] sm:$0xf0]  ;;  %1582 = vmatpush.bf16.msrb.mxu1 %v4522_v59  ;;  %v5410_v24 = vld [vmem:[%s7973_s0 + $0x154] sm:$0xf] }
 0x143   :  { %v4326_v40 = vor.u32 %v5408_v35, %v4323_v29 }
 0x144   :  { %v1126_v16 = vmax.f32 %v1005_v25, 0.0  ;;  %v730_v9 = vadd.f32 %v729_v41, %v591_v7  ;;  %629 = vmatmul.bf16.gmra.mxu0 %v4306_v13  ;;  %v736_v17 = vpop.f32.mrf.mxu1  ;;  %907 = vmatmul.bf16.gmra.mxu2 %v4306_v13  ;;  %v1392_v44 = vunpack.c.l.b16 %v1303_v20  ;;  %v1393_v46 = vunpack.c.h.b16 %v1303_v20 }
 0x146   :  { %v1210_v30 = vadd.f32 %v1126_v16, %v1122_v27  ;;  %v1127_v13 = vmax.f32 %v730_v9, 0.0 }
 0x147   :  { %v868_v33 = vpop.f32.mrf.mxu2 }
 0x148   :  { %v1262_v38 = vmul.f32 0.5, %v1210_v30  ;;  %v869_v39 = vadd.f32 %v868_v33, %v5969_v28 }
 0x149   :  { %v592_v42 = vpop.f32.mrf.mxu0 }
 0x14a   :  { %v1304_v43 = vpack.c.bf16 %v1262_v38, %v1261_v37  ;;  %v1008_v41 = vadd.f32 %v1007_v47, %v869_v39  ;;  %v593_v34 = vadd.f32 %v592_v42, %v5964_v21  ;;  %v6257_v36 = vpop.f32.mrf.mxu3  ;;  %v4321_v37 = vld [vmem:[%s7973_s0 + $0x140] sm:$0xf]  ;;  %v5409_v38 = vld [vmem:[%s7973_s0 + $0x144] sm:$0xf0] }
 0x14b   :  { %v4322_v42 = vor.u32 %v5409_v38, %v4321_v37 }
 0x14c   :  { %v1394_v48 = vunpack.c.l.b16 %v1304_v43  ;;  %v1395_v50 = vunpack.c.h.b16 %v1304_v43  ;;  %v732_v51 = vadd.f32 %v731_v49, %v593_v34  ;;  %v739_v54 = vpop.f32.mrf.mxu1  ;;  %v4523_v49 = vld [vmem:[%s7974_s3 + $0xb8] sm:$0xf0]  ;;  %v1128_v16 = vmax.f32 %v1008_v41, 0.0 }
 0x14d   :  { %v4526_v0 = vor.u32 %v5460_v45, %v4523_v49 }
 0x14e   :  { %v6265_v47 = vpack.c.b16 %v1394_v48, %v1392_v44  ;;  %v6267_v61 = vpack.c.b16 %v1395_v50, %v1393_v46  ;;  %v1129_v39 = vmax.f32 %v732_v51, 0.0 }
 0x14f   :  { %4459 = vmatmul.msk.bf16.gmra.mxu1 %vm445_vm1, %v4326_v40  ;;  %v870_v63 = vpop.f32.mrf.mxu2  ;;  %4485 = vmatmul.msk.bf16.gmra.mxu3 %vm445_vm1, %v4326_v40 }
 0x150   :  { %v871_v4 = vadd.f32 %v870_v63, %v5969_v28  ;;  %1690 = vmatpush.bf16.msrb.mxu0 %v4526_v0 }
 0x151   :  { %v595_v6 = vpop.f32.mrf.mxu0 }
 0x152   :  { %v1010_v2 = vadd.f32 %v6235_v1, %v871_v4  ;;  %v596_v60 = vadd.f32 %v595_v6, %v5964_v21  ;;  %v1017_v10 = vpop.f32.mrf.mxu3  ;;  %v4331_v1 = vld [vmem:[%s7973_s0 + $0x158] sm:$0xf0]  ;;  %v5412_v4 = vld [vmem:[%s7973_s0 + $0x164] sm:$0xf] }
 0x153   :  { %v4334_v27 = vor.u32 %v5410_v24, %v4331_v1  ;;  %v4329_v24 = vld [vmem:[%s7973_s0 + $0x150] sm:$0xf]  ;;  %v5411_v1 = vld [vmem:[%s7973_s0 + $0x154] sm:$0xf0] }
 0x154   :  { %v735_v11 = vadd.f32 %v6237_v3, %v596_v60  ;;  %634 = vmatmul.bf16.gmra.mxu0 %v4314_v5  ;;  %v741_v12 = vpop.f32.mrf.mxu1  ;;  %912 = vmatmul.bf16.gmra.mxu2 %v4314_v5  ;;  %v1130_v51 = vmax.f32 %v1010_v2, 0.0 }
 0x156   :  { %v1131_v14 = vmax.f32 %v735_v11, 0.0 }
 0x157   :  { %v873_v15 = vpop.f32.mrf.mxu2 }
 0x158   :  { %v1211_v19 = vadd.f32 %v1131_v14, %v1127_v13  ;;  %v874_v22 = vadd.f32 %v873_v15, %v5969_v28 }
 0x159   :  { %v597_v20 = vpop.f32.mrf.mxu0 }
 0x15a   :  { %v1013_v25 = vadd.f32 %v1012_v26, %v874_v22  ;;  %v598_v3 = vadd.f32 %v597_v20, %v5964_v21  ;;  %v1019_v7 = vpop.f32.mrf.mxu3  ;;  %v1263_v43 = vmul.f32 0.5, %v1211_v19 }
 0x15c   :  { %v1132_v9 = vmax.f32 %v1013_v25, 0.0  ;;  %v737_v30 = vadd.f32 %v736_v17, %v598_v3  ;;  %v744_v33 = vpop.f32.mrf.mxu1  ;;  %v4330_v3 = vor.u32 %v5411_v1, %v4329_v24 }
 0x15e   :  { %v1212_v35 = vadd.f32 %v1132_v9, %v1128_v16  ;;  %v1133_v29 = vmax.f32 %v737_v30, 0.0 }
 0x15f   :  { %4460 = vmatmul.msk.bf16.gmra.mxu1 %vm445_vm1, %v4334_v27  ;;  %v875_v26 = vpop.f32.mrf.mxu2  ;;  %4486 = vmatmul.msk.bf16.gmra.mxu3 %vm445_vm1, %v4334_v27 }
 0x160   :  { %v1264_v17 = vmul.f32 0.5, %v1212_v35  ;;  %v1213_v41 = vadd.f32 %v1133_v29, %v1129_v39  ;;  %v876_v34 = vadd.f32 %v875_v26, %v5969_v28 }
 0x161   :  { %v600_v44 = vpop.f32.mrf.mxu0 }
 0x162   :  { %v1305_v40 = vpack.c.bf16 %v1264_v17, %v1263_v43  ;;  %v1015_v46 = vadd.f32 %v6257_v36, %v876_v34  ;;  %v601_v48 = vadd.f32 %v600_v44, %v5964_v21  ;;  %v1022_v50 = vpop.f32.mrf.mxu3  ;;  %v1265_v0 = vmul.f32 0.5, %v1213_v41  ;;  %v4339_v36 = vld [vmem:[%s7973_s0 + $0x168] sm:$0xf0]  ;;  %v5414_v43 = vld [vmem:[%s7973_s0 + $0x174] sm:$0xf] }
 0x163   :  { %v4342_v11 = vor.u32 %v5412_v4, %v4339_v36  ;;  %v5458_v44 = vld [vmem:[%s7974_s3 + $0xa4] sm:$0xf] }
 0x164   :  { %v1134_v56 = vmax.f32 %v1015_v46, 0.0  ;;  %v740_v57 = vadd.f32 %v739_v54, %v601_v48  ;;  %639 = vmatmul.bf16.gmra.mxu0 %v4322_v42  ;;  %v746_v45 = vpop.f32.mrf.mxu1  ;;  %917 = vmatmul.bf16.gmra.mxu2 %v4322_v42  ;;  %v1396_v60 = vunpack.c.l.b16 %v1305_v40  ;;  %v1397_v13 = vunpack.c.h.b16 %v1305_v40  ;;  %v4515_v40 = vld [vmem:[%s7974_s3 + $0xa8] sm:$0xf0] }
 0x165   :  { %v4518_v48 = vor.u32 %v5458_v44, %v4515_v40 }
 0x166   :  { %v1214_v49 = vadd.f32 %v1134_v56, %v1130_v51  ;;  %v1135_v39 = vmax.f32 %v740_v57, 0.0 }
 0x167   :  { %v878_v63 = vpop.f32.mrf.mxu2  ;;  %1691 = vmatpush.bf16.msrb.mxu0 %v4518_v48  ;;  %v4345_v48 = vld [vmem:[%s7973_s0 + $0x170] sm:$0xf] }
 0x168   :  { %v1266_v55 = vmul.f32 0.5, %v1214_v49  ;;  %v879_v58 = vadd.f32 %v878_v63, %v5969_v28  ;;  %v5413_v63 = vld [vmem:[%s7973_s0 + $0x164] sm:$0xf0] }
 0x169   :  { %v602_v5 = vpop.f32.mrf.mxu0 }
 0x16a   :  { %v1306_v59 = vpack.c.bf16 %v1266_v55, %v1265_v0  ;;  %v1018_v54 = vadd.f32 %v1017_v10, %v879_v58  ;;  %v603_v6 = vadd.f32 %v602_v5, %v5964_v21  ;;  %v1024_v2 = vpop.f32.mrf.mxu3 }
 0x16c   :  { %v1398_v14 = vunpack.c.l.b16 %v1306_v59  ;;  %v1399_v15 = vunpack.c.h.b16 %v1306_v59  ;;  %v742_v19 = vadd.f32 %v741_v12, %v603_v6  ;;  %v749_v22 = vpop.f32.mrf.mxu1  ;;  %v1136_v51 = vmax.f32 %v1018_v54, 0.0 }
 0x16e   :  { %v6320_v20 = vpack.c.b16 %v1398_v14, %v1396_v60  ;;  %v6322_v10 = vpack.c.b16 %v1399_v15, %v1397_v13  ;;  %v1137_v0 = vmax.f32 %v742_v19, 0.0 }
 0x16f   :  { %4461 = vmatmul.msk.bf16.gmra.mxu1 %vm445_vm1, %v4342_v11  ;;  %v880_v25 = vpop.f32.mrf.mxu2  ;;  %4487 = vmatmul.msk.bf16.gmra.mxu3 %vm445_vm1, %v4342_v11 }
 0x170   :  { %v881_v12 = vadd.f32 %v880_v25, %v5969_v28  ;;  %v4513_v25 = vld [vmem:[%s7974_s3 + $0xa0] sm:$0xf] }
 0x171   :  { %v605_v27 = vpop.f32.mrf.mxu0 }
 0x172   :  { %v1020_v16 = vadd.f32 %v1019_v7, %v881_v12  ;;  %v606_v9 = vadd.f32 %v605_v27, %v5964_v21  ;;  %v1027_v30 = vpop.f32.mrf.mxu3  ;;  %v4347_v7 = vld [vmem:[%s7973_s0 + $0x178] sm:$0xf0]  ;;  %v5459_v12 = vld [vmem:[%s7974_s3 + $0xa4] sm:$0xf0] }
 0x173   :  { %v4350_v46 = vor.u32 %v5414_v43, %v4347_v7 }
 0x174   :  { %v745_v37 = vadd.f32 %v744_v33, %v606_v9  ;;  %644 = vmatmul.bf16.gmra.mxu0 %v4330_v3  ;;  %v6328_v38 = vpop.f32.mrf.mxu1  ;;  %922 = vmatmul.bf16.gmra.mxu2 %v4330_v3  ;;  %v1138_v15 = vmax.f32 %v1020_v16, 0.0  ;;  %v4514_v3 = vor.u32 %v5459_v12, %v4513_v25 }
 0x176   :  { %v1139_v35 = vmax.f32 %v745_v37, 0.0  ;;  %1583 = vmatpush.bf16.msrb.mxu1 %v4514_v3 }
 0x177   :  { %v883_v29 = vpop.f32.mrf.mxu2 }
 0x178   :  { %v1215_v26 = vadd.f32 %v1139_v35, %v1135_v39  ;;  %v884_v42 = vadd.f32 %v883_v29, %v5969_v28  ;;  %v4355_v39 = vld [vmem:[%s7973_s0 + $0x188] sm:$0xf0] }
 0x179   :  { %v607_v17 = vpop.f32.mrf.mxu0 }
 0x17a   :  { %v1023_v33 = vadd.f32 %v1022_v50, %v884_v42  ;;  %v608_v41 = vadd.f32 %v607_v17, %v5964_v21  ;;  %v6338_v34 = vpop.f32.mrf.mxu3  ;;  %v4337_v50 = vld [vmem:[%s7973_s0 + $0x160] sm:$0xf] }
 0x17b   :  { %v4338_v36 = vor.u32 %v5413_v63, %v4337_v50 }
 0x17c   :  { %v1140_v56 = vmax.f32 %v1023_v33, 0.0  ;;  %v747_v57 = vadd.f32 %v746_v45, %v608_v41  ;;  %v754_v49 = vpop.f32.mrf.mxu1  ;;  %v1267_v45 = vmul.f32 0.5, %v1215_v26 }
 0x17e   :  { %v1216_v55 = vadd.f32 %v1140_v56, %v1136_v51  ;;  %v1141_v58 = vmax.f32 %v747_v57, 0.0  ;;  %v5415_v51 = vld [vmem:[%s7973_s0 + $0x174] sm:$0xf0] }
 0x17f   :  { %4462 = vmatmul.msk.bf16.gmra.mxu1 %vm445_vm1, %v4350_v46  ;;  %v885_v4 = vpop.f32.mrf.mxu2  ;;  %4488 = vmatmul.msk.bf16.gmra.mxu3 %vm445_vm1, %v4350_v46  ;;  %v4346_v50 = vor.u32 %v5415_v51, %v4345_v48 }
 0x180   :  { %v1268_v5 = vmul.f32 0.5, %v1216_v55  ;;  %v1217_v59 = vadd.f32 %v1141_v58, %v1137_v0  ;;  %v886_v54 = vadd.f32 %v885_v4, %v5969_v28 }
 0x181   :  { %v610_v6 = vpop.f32.mrf.mxu0 }
 0x182   :  { %v1307_v60 = vpack.c.bf16 %v1268_v5, %v1267_v45  ;;  %v1025_v11 = vadd.f32 %v1024_v2, %v886_v54  ;;  %v611_v13 = vadd.f32 %v610_v6, %v5964_v21  ;;  %v1032_v14 = vpop.f32.mrf.mxu3  ;;  %v1269_v9 = vmul.f32 0.5, %v1217_v59 }
 0x184   :  { %v1142_v19 = vmax.f32 %v1025_v11, 0.0  ;;  %v750_v24 = vadd.f32 %v749_v22, %v611_v13  ;;  %649 = vmatmul.bf16.gmra.mxu0 %v4338_v36  ;;  %v756_v1 = vpop.f32.mrf.mxu1  ;;  %927 = vmatmul.bf16.gmra.mxu2 %v4338_v36  ;;  %v5416_v22 = vld [vmem:[%s7973_s0 + $0x184] sm:$0xf]  ;;  %v1400_v7 = vunpack.c.l.b16 %v1307_v60  ;;  %v1401_v33 = vunpack.c.h.b16 %v1307_v60  ;;  %v5418_v60 = vld [vmem:[%s7973_s0 + $0x194] sm:$0xf] }
 0x185   :  { %v4358_v17 = vor.u32 %v5416_v22, %v4355_v39 }
 0x186   :  { %v1218_v27 = vadd.f32 %v1142_v19, %v1138_v15  ;;  %v1143_v45 = vmax.f32 %v750_v24, 0.0 }
 0x187   :  { %v888_v2 = vpop.f32.mrf.mxu2 }
 0x188   :  { %v1270_v37 = vmul.f32 0.5, %v1218_v27  ;;  %v889_v16 = vadd.f32 %v888_v2, %v5969_v28  ;;  %v4353_v27 = vld [vmem:[%s7973_s0 + $0x180] sm:$0xf]  ;;  %v5417_v2 = vld [vmem:[%s7973_s0 + $0x184] sm:$0xf0] }
 0x189   :  { %v612_v35 = vpop.f32.mrf.mxu0  ;;  %v4354_v22 = vor.u32 %v5417_v2, %v4353_v27  ;;  %v5452_v27 = vld [vmem:[%s7974_s3 + $0x74] sm:$0xf] }
 0x18a   :  { %v1308_v29 = vpack.c.bf16 %v1270_v37, %v1269_v9  ;;  %v1028_v26 = vadd.f32 %v1027_v30, %v889_v16  ;;  %v613_v42 = vadd.f32 %v612_v35, %v5964_v21  ;;  %v1034_v43 = vpop.f32.mrf.mxu3 }
 0x18c   :  { %v1402_v41 = vunpack.c.l.b16 %v1308_v29  ;;  %v1403_v44 = vunpack.c.h.b16 %v1308_v29  ;;  %v752_v40 = vadd.f32 %v6328_v38, %v613_v42  ;;  %v759_v46 = vpop.f32.mrf.mxu1  ;;  %v1144_v24 = vmax.f32 %v1028_v26, 0.0 }
 0x18e   :  { %v6377_v30 = vpack.c.b16 %v1402_v41, %v1400_v7  ;;  %v6379_v56 = vpack.c.b16 %v1403_v44, %v1401_v33  ;;  %v1145_v9 = vmax.f32 %v752_v40, 0.0 }
 0x18f   :  { %4463 = vmatmul.msk.bf16.gmra.mxu1 %vm445_vm1, %v4358_v17  ;;  %v890_v57 = vpop.f32.mrf.mxu2  ;;  %4489 = vmatmul.msk.bf16.gmra.mxu3 %vm445_vm1, %v4358_v17 }
 0x190   :  { %v891_v38 = vadd.f32 %v890_v57, %v5969_v28 }
 0x191   :  { %v615_v63 = vpop.f32.mrf.mxu0 }
 0x192   :  { %v1030_v0 = vadd.f32 %v6338_v34, %v891_v38  ;;  %v616_v55 = vadd.f32 %v615_v63, %v5964_v21  ;;  %v1037_v58 = vpop.f32.mrf.mxu3  ;;  %v4363_v34 = vld [vmem:[%s7973_s0 + $0x198] sm:$0xf0] }
 0x193   :  { %v4366_v19 = vor.u32 %v5418_v60, %v4363_v34  ;;  %v4361_v34 = vld [vmem:[%s7973_s0 + $0x190] sm:$0xf] }
 0x194   :  { %v755_v4 = vadd.f32 %v754_v49, %v616_v55  ;;  %654 = vmatmul.bf16.gmra.mxu0 %v4346_v50  ;;  %v761_v36 = vpop.f32.mrf.mxu1  ;;  %932 = vmatmul.bf16.gmra.mxu2 %v4346_v50  ;;  %v1146_v41 = vmax.f32 %v1030_v0, 0.0 }
 0x196   :  { %v1147_v5 = vmax.f32 %v755_v4, 0.0 }
 0x197   :  { %v893_v59 = vpop.f32.mrf.mxu2 }
 0x198   :  { %v1219_v54 = vadd.f32 %v1147_v5, %v1143_v45  ;;  %v894_v6 = vadd.f32 %v893_v59, %v5969_v28 }
 0x199   :  { %v617_v11 = vpop.f32.mrf.mxu0 }
 0x19a   :  { %v1033_v13 = vadd.f32 %v1032_v14, %v894_v6  ;;  %v618_v49 = vadd.f32 %v617_v11, %v5964_v21  ;;  %v6394_v15 = vpop.f32.mrf.mxu3 }
 0x19c   :  { %v1148_v25 = vmax.f32 %v1033_v13, 0.0  ;;  %v757_v12 = vadd.f32 %v756_v1, %v618_v49  ;;  %v6396_v3 = vpop.f32.mrf.mxu1  ;;  %v1271_v1 = vmul.f32 0.5, %v1219_v54  ;;  %v5456_v49 = vld [vmem:[%s7974_s3 + $0x94] sm:$0xf] }
 0x19e   :  { %v1220_v14 = vadd.f32 %v1148_v25, %v1144_v24  ;;  %v1149_v37 = vmax.f32 %v757_v12, 0.0  ;;  %v4683_v25 = vld [vmem:[%s7974_s3 + $0x90] sm:$0xf]  ;;  %v5457_v12 = vld [vmem:[%s7974_s3 + $0x94] sm:$0x30] }
 0x19f   :  { %4464 = vmatmul.msk.bf16.gmra.mxu1 %vm445_vm1, %v4366_v19  ;;  %v895_v16 = vpop.f32.mrf.mxu2  ;;  %4490 = vmatmul.msk.bf16.gmra.mxu3 %vm445_vm1, %v4366_v19 }
 0x1a0   :  { %v1272_v39 = vmul.f32 0.5, %v1220_v14  ;;  %v1221_v35 = vadd.f32 %v1149_v37, %v1145_v9  ;;  %v896_v29 = vadd.f32 %v895_v16, %v5969_v28  ;;  %v4684_v14 = vor.u32 %v5457_v12, %v4683_v25  ;;  %v4669_v37 = vld [vmem:[%s7974_s3 + $0x78] sm:$0xf0] }
 0x1a1   :  { %v620_v26 = vpop.f32.mrf.mxu0 }
 0x1a2   :  { %v1309_v42 = vpack.c.bf16 %v1272_v39, %v1271_v1  ;;  %v1035_v7 = vadd.f32 %v1034_v43, %v896_v29  ;;  %v621_v17 = vadd.f32 %v620_v26, %v5964_v21  ;;  %v6408_v33 = vpop.f32.mrf.mxu3  ;;  %v1273_v38 = vmul.f32 0.5, %v1221_v35 }
 0x1a3   :  { %v4672_v1 = vor.u32 %v5452_v27, %v4669_v37  ;;  %v1903_v26 = vsel %vm1569_vm2, %v4684_v14, 0  ;;  %v5450_v14 = vld [vmem:[%s7974_s3 + $0x64] sm:$0xf] }
 0x1a4   :  { %v1150_v44 = vmax.f32 %v1035_v7, 0.0  ;;  %v760_v40 = vadd.f32 %v759_v46, %v621_v17  ;;  %659 = vmatmul.bf16.gmra.mxu0 %v4354_v22  ;;  %v6410_v48 = vpop.f32.mrf.mxu1  ;;  %937 = vmatmul.bf16.gmra.mxu2 %v4354_v22  ;;  %v1404_v0 = vunpack.c.l.b16 %v1309_v42  ;;  %v1405_v46 = vunpack.c.h.b16 %v1309_v42  ;;  %v4667_v17 = vld [vmem:[%s7974_s3 + $0x70] sm:$0xf] }
 0x1a5   :  { %1968 = vmatpush.bf16.msra.mxu3 %v1903_v26  ;;  %2016 = vmatpush.bf16.msra.mxu0 %v4672_v1 }
 0x1a6   :  { %v1222_v51 = vadd.f32 %v1150_v44, %v1146_v41  ;;  %v1151_v44 = vmax.f32 %v760_v40, 0.0 }
 0x1a7   :  { %v898_v57 = vpop.f32.mrf.mxu2 }
 0x1a8   :  { %v1274_v50 = vmul.f32 0.5, %v1222_v51  ;;  %v899_v63 = vadd.f32 %v898_v57, %v5969_v28 }
 0x1a9   :  { %v622_v55 = vpop.f32.mrf.mxu0 }
 0x1aa   :  { %v1310_v4 = vpack.c.bf16 %v1274_v50, %v1273_v38  ;;  %v1038_v43 = vadd.f32 %v1037_v58, %v899_v63  ;;  %v623_v45 = vadd.f32 %v622_v55, %v5964_v21  ;;  %v6414_v5 = vpop.f32.mrf.mxu3  ;;  %v5419_v58 = vld [vmem:[%s7973_s0 + $0x194] sm:$0xf0] }
 0x1ab   :  { %v4362_v9 = vor.u32 %v5419_v58, %v4361_v34 }
 0x1ac   :  { %v1406_v59 = vunpack.c.l.b16 %v1310_v4  ;;  %v1407_v54 = vunpack.c.h.b16 %v1310_v4  ;;  %v762_v6 = vadd.f32 %v761_v36, %v623_v45  ;;  %v6416_v60 = vpop.f32.mrf.mxu1  ;;  %v4685_v36 = vld [vmem:[%s7974_s3 + $0x98] sm:$0x30]  ;;  %v1152_v45 = vmax.f32 %v1038_v43, 0.0 }
 0x1ad   :  { %v4688_v24 = vor.u32 %v5456_v49, %v4685_v36 }
 0x1ae   :  { %v6424_v11 = vpack.c.b16 %v1406_v59, %v1404_v0  ;;  %v6426_v13 = vpack.c.b16 %v1407_v54, %v1405_v46  ;;  %v1153_v54 = vmax.f32 %v762_v6, 0.0 }
 0x1af   :  { %v900_v19 = vpop.f32.mrf.mxu2  ;;  %1584 = vmatmul.bf16.vlgmr.msrb.gmra.mxu1 %v6111_v62  ;;  %4591 = vmatmul.msk.bf16.vlgmr.msrb.gmra.mxu3 %vm1541_vm3, %v6113_v8  ;;  %v1906_v22 = vsel %vm1569_vm2, %v4688_v24, 0 }
 0x1b0   :  { %v901_v2 = vadd.f32 %v900_v19, %v5969_v28  ;;  %2076 = vmatpush.bf16.msra.mxu2 %v1906_v22 }
 0x1b1   :  { %v625_v16 = vpop.f32.mrf.mxu0 }
 0x1b2   :  { %v1040_v39 = vadd.f32 %v6394_v15, %v901_v2  ;;  %v626_v35 = vadd.f32 %v625_v16, %v5964_v21  ;;  %v1047_v29 = vpop.f32.mrf.mxu3  ;;  %v5453_v15 = vld [vmem:[%s7974_s3 + $0x74] sm:$0xf0] }
 0x1b3   :  { %v4668_v41 = vor.u32 %v5453_v15, %v4667_v17 }
 0x1b4   :  { %v765_v42 = vadd.f32 %v6396_v3, %v626_v35  ;;  %664 = vmatmul.bf16.gmra.mxu0 %v4362_v9  ;;  %v771_v7 = vpop.f32.mrf.mxu1  ;;  %942 = vmatmul.bf16.gmra.mxu2 %v4362_v9  ;;  %v1154_v12 = vmax.f32 %v1040_v39, 0.0 }
 0x1b5   :  { %1908 = vmatpush.bf16.msra.mxu1 %v4668_v41 }
 0x1b6   :  { %v1155_v51 = vmax.f32 %v765_v42, 0.0 }
 0x1b7   :  { %v903_v57 = vpop.f32.mrf.mxu2 }
 0x1b8   :  { %v1223_v38 = vadd.f32 %v1155_v51, %v1151_v44  ;;  %v904_v50 = vadd.f32 %v903_v57, %v5969_v28 }
 0x1b9   :  { %v627_v3 = vpop.f32.mrf.mxu0 }
 0x1ba   :  { %v1043_v63 = vadd.f32 %v6408_v33, %v904_v50  ;;  %v628_v55 = vadd.f32 %v627_v3, %v5964_v21  ;;  %v1049_v4 = vpop.f32.mrf.mxu3  ;;  %v1275_v49 = vmul.f32 0.5, %v1223_v38 }
 0x1bc   :  { %v1156_v0 = vmax.f32 %v1043_v63, 0.0  ;;  %v767_v46 = vadd.f32 %v6410_v48, %v628_v55  ;;  %v774_v59 = vpop.f32.mrf.mxu1  ;;  %v4659_v55 = vld [vmem:[%s7974_s3 + $0x60] sm:$0xf] }
 0x1be   :  { %v1224_v34 = vadd.f32 %v1156_v0, %v1152_v45  ;;  %v1157_v40 = vmax.f32 %v767_v46, 0.0  ;;  %v5448_v0 = vld [vmem:[%s7974_s3 + $0x54] sm:$0xf]  ;;  %v4653_v46 = vld [vmem:[%s7974_s3 + $0x58] sm:$0xf0] }
 0x1bf   :  { %v905_v58 = vpop.f32.mrf.mxu2  ;;  %1589 = vmatmul.bf16.gmra.mxu1 %v6159_v18  ;;  %4592 = vmatmul.msk.bf16.gmra.mxu3 %vm1541_vm3, %v6161_v23 }
 0x1c0   :  { %v1276_v36 = vmul.f32 0.5, %v1224_v34  ;;  %v1225_v33 = vadd.f32 %v1157_v40, %v1153_v54  ;;  %v906_v19 = vadd.f32 %v905_v58, %v5969_v28  ;;  %v4656_v34 = vor.u32 %v5448_v0, %v4653_v46 }
 0x1c1   :  { %v630_v24 = vpop.f32.mrf.mxu0 }
 0x1c2   :  { %v1311_v43 = vpack.c.bf16 %v1276_v36, %v1275_v49  ;;  %v1045_v25 = vadd.f32 %v6414_v5, %v906_v19  ;;  %v631_v48 = vadd.f32 %v630_v24, %v5964_v21  ;;  %v1052_v6 = vpop.f32.mrf.mxu3  ;;  %v4661_v5 = vld [vmem:[%s7974_s3 + $0x68] sm:$0xf0]  ;;  %v1277_v1 = vmul.f32 0.5, %v1225_v33 }
 0x1c3   :  { %v4664_v37 = vor.u32 %v5450_v14, %v4661_v5 }
 0x1c4   :  { %v1158_v27 = vmax.f32 %v1045_v25, 0.0  ;;  %v770_v2 = vadd.f32 %v6416_v60, %v631_v48  ;;  %v776_v9 = vpop.f32.mrf.mxu1  ;;  %1692 = vmatmul.bf16.vlgmr.msrb.gmra.mxu0 %v6111_v62  ;;  %4600 = vmatmul.msk.bf16.vlgmr.msrb.gmra.mxu2 %vm1541_vm3, %v6113_v8  ;;  %v1408_v41 = vunpack.c.l.b16 %v1311_v43  ;;  %v1409_v44 = vunpack.c.h.b16 %v1311_v43 }
 0x1c5   :  { %2017 = vmatpush.bf16.msra.mxu0 %v4664_v37  ;;  %v5449_v37 = vld [vmem:[%s7974_s3 + $0x54] sm:$0xf0] }
 0x1c6   :  { %v1226_v16 = vadd.f32 %v1158_v27, %v1154_v12  ;;  %v1159_v24 = vmax.f32 %v770_v2, 0.0 }
 0x1c7   :  { %v908_v22 = vpop.f32.mrf.mxu2 }
 0x1c8   :  { %v1278_v60 = vmul.f32 0.5, %v1226_v16  ;;  %v909_v39 = vadd.f32 %v908_v22, %v5969_v28 }
 0x1c9   :  { %v632_v35 = vpop.f32.mrf.mxu0  ;;  %2018 = vmatpush.bf16.msra.mxu0 %v4656_v34 }
 0x1ca   :  { %v1312_v26 = vpack.c.bf16 %v1278_v60, %v1277_v1  ;;  %v1048_v42 = vadd.f32 %v1047_v29, %v909_v39  ;;  %v633_v17 = vadd.f32 %v632_v35, %v5964_v21  ;;  %v1054_v15 = vpop.f32.mrf.mxu3  ;;  %v5451_v29 = vld [vmem:[%s7974_s3 + $0x64] sm:$0xf0] }
 0x1cc   :  { %v1410_v51 = vunpack.c.l.b16 %v1312_v26  ;;  %v1411_v57 = vunpack.c.h.b16 %v1312_v26  ;;  %v772_v38 = vadd.f32 %v771_v7, %v633_v17  ;;  %v779_v50 = vpop.f32.mrf.mxu1  ;;  %v4660_v7 = vor.u32 %v5451_v29, %v4659_v55 }
 0x1cd   :  { %v1160_v16 = vmax.f32 %v1048_v42, 0.0 }
 0x1ce   :  { %v6483_v3 = vpack.c.b16 %v1410_v51, %v1408_v41  ;;  %v6485_v63 = vpack.c.b16 %v1411_v57, %v1409_v44  ;;  %1909 = vmatpush.bf16.msra.mxu1 %v4660_v7  ;;  %v1161_v39 = vmax.f32 %v772_v38, 0.0 }
 0x1cf   :  { %v910_v45 = vpop.f32.mrf.mxu2  ;;  %1594 = vmatmul.bf16.gmra.mxu1 %v6218_v32  ;;  %4593 = vmatmul.msk.bf16.gmra.mxu3 %vm1541_vm3, %v6220_v31 }
 0x1d0   :  { %v911_v54 = vadd.f32 %v910_v45, %v5969_v28 }
 0x1d1   :  { %v635_v40 = vpop.f32.mrf.mxu0 }
 0x1d2   :  { %v1050_v58 = vadd.f32 %v1049_v4, %v911_v54  ;;  %v636_v49 = vadd.f32 %v635_v40, %v5964_v21  ;;  %v1057_v36 = vpop.f32.mrf.mxu3 }
 0x1d4   :  { %v775_v33 = vadd.f32 %v774_v59, %v636_v49  ;;  %v781_v19 = vpop.f32.mrf.mxu1  ;;  %1697 = vmatmul.bf16.gmra.mxu0 %v6159_v18  ;;  %4601 = vmatmul.msk.bf16.gmra.mxu2 %vm1541_vm3, %v6161_v23  ;;  %v4651_v59 = vld [vmem:[%s7974_s3 + $0x50] sm:$0xf]  ;;  %v1162_v38 = vmax.f32 %v1050_v58, 0.0 }
 0x1d5   :  { %v4652_v2 = vor.u32 %v5449_v37, %v4651_v59  ;;  %v5446_v37 = vld [vmem:[%s7974_s3 + $0x44] sm:$0xf] }
 0x1d6   :  { %v1163_v43 = vmax.f32 %v775_v33, 0.0 }
 0x1d7   :  { %v913_v25 = vpop.f32.mrf.mxu2  ;;  %1910 = vmatpush.bf16.msra.mxu1 %v4652_v2 }
 0x1d8   :  { %v1227_v48 = vadd.f32 %v1163_v43, %v1159_v24  ;;  %v914_v12 = vadd.f32 %v913_v25, %v5969_v28 }
 0x1d9   :  { %v637_v27 = vpop.f32.mrf.mxu0 }
 0x1da   :  { %v1053_v14 = vadd.f32 %v1052_v6, %v914_v12  ;;  %v638_v4 = vadd.f32 %v637_v27, %v5964_v21  ;;  %v6509_v5 = vpop.f32.mrf.mxu3  ;;  %v1279_v17 = vmul.f32 0.5, %v1227_v48 }
 0x1dc   :  { %v1164_v22 = vmax.f32 %v1053_v14, 0.0  ;;  %v777_v1 = vadd.f32 %v776_v9, %v638_v4  ;;  %v784_v60 = vpop.f32.mrf.mxu1 }
 0x1de   :  { %v1228_v6 = vadd.f32 %v1164_v22, %v1160_v16  ;;  %v1165_v35 = vmax.f32 %v777_v1, 0.0  ;;  %v4643_v16 = vld [vmem:[%s7974_s3 + $0x40] sm:$0xf]  ;;  %v5447_v22 = vld [vmem:[%s7974_s3 + $0x44] sm:$0xf0] }
 0x1df   :  { %v915_v26 = vpop.f32.mrf.mxu2  ;;  %1599 = vmatmul.bf16.gmra.mxu1 %v6265_v47  ;;  %4594 = vmatmul.msk.bf16.gmra.mxu3 %vm1541_vm3, %v6267_v61  ;;  %v5454_v1 = vld [vmem:[%s7974_s3 + $0x84] sm:$0xf] }
 0x1e0   :  { %v1280_v41 = vmul.f32 0.5, %v1228_v6  ;;  %v1229_v44 = vadd.f32 %v1165_v35, %v1161_v39  ;;  %v916_v51 = vadd.f32 %v915_v26, %v5969_v28  ;;  %v4644_v6 = vor.u32 %v5447_v22, %v4643_v16  ;;  %v4677_v35 = vld [vmem:[%s7974_s3 + $0x88] sm:$0xf0] }
 0x1e1   :  { %v640_v57 = vpop.f32.mrf.mxu0 }
 0x1e2   :  { %v1313_v42 = vpack.c.bf16 %v1280_v41, %v1279_v17  ;;  %v1055_v55 = vadd.f32 %v1054_v15, %v916_v51  ;;  %v641_v9 = vadd.f32 %v640_v57, %v5964_v21  ;;  %v1062_v29 = vpop.f32.mrf.mxu3  ;;  %v1281_v34 = vmul.f32 0.5, %v1229_v44  ;;  %1911 = vmatpush.bf16.msra.mxu1 %v4644_v6 }
 0x1e3   :  { %v4680_v17 = vor.u32 %v5454_v1, %v4677_v35  ;;  %v4635_v35 = vld [vmem:[%s7974_s3 + $0x30] sm:$0xf] }
 0x1e4   :  { %v1166_v45 = vmax.f32 %v1055_v55, 0.0  ;;  %v780_v7 = vadd.f32 %v779_v50, %v641_v9  ;;  %v786_v0 = vpop.f32.mrf.mxu1  ;;  %1702 = vmatmul.bf16.gmra.mxu0 %v6218_v32  ;;  %4602 = vmatmul.msk.bf16.gmra.mxu2 %vm1541_vm3, %v6220_v31  ;;  %v1412_v50 = vunpack.c.l.b16 %v1313_v42  ;;  %v1413_v25 = vunpack.c.h.b16 %v1313_v42 }
 0x1e5   :  { %2077 = vmatpush.bf16.msra.mxu2 %v4680_v17 }
 0x1e6   :  { %v1230_v46 = vadd.f32 %v1166_v45, %v1162_v38  ;;  %v1167_v55 = vmax.f32 %v780_v7, 0.0 }
 0x1e7   :  { %v918_v54 = vpop.f32.mrf.mxu2 }
 0x1e8   :  { %v1282_v40 = vmul.f32 0.5, %v1230_v46  ;;  %v919_v49 = vadd.f32 %v918_v54, %v5969_v28 }
 0x1e9   :  { %v642_v33 = vpop.f32.mrf.mxu0 }
 0x1ea   :  { %v1314_v15 = vpack.c.bf16 %v1282_v40, %v1281_v34  ;;  %v1058_v24 = vadd.f32 %v1057_v36, %v919_v49  ;;  %v643_v43 = vadd.f32 %v642_v33, %v5964_v21  ;;  %v6527_v58 = vpop.f32.mrf.mxu3  ;;  %v4645_v36 = vld [vmem:[%s7974_s3 + $0x48] sm:$0xf0]  ;;  %v5455_v49 = vld [vmem:[%s7974_s3 + $0x84] sm:$0xf0]  ;;  %v5444_v33 = vld [vmem:[%s7974_s3 + $0x34] sm:$0xf] }
 0x1ec   :  { %v1414_v48 = vunpack.c.l.b16 %v1314_v15  ;;  %v1415_v12 = vunpack.c.h.b16 %v1314_v15  ;;  %v782_v27 = vadd.f32 %v781_v19, %v643_v43  ;;  %v6529_v14 = vpop.f32.mrf.mxu1  ;;  %v4648_v19 = vor.u32 %v5446_v37, %v4645_v36 }
 0x1ed   :  { %v1168_v15 = vmax.f32 %v1058_v24, 0.0 }
 0x1ee   :  { %v6531_v4 = vpack.c.b16 %v1414_v48, %v1412_v50  ;;  %v6533_v59 = vpack.c.b16 %v1415_v12, %v1413_v25  ;;  %2019 = vmatpush.bf16.msra.mxu0 %v4648_v19  ;;  %v1169_v12 = vmax.f32 %v782_v27, 0.0 }
 0x1ef   :  { %v920_v2 = vpop.f32.mrf.mxu2  ;;  %1604 = vmatmul.bf16.gmra.mxu1 %v6320_v20  ;;  %4595 = vmatmul.msk.bf16.gmra.mxu3 %vm1541_vm3, %v6322_v10 }
 0x1f0   :  { %v921_v39 = vadd.f32 %v920_v2, %v5969_v28 }
 0x1f1   :  { %v645_v26 = vpop.f32.mrf.mxu0 }
 0x1f2   :  { %v1060_v41 = vadd.f32 %v6509_v5, %v921_v39  ;;  %v646_v44 = vadd.f32 %v645_v26, %v5964_v21  ;;  %v1067_v51 = vpop.f32.mrf.mxu3  ;;  %v5445_v26 = vld [vmem:[%s7974_s3 + $0x34] sm:$0xf0] }
 0x1f3   :  { %v4636_v17 = vor.u32 %v5445_v26, %v4635_v35  ;;  %v4619_v35 = vld [vmem:[%s7974_s3 + $0x10] sm:$0xf] }
 0x1f4   :  { %v785_v57 = vadd.f32 %v784_v60, %v646_v44  ;;  %v6559_v42 = vpop.f32.mrf.mxu1  ;;  %1707 = vmatmul.bf16.gmra.mxu0 %v6265_v47  ;;  %4603 = vmatmul.msk.bf16.gmra.mxu2 %vm1541_vm3, %v6267_v61  ;;  %v4675_v60 = vld [vmem:[%s7974_s3 + $0x80] sm:$0xf]  ;;  %v1170_v44 = vmax.f32 %v1060_v41, 0.0 }
 0x1f5   :  { %v4676_v7 = vor.u32 %v5455_v49, %v4675_v60  ;;  %1912 = vmatpush.bf16.msra.mxu1 %v4636_v17  ;;  %v5442_v49 = vld [vmem:[%s7974_s3 + $0x24] sm:$0xf] }
 0x1f6   :  { %v1171_v9 = vmax.f32 %v785_v57, 0.0 }
 0x1f7   :  { %v923_v38 = vpop.f32.mrf.mxu2  ;;  %1969 = vmatpush.bf16.msra.mxu3 %v4676_v7  ;;  %v4629_v7 = vld [vmem:[%s7974_s3 + $0x28] sm:$0xf0] }
 0x1f8   :  { %v1231_v45 = vadd.f32 %v1171_v9, %v1167_v55  ;;  %v924_v46 = vadd.f32 %v923_v38, %v5969_v28 }
 0x1f9   :  { %v647_v5 = vpop.f32.mrf.mxu0 }
 0x1fa   :  { %v1063_v54 = vadd.f32 %v1062_v29, %v924_v46  ;;  %v648_v34 = vadd.f32 %v647_v5, %v5964_v21  ;;  %v6566_v40 = vpop.f32.mrf.mxu3  ;;  %v4637_v29 = vld [vmem:[%s7974_s3 + $0x38] sm:$0xf0]  ;;  %v1283_v19 = vmul.f32 0.5, %v1231_v45 }
 0x1fb   :  { %v4640_v48 = vor.u32 %v5444_v33, %v4637_v29  ;;  %v4632_v29 = vor.u32 %v5442_v49, %v4629_v7 }
 0x1fc   :  { %v1172_v43 = vmax.f32 %v1063_v54, 0.0  ;;  %v787_v50 = vadd.f32 %v786_v0, %v648_v34  ;;  %v6580_v25 = vpop.f32.mrf.mxu1 }
 0x1fd   :  { %2020 = vmatpush.bf16.msra.mxu0 %v4640_v48 }
 0x1fe   :  { %v1232_v37 = vadd.f32 %v1172_v43, %v1168_v15  ;;  %v1173_v36 = vmax.f32 %v787_v50, 0.0 }
 0x1ff   :  { %v925_v2 = vpop.f32.mrf.mxu2  ;;  %1609 = vmatmul.bf16.gmra.mxu1 %v6377_v30  ;;  %4596 = vmatmul.msk.bf16.gmra.mxu3 %vm1541_vm3, %v6379_v56 }
 0x200   :  { %v1284_v16 = vmul.f32 0.5, %v1232_v37  ;;  %v1233_v22 = vadd.f32 %v1173_v36, %v1169_v12  ;;  %v926_v24 = vadd.f32 %v925_v2, %v5969_v28  ;;  %v4627_v36 = vld [vmem:[%s7974_s3 + $0x20] sm:$0xf]  ;;  %v5443_v2 = vld [vmem:[%s7974_s3 + $0x24] sm:$0xf0] }
 0x201   :  { %v650_v0 = vpop.f32.mrf.mxu0  ;;  %2021 = vmatpush.bf16.msra.mxu0 %v4632_v29 }
 0x202   :  { %v1315_v1 = vpack.c.bf16 %v1284_v16, %v1283_v19  ;;  %v1065_v39 = vadd.f32 %v6527_v58, %v926_v24  ;;  %v651_v27 = vadd.f32 %v650_v0, %v5964_v21  ;;  %v1072_v6 = vpop.f32.mrf.mxu3  ;;  %v1285_v45 = vmul.f32 0.5, %v1233_v22 }
 0x204   :  { %v1174_v57 = vmax.f32 %v1065_v39, 0.0  ;;  %v790_v55 = vadd.f32 %v6529_v14, %v651_v27  ;;  %v6595_v9 = vpop.f32.mrf.mxu1  ;;  %1712 = vmatmul.bf16.gmra.mxu0 %v6320_v20  ;;  %4604 = vmatmul.msk.bf16.gmra.mxu2 %vm1541_vm3, %v6322_v10  ;;  %v2147_v33 = vunpack.c.l.b16 %v1315_v1  ;;  %v2148_v15 = vunpack.c.h.b16 %v1315_v1 }
 0x206   :  { %v1234_v58 = vadd.f32 %v1174_v57, %v1170_v44  ;;  %v1175_v26 = vmax.f32 %v790_v55, 0.0 }
 0x207   :  { %v928_v38 = vpop.f32.mrf.mxu2 }
 0x208   :  { %v1286_v46 = vmul.f32 0.5, %v1234_v58  ;;  %v929_v5 = vadd.f32 %v928_v38, %v5969_v28 }
 0x209   :  { %v652_v54 = vpop.f32.mrf.mxu0 }
 0x20a   :  { %v1316_v34 = vpack.c.bf16 %v1286_v46, %v1285_v45  ;;  %v1068_v41 = vadd.f32 %v1067_v51, %v929_v5  ;;  %v653_v60 = vadd.f32 %v652_v54, %v5964_v21  ;;  %v6602_v14 = vpop.f32.mrf.mxu3  ;;  %v4611_v45 = vld [vmem:[%s7974_s3] sm:$0xf]  ;;  %v5439_v46 = vld [vmem:[%s7974_s3 + $0x4] sm:$0xf0] }
 0x20b   :  { %v4612_v49 = vor.u32 %v5439_v46, %v4611_v45 }
 0x20c   :  { %v2149_v43 = vunpack.c.l.b16 %v1316_v34  ;;  %v2150_v50 = vunpack.c.h.b16 %v1316_v34  ;;  %v792_v48 = vadd.f32 %v6559_v42, %v653_v60  ;;  %v799_v51 = vpop.f32.mrf.mxu1  ;;  %v4628_v42 = vor.u32 %v5443_v2, %v4627_v36  ;;  %v5440_v34 = vld [vmem:[%s7974_s3 + $0x14] sm:$0xf]  ;;  %v4621_v60 = vld [vmem:[%s7974_s3 + $0x18] sm:$0xf0] }
 0x20d   :  { %v4624_v7 = vor.u32 %v5440_v34, %v4621_v60 }
 0x20e   :  { %v6611_v12 = vpack.c.b16 %v2149_v43, %v2147_v33  ;;  %v6613_v37 = vpack.c.b16 %v2150_v50, %v2148_v15  ;;  %1913 = vmatpush.bf16.msra.mxu1 %v4628_v42  ;;  %v1176_v33 = vmax.f32 %v1068_v41, 0.0 }
 0x20f   :  { %v930_v19 = vpop.f32.mrf.mxu2  ;;  %1614 = vmatmul.bf16.gmra.mxu1 %v6424_v11  ;;  %4597 = vmatmul.msk.bf16.gmra.mxu3 %vm1541_vm3, %v6426_v13 }
 0x210   :  { %v931_v16 = vadd.f32 %v930_v19, %v5969_v28  ;;  %2022 = vmatpush.bf16.msra.mxu0 %v4624_v7 }
 0x211   :  { %v655_v22 = vpop.f32.mrf.mxu0 }
 0x212   :  { %v1070_v24 = vadd.f32 %v6566_v40, %v931_v16  ;;  %v656_v0 = vadd.f32 %v655_v22, %v5964_v21  ;;  %v1077_v1 = vpop.f32.mrf.mxu3  ;;  %v5441_v40 = vld [vmem:[%s7974_s3 + $0x14] sm:$0xf0] }
 0x213   :  { %v4620_v44 = vor.u32 %v5441_v40, %v4619_v35 }
 0x214   :  { %v795_v39 = vadd.f32 %v6580_v25, %v656_v0  ;;  %v6628_v27 = vpop.f32.mrf.mxu1  ;;  %1717 = vmatmul.bf16.gmra.mxu0 %v6377_v30  ;;  %4605 = vmatmul.msk.bf16.gmra.mxu2 %vm1541_vm3, %v6379_v56  ;;  %v1178_v35 = vmax.f32 %v1070_v24, 0.0 }
 0x215   :  { %1914 = vmatpush.bf16.msra.mxu1 %v4620_v44 }
 0x216   :  { %v1179_v17 = vmax.f32 %v795_v39, 0.0 }
 0x217   :  { %v933_v57 = vpop.f32.mrf.mxu2 }
 0x218   :  { %v1235_v25 = vadd.f32 %v1179_v17, %v1175_v26  ;;  %v934_v58 = vadd.f32 %v933_v57, %v5969_v28 }
 0x219   :  { %v657_v38 = vpop.f32.mrf.mxu0  ;;  %1915 = vmatpush.bf16.msra.mxu1 %v4612_v49 }
 0x21a   :  { %v1073_v5 = vadd.f32 %v1072_v6, %v934_v58  ;;  %v658_v54 = vadd.f32 %v657_v38, %v5964_v21  ;;  %v1079_v55 = vpop.f32.mrf.mxu3  ;;  %v1177_v6 = vmax.f32 %v792_v48, 0.0  ;;  %v1287_v19 = vmul.f32 0.5, %v1235_v25 }
 0x21c   :  { %v1180_v29 = vmax.f32 %v1073_v5, 0.0  ;;  %v797_v15 = vadd.f32 %v6595_v9, %v658_v54  ;;  %v804_v43 = vpop.f32.mrf.mxu1 }
 0x21e   :  { %v1236_v50 = vadd.f32 %v1180_v29, %v1176_v33  ;;  %v1181_v36 = vmax.f32 %v797_v15, 0.0 }
 0x21f   :  { %v935_v2 = vpop.f32.mrf.mxu2  ;;  %1619 = vmatmul.bf16.gmra.mxu1 %v6483_v3  ;;  %4598 = vmatmul.msk.bf16.gmra.mxu3 %vm1541_vm3, %v6485_v63 }
 0x220   :  { %v1288_v42 = vmul.f32 0.5, %v1236_v50  ;;  %v1237_v16 = vadd.f32 %v1181_v36, %v1177_v6  ;;  %v936_v41 = vadd.f32 %v935_v2, %v5969_v28 }
 0x221   :  { %v660_v22 = vpop.f32.mrf.mxu0 }
 0x222   :  { %v1317_v0 = vpack.c.bf16 %v1288_v42, %v1287_v19  ;;  %v1075_v9 = vadd.f32 %v6602_v14, %v936_v41  ;;  %v661_v39 = vadd.f32 %v660_v22, %v5964_v21  ;;  %v1082_v48 = vpop.f32.mrf.mxu3  ;;  %v1289_v25 = vmul.f32 0.5, %v1237_v16  ;;  %v5438_v14 = vld [vmem:[%s7974_s3 + $0x4] sm:$0xf] }
 0x224   :  { %v1182_v40 = vmax.f32 %v1075_v9, 0.0  ;;  %v800_v26 = vadd.f32 %v799_v51, %v661_v39  ;;  %v806_v17 = vpop.f32.mrf.mxu1  ;;  %1722 = vmatmul.bf16.gmra.mxu0 %v6424_v11  ;;  %4606 = vmatmul.msk.bf16.gmra.mxu2 %vm1541_vm3, %v6426_v13  ;;  %v4613_v51 = vld [vmem:[%s7974_s3 + $0x8] sm:$0xf0]  ;;  %v2536_v60 = vunpack.c.l.b16 %v1317_v0  ;;  %v2537_v29 = vunpack.c.h.b16 %v1317_v0  ;;  %v5496_v0 = vld [vmem:[%s7974_s3 + $0x1d4] sm:$0xf] }
 0x225   :  { %v4616_v45 = vor.u32 %v5438_v14, %v4613_v51 }
 0x226   :  { %v1238_v44 = vadd.f32 %v1182_v40, %v1178_v35  ;;  %v1183_v39 = vmax.f32 %v800_v26, 0.0  ;;  %v5497_v26 = vld [vmem:[%s7974_s3 + $0x1d4] sm:$0x30] }
 0x227   :  { %v938_v57 = vpop.f32.mrf.mxu2  ;;  %2023 = vmatpush.bf16.msra.mxu0 %v4616_v45  ;;  %v5492_v45 = vld [vmem:[%s7974_s3 + $0x1b4] sm:$0xf] }
 0x228   :  { %v1290_v58 = vmul.f32 0.5, %v1238_v44  ;;  %v939_v38 = vadd.f32 %v938_v57, %v5969_v28 }
 0x229   :  { %v662_v24 = vpop.f32.mrf.mxu0 }
 0x22a   :  { %v1318_v46 = vpack.c.bf16 %v1290_v58, %v1289_v25  ;;  %v1078_v5 = vadd.f32 %v1077_v1, %v939_v38  ;;  %v663_v54 = vadd.f32 %v662_v24, %v5964_v21  ;;  %v6671_v34 = vpop.f32.mrf.mxu3  ;;  %v4801_v24 = vld [vmem:[%s7974_s3 + $0x1d0] sm:$0xf] }
 0x22c   :  { %v802_v49 = vadd.f32 %v6628_v27, %v663_v54  ;;  %v1585_v7 = vpop.f32.mrf.mxu1  ;;  %v2538_v33 = vunpack.c.l.b16 %v1318_v46  ;;  %v2539_v15 = vunpack.c.h.b16 %v1318_v46  ;;  %v1184_v46 = vmax.f32 %v1078_v5, 0.0 }
 0x22e   :  { %v6674_v6 = vpack.c.b16 %v2538_v33, %v2536_v60  ;;  %v6676_v50 = vpack.c.b16 %v2539_v15, %v2537_v29  ;;  %v1185_v29 = vmax.f32 %v802_v49, 0.0  ;;  %v4785_v49 = vld [vmem:[%s7974_s3 + $0x1b0] sm:$0xf] }
 0x22f   :  { %v940_v36 = vpop.f32.mrf.mxu2  ;;  %1624 = vmatmul.bf16.gmra.mxu1 %v6531_v4  ;;  %4599 = vmatmul.msk.bf16.gmra.mxu3 %vm1541_vm3, %v6533_v59 }
 0x230   :  { %7988 = vst [vmem:[#allocation2_spill] sm:$0xff] %v6674_v6  ;;  %v941_v1 = vadd.f32 %v940_v36, %v5969_v28 }
 0x231   :  { %7989 = vst [vmem:[#allocation3_spill] sm:$0xff] %v6676_v50  ;;  %v665_v2 = vpop.f32.mrf.mxu0 }
 0x232   :  { %v1080_v19 = vadd.f32 %v1079_v55, %v941_v1  ;;  %v666_v27 = vadd.f32 %v665_v2, %v5964_v21  ;;  %v1639_v42 = vpop.f32.mrf.mxu3  ;;  %v4803_v55 = vld [vmem:[%s7974_s3 + $0x1d8] sm:$0x30] }
 0x233   :  { %v6683_v16 = vadd.f32 %v1639_v42, %v1585_v7  ;;  %v4806_v9 = vor.u32 %v5496_v0, %v4803_v55  ;;  %v4787_v7 = vld [vmem:[%s7974_s3 + $0x1b8] sm:$0xf0] }
 0x234   :  { %v805_v41 = vadd.f32 %v804_v43, %v666_v27  ;;  %v1587_v22 = vpop.f32.mrf.mxu1  ;;  %1727 = vmatmul.bf16.gmra.mxu0 %v6483_v3  ;;  %4607 = vmatmul.msk.bf16.gmra.mxu2 %vm1541_vm3, %v6485_v63  ;;  %v4790_v33 = vor.u32 %v5492_v45, %v4787_v7 }
 0x235   :  { %v2259_v43 = vsel %vm1569_vm2, %v4806_v9, 0 }
 0x236   :  { %v1187_v35 = vmax.f32 %v805_v41, 0.0  ;;  %2429 = vmatpush.bf16.msrb.mxu2 %v2259_v43  ;;  %2369 = vmatpush.bf16.msrb.mxu0 %v4790_v33  ;;  %v5493_v41 = vld [vmem:[%s7974_s3 + $0x1b4] sm:$0xf0] }
 0x237   :  { %v943_v40 = vpop.f32.mrf.mxu2  ;;  %v4786_v0 = vor.u32 %v5493_v41, %v4785_v49 }
 0x238   :  { %v1239_v44 = vadd.f32 %v1187_v35, %v1183_v39  ;;  %v944_v57 = vadd.f32 %v943_v40, %v5969_v28 }
 0x239   :  { %v667_v25 = vpop.f32.mrf.mxu0  ;;  %2261 = vmatpush.bf16.msrb.mxu1 %v4786_v0 }
 0x23a   :  { %v1083_v58 = vadd.f32 %v1082_v48, %v944_v57  ;;  %v668_v38 = vadd.f32 %v667_v25, %v5964_v21  ;;  %v1641_v14 = vpop.f32.mrf.mxu3  ;;  %v4802_v21 = vor.u32 %v5497_v26, %v4801_v24  ;;  %v1291_v5 = vmul.f32 0.5, %v1239_v44 }
 0x23b   :  { %v6697_v51 = vadd.f32 %v1641_v14, %v1587_v22 }
 0x23c   :  { %v1188_v54 = vmax.f32 %v1083_v58, 0.0  ;;  %v807_v48 = vadd.f32 %v806_v17, %v668_v38  ;;  %v1590_v60 = vpop.f32.mrf.mxu1  ;;  %v2256_v1 = vsel %vm1569_vm2, %v4802_v21, 0 }
 0x23d   :  { %2321 = vmatpush.bf16.msrb.mxu3 %v2256_v1 }
 0x23e   :  { %v1240_v15 = vadd.f32 %v1188_v54, %v1184_v46  ;;  %v1189_v36 = vmax.f32 %v807_v48, 0.0  ;;  %v4779_v46 = vld [vmem:[%s7974_s3 + $0x1a8] sm:$0xf0] }
 0x23f   :  { %v945_v2 = vpop.f32.mrf.mxu2  ;;  %1916 = vmatmul.bf16.vlgmr.msra.gmra.mxu1 %v6035_v53  ;;  %4689 = vmatmul.msk.bf16.vlgmr.msra.gmra.mxu3 %vm1541_vm3, %v6033_v52 }
 0x240   :  { %v1292_v17 = vmul.f32 0.5, %v1240_v15  ;;  %v1241_v27 = vadd.f32 %v1189_v36, %v1185_v29  ;;  %v946_v42 = vadd.f32 %v945_v2, %v5969_v28  ;;  %v1186_v28 = vmax.f32 %v1080_v19, 0.0  ;;  %v5490_v19 = vld [vmem:[%s7974_s3 + $0x1a4] sm:$0xf] }
 0x241   :  { %v1693_v22 = vpop.f32.mrf.mxu0  ;;  %v4782_v7 = vor.u32 %v5490_v19, %v4779_v46 }
 0x242   :  { %v1319_v55 = vpack.c.bf16 %v1292_v17, %v1291_v5  ;;  %v1085_v9 = vadd.f32 %v6671_v34, %v946_v42  ;;  %v1644_v39 = vpop.f32.mrf.mxu3  ;;  %v1293_v25 = vmul.f32 0.5, %v1241_v27  ;;  %v4777_v17 = vld [vmem:[%s7974_s3 + $0x1a0] sm:$0xf]  ;;  %v5491_v27 = vld [vmem:[%s7974_s3 + $0x1a4] sm:$0xf0] }
 0x243   :  { %v6723_v35 = vadd.f32 %v1644_v39, %v1590_v60  ;;  %2370 = vmatpush.bf16.msrb.mxu0 %v4782_v7  ;;  %v4778_v49 = vor.u32 %v5491_v27, %v4777_v17  ;;  %v4763_v7 = vld [vmem:[%s7974_s3 + $0x188] sm:$0xf0] }
 0x244   :  { %v1190_v40 = vmax.f32 %v1085_v9, 0.0  ;;  %v1592_v43 = vpop.f32.mrf.mxu1  ;;  %1732 = vmatmul.bf16.gmra.mxu0 %v6531_v4  ;;  %4608 = vmatmul.msk.bf16.gmra.mxu2 %vm1541_vm3, %v6533_v59  ;;  %v2925_v54 = vunpack.c.l.b16 %v1319_v55  ;;  %v2926_v60 = vunpack.c.h.b16 %v1319_v55 }
 0x245   :  { %2262 = vmatpush.bf16.msrb.mxu1 %v4778_v49  ;;  %v5487_v49 = vld [vmem:[%s7974_s3 + $0x184] sm:$0xf0] }
 0x246   :  { %v1242_v44 = vadd.f32 %v1190_v40, %v1186_v28  ;;  %v5488_v28 = vld [vmem:[%s7974_s3 + $0x194] sm:$0xf] }
 0x247   :  { %v1747_v57 = vpop.f32.mrf.mxu2 }
 0x248   :  { %v1294_v58 = vmul.f32 0.5, %v1242_v44  ;;  %v6728_v38 = vadd.f32 %v1747_v57, %v1693_v22 }
 0x249   :  { %v1695_v14 = vpop.f32.mrf.mxu0 }
 0x24a   :  { %v1646_v34 = vpop.f32.mrf.mxu3  ;;  %v1320_v24 = vpack.c.bf16 %v1294_v58, %v1293_v25 }
 0x24b   :  { %v6730_v26 = vadd.f32 %v1646_v34, %v1592_v43  ;;  %v5489_v34 = vld [vmem:[%s7974_s3 + $0x194] sm:$0xf0] }
 0x24c   :  { %v1595_v45 = vpop.f32.mrf.mxu1  ;;  %v2927_v48 = vunpack.c.l.b16 %v1320_v24  ;;  %v2928_v21 = vunpack.c.h.b16 %v1320_v24 }
 0x24e   :  { %v6738_v33 = vpack.c.b16 %v2927_v48, %v2925_v54  ;;  %v6740_v29 = vpack.c.b16 %v2928_v21, %v2926_v60  ;;  %v5486_v21 = vld [vmem:[%s7974_s3 + $0x184] sm:$0xf] }
 0x24f   :  { %v1749_v15 = vpop.f32.mrf.mxu2  ;;  %1921 = vmatmul.bf16.gmra.mxu1 %v6111_v62  ;;  %4690 = vmatmul.msk.bf16.gmra.mxu3 %vm1541_vm3, %v6113_v8 }
 0x250   :  { %7990 = vst [vmem:[#allocation4_spill] sm:$0xff] %v6738_v33  ;;  %v6745_v36 = vadd.f32 %v1749_v15, %v1695_v14  ;;  %v4769_v14 = vld [vmem:[%s7974_s3 + $0x190] sm:$0xf] }
 0x251   :  { %7991 = vst [vmem:[#allocation5_spill] sm:$0xff] %v6740_v29  ;;  %v1698_v1 = vpop.f32.mrf.mxu0  ;;  %v4770_v24 = vor.u32 %v5489_v34, %v4769_v14 }
 0x252   :  { %v1649_v2 = vpop.f32.mrf.mxu3 }
 0x253   :  { %v6747_v5 = vadd.f32 %v1649_v2, %v1595_v45  ;;  %2263 = vmatpush.bf16.msrb.mxu1 %v4770_v24 }
 0x254   :  { %v1597_v42 = vpop.f32.mrf.mxu1  ;;  %2024 = vmatmul.bf16.vlgmr.msra.gmra.mxu0 %v6035_v53  ;;  %4698 = vmatmul.msk.bf16.vlgmr.msra.gmra.mxu2 %vm1541_vm3, %v6033_v52  ;;  %v4771_v53 = vld [vmem:[%s7974_s3 + $0x198] sm:$0xf0] }
 0x255   :  { %v4774_v40 = vor.u32 %v5488_v28, %v4771_v53 }
 0x257   :  { %v1752_v41 = vpop.f32.mrf.mxu2  ;;  %2371 = vmatpush.bf16.msrb.mxu0 %v4774_v40 }
 0x258   :  { %v6758_v22 = vadd.f32 %v1752_v41, %v1698_v1  ;;  %v4766_v1 = vor.u32 %v5486_v21, %v4763_v7  ;;  %v4755_v7 = vld [vmem:[%s7974_s3 + $0x178] sm:$0xf0] }
 0x259   :  { %v1700_v0 = vpop.f32.mrf.mxu0 }
 0x25a   :  { %v1651_v55 = vpop.f32.mrf.mxu3 }
 0x25b   :  { %v6760_v9 = vadd.f32 %v1651_v55, %v1597_v42  ;;  %2372 = vmatpush.bf16.msrb.mxu0 %v4766_v1  ;;  %v4761_v42 = vld [vmem:[%s7974_s3 + $0x180] sm:$0xf] }
 0x25c   :  { %v1600_v39 = vpop.f32.mrf.mxu1  ;;  %v4762_v41 = vor.u32 %v5487_v49, %v4761_v42  ;;  %v5485_v42 = vld [vmem:[%s7974_s3 + $0x174] sm:$0xf0] }
 0x25e   :  { %2264 = vmatpush.bf16.msrb.mxu1 %v4762_v41 }
 0x25f   :  { %v1754_v52 = vpop.f32.mrf.mxu2  ;;  %1926 = vmatmul.bf16.gmra.mxu1 %v6159_v18  ;;  %4691 = vmatmul.msk.bf16.gmra.mxu3 %vm1541_vm3, %v6161_v23 }
 0x260   :  { %v6771_v43 = vadd.f32 %v1754_v52, %v1700_v0  ;;  %v5494_v52 = vld [vmem:[%s7974_s3 + $0x1c4] sm:$0xf] }
 0x261   :  { %v1703_v44 = vpop.f32.mrf.mxu0 }
 0x262   :  { %v1654_v57 = vpop.f32.mrf.mxu3 }
 0x263   :  { %v6773_v25 = vadd.f32 %v1654_v57, %v1600_v39 }
 0x264   :  { %v1602_v58 = vpop.f32.mrf.mxu1  ;;  %2029 = vmatmul.bf16.gmra.mxu0 %v6111_v62  ;;  %4699 = vmatmul.msk.bf16.gmra.mxu2 %vm1541_vm3, %v6113_v8 }
 0x267   :  { %v1757_v45 = vpop.f32.mrf.mxu2 }
 0x268   :  { %v6784_v19 = vadd.f32 %v1757_v45, %v1703_v44  ;;  %v4795_v44 = vld [vmem:[%s7974_s3 + $0x1c8] sm:$0xf0] }
 0x269   :  { %v1705_v46 = vpop.f32.mrf.mxu0  ;;  %v4798_v57 = vor.u32 %v5494_v52, %v4795_v44 }
 0x26a   :  { %v1656_v54 = vpop.f32.mrf.mxu3 }
 0x26b   :  { %v6786_v48 = vadd.f32 %v1656_v54, %v1602_v58  ;;  %2430 = vmatpush.bf16.msrb.mxu2 %v4798_v57  ;;  %v5495_v54 = vld [vmem:[%s7974_s3 + $0x1c4] sm:$0xf0] }
 0x26c   :  { %v1605_v62 = vpop.f32.mrf.mxu1 }
 0x26f   :  { %v1759_v60 = vpop.f32.mrf.mxu2  ;;  %1931 = vmatmul.bf16.gmra.mxu1 %v6218_v32  ;;  %4692 = vmatmul.msk.bf16.gmra.mxu3 %vm1541_vm3, %v6220_v31 }
 0x270   :  { %v6791_v8 = vadd.f32 %v1759_v60, %v1705_v46  ;;  %v4793_v46 = vld [vmem:[%s7974_s3 + $0x1c0] sm:$0xf] }
 0x271   :  { %v1708_v15 = vpop.f32.mrf.mxu0  ;;  %v4794_v21 = vor.u32 %v5495_v54, %v4793_v46  ;;  %v4747_v46 = vld [vmem:[%s7974_s3 + $0x168] sm:$0xf0] }
 0x272   :  { %v1659_v2 = vpop.f32.mrf.mxu3 }
 0x273   :  { %v6799_v17 = vadd.f32 %v1659_v2, %v1605_v62  ;;  %v5484_v62 = vld [vmem:[%s7974_s3 + $0x174] sm:$0xf]  ;;  %2322 = vmatpush.bf16.msrb.mxu3 %v4794_v21 }
 0x274   :  { %v1607_v27 = vpop.f32.mrf.mxu1  ;;  %2034 = vmatmul.bf16.gmra.mxu0 %v6159_v18  ;;  %4700 = vmatmul.msk.bf16.gmra.mxu2 %vm1541_vm3, %v6161_v23 }
 0x277   :  { %v1762_v0 = vpop.f32.mrf.mxu2 }
 0x278   :  { %v6810_v55 = vadd.f32 %v1762_v0, %v1708_v15  ;;  %v4758_v15 = vor.u32 %v5484_v62, %v4755_v7 }
 0x279   :  { %v1710_v39 = vpop.f32.mrf.mxu0 }
 0x27a   :  { %v1661_v28 = vpop.f32.mrf.mxu3  ;;  %2373 = vmatpush.bf16.msrb.mxu0 %v4758_v15 }
 0x27b   :  { %v6812_v53 = vadd.f32 %v1661_v28, %v1607_v27  ;;  %v4753_v27 = vld [vmem:[%s7974_s3 + $0x170] sm:$0xf] }
 0x27c   :  { %v1610_v40 = vpop.f32.mrf.mxu1  ;;  %v4754_v41 = vor.u32 %v5485_v42, %v4753_v27  ;;  %v5483_v27 = vld [vmem:[%s7974_s3 + $0x164] sm:$0xf0] }
 0x27e   :  { %2265 = vmatpush.bf16.msrb.mxu1 %v4754_v41 }
 0x27f   :  { %v1764_v58 = vpop.f32.mrf.mxu2  ;;  %1936 = vmatmul.bf16.gmra.mxu1 %v6265_v47  ;;  %4693 = vmatmul.msk.bf16.gmra.mxu3 %vm1541_vm3, %v6267_v61 }
 0x280   :  { %v6823_v14 = vadd.f32 %v1764_v58, %v1710_v39 }
 0x281   :  { %v1713_v34 = vpop.f32.mrf.mxu0 }
 0x282   :  { %v1664_v24 = vpop.f32.mrf.mxu3 }
 0x283   :  { %v6825_v45 = vadd.f32 %v1664_v24, %v1610_v40  ;;  %v5482_v24 = vld [vmem:[%s7974_s3 + $0x164] sm:$0xf] }
 0x284   :  { %v1612_v60 = vpop.f32.mrf.mxu1  ;;  %2039 = vmatmul.bf16.gmra.mxu0 %v6218_v32  ;;  %4701 = vmatmul.msk.bf16.gmra.mxu2 %vm1541_vm3, %v6220_v31  ;;  %v4750_v54 = vor.u32 %v5482_v24, %v4747_v46  ;;  %v4739_v24 = vld [vmem:[%s7974_s3 + $0x158] sm:$0xf0]  ;;  %v4737_v46 = vld [vmem:[%s7974_s3 + $0x150] sm:$0xf] }
 0x286   :  { %2374 = vmatpush.bf16.msrb.mxu0 %v4750_v54 }
 0x287   :  { %v1767_v1 = vpop.f32.mrf.mxu2 }
 0x288   :  { %v6842_v2 = vadd.f32 %v1767_v1, %v1713_v34  ;;  %v4745_v1 = vld [vmem:[%s7974_s3 + $0x160] sm:$0xf] }
 0x289   :  { %v1715_v49 = vpop.f32.mrf.mxu0 }
 0x28a   :  { %v1666_v0 = vpop.f32.mrf.mxu3 }
 0x28b   :  { %v6850_v39 = vadd.f32 %v1666_v0, %v1612_v60 }
 0x28c   :  { %v1615_v28 = vpop.f32.mrf.mxu1 }
 0x28f   :  { %v1769_v40 = vpop.f32.mrf.mxu2  ;;  %1941 = vmatmul.bf16.gmra.mxu1 %v6320_v20  ;;  %4694 = vmatmul.msk.bf16.gmra.mxu3 %vm1541_vm3, %v6322_v10 }
 0x290   :  { %v6855_v52 = vadd.f32 %v1769_v40, %v1715_v49  ;;  %v4746_v49 = vor.u32 %v5483_v27, %v4745_v1 }
 0x291   :  { %v1718_v44 = vpop.f32.mrf.mxu0 }
 0x292   :  { %v1669_v57 = vpop.f32.mrf.mxu3  ;;  %2266 = vmatpush.bf16.msrb.mxu1 %v4746_v49  ;;  %v5479_v49 = vld [vmem:[%s7974_s3 + $0x144] sm:$0xf0] }
 0x293   :  { %v6857_v58 = vadd.f32 %v1669_v57, %v1615_v28 }
 0x294   :  { %v1617_v34 = vpop.f32.mrf.mxu1  ;;  %2044 = vmatmul.bf16.gmra.mxu0 %v6265_v47  ;;  %4702 = vmatmul.msk.bf16.gmra.mxu2 %vm1541_vm3, %v6267_v61 }
 0x297   :  { %v1772_v62 = vpop.f32.mrf.mxu2 }
 0x298   :  { %v6868_v60 = vadd.f32 %v1772_v62, %v1718_v44  ;;  %v5481_v62 = vld [vmem:[%s7974_s3 + $0x154] sm:$0xf0] }
 0x299   :  { %v1720_v21 = vpop.f32.mrf.mxu0 }
 0x29a   :  { %v1671_v7 = vpop.f32.mrf.mxu3 }
 0x29b   :  { %v6870_v15 = vadd.f32 %v1671_v7, %v1617_v34  ;;  %v5480_v34 = vld [vmem:[%s7974_s3 + $0x154] sm:$0xf]  ;;  %v4738_v7 = vor.u32 %v5481_v62, %v4737_v46 }
 0x29c   :  { %v1620_v42 = vpop.f32.mrf.mxu1  ;;  %v4742_v54 = vor.u32 %v5480_v34, %v4739_v24 }
 0x29d   :  { %2267 = vmatpush.bf16.msrb.mxu1 %v4738_v7 }
 0x29e   :  { %2375 = vmatpush.bf16.msrb.mxu0 %v4742_v54 }
 0x29f   :  { %v1774_v41 = vpop.f32.mrf.mxu2  ;;  %1946 = vmatmul.bf16.gmra.mxu1 %v6377_v30  ;;  %4695 = vmatmul.msk.bf16.gmra.mxu3 %vm1541_vm3, %v6379_v56 }
 0x2a0   :  { %v6881_v0 = vadd.f32 %v1774_v41, %v1720_v21 }
 0x2a1   :  { %v1723_v28 = vpop.f32.mrf.mxu0 }
 0x2a2   :  { %v1674_v40 = vpop.f32.mrf.mxu3 }
 0x2a3   :  { %v6883_v44 = vadd.f32 %v1674_v40, %v1620_v42  ;;  %v4729_v42 = vld [vmem:[%s7974_s3 + $0x140] sm:$0xf] }
 0x2a4   :  { %v1622_v57 = vpop.f32.mrf.mxu1  ;;  %2049 = vmatmul.bf16.gmra.mxu0 %v6320_v20  ;;  %4703 = vmatmul.msk.bf16.gmra.mxu2 %vm1541_vm3, %v6322_v10  ;;  %v4730_v40 = vor.u32 %v5479_v49, %v4729_v42  ;;  %v5478_v49 = vld [vmem:[%s7974_s3 + $0x144] sm:$0xf] }
 0x2a6   :  { %2268 = vmatpush.bf16.msrb.mxu1 %v4730_v40 }
 0x2a7   :  { %v1777_v21 = vpop.f32.mrf.mxu2 }
 0x2a8   :  { %v6900_v1 = vadd.f32 %v1777_v21, %v1723_v28 }
 0x2a9   :  { %v1725_v27 = vpop.f32.mrf.mxu0 }
 0x2aa   :  { %v1676_v41 = vpop.f32.mrf.mxu3 }
 0x2ab   :  { %v6908_v34 = vadd.f32 %v1676_v41, %v1622_v57 }
 0x2ac   :  { %v1625_v24 = vpop.f32.mrf.mxu1 }
 0x2af   :  { %v1779_v46 = vpop.f32.mrf.mxu2  ;;  %1951 = vmatmul.bf16.gmra.mxu1 %v6424_v11  ;;  %4696 = vmatmul.msk.bf16.gmra.mxu3 %vm1541_vm3, %v6426_v13 }
 0x2b0   :  { %v6913_v28 = vadd.f32 %v1779_v46, %v1725_v27  ;;  %v4731_v27 = vld [vmem:[%s7974_s3 + $0x148] sm:$0xf0] }
 0x2b1   :  { %v1728_v54 = vpop.f32.mrf.mxu0  ;;  %v4734_v40 = vor.u32 %v5478_v49, %v4731_v27 }
 0x2b2   :  { %v1679_v62 = vpop.f32.mrf.mxu3 }
 0x2b3   :  { %v6915_v21 = vadd.f32 %v1679_v62, %v1625_v24  ;;  %2376 = vmatpush.bf16.msrb.mxu0 %v4734_v40 }
 0x2b4   :  { %v1627_v7 = vpop.f32.mrf.mxu1  ;;  %2054 = vmatmul.bf16.gmra.mxu0 %v6377_v30  ;;  %4704 = vmatmul.msk.bf16.gmra.mxu2 %vm1541_vm3, %v6379_v56 }
 0x2b7   :  { %v1782_v57 = vpop.f32.mrf.mxu2 }
 0x2b8   :  { %v6920_v42 = vadd.f32 %v1782_v57, %v1728_v54 }
 0x2b9   :  { %v1730_v41 = vpop.f32.mrf.mxu0 }
 0x2ba   :  { %v1681_v24 = vpop.f32.mrf.mxu3 }
 0x2bb   :  { %v6928_v46 = vadd.f32 %v1681_v24, %v1627_v7  ;;  %v5516_v7 = vld [vmem:[%s7974_s3 + $0x274] sm:$0xf] }
 0x2bc   :  { %v1917_v62 = vpop.f32.mrf.mxu1 }
 0x2bd   :  { %v1918_v29 = vadd.f32 %v1917_v62, %v6683_v16 }
 0x2bf   :  { %v1784_v33 = vpop.f32.mrf.mxu2  ;;  %1956 = vmatmul.bf16.gmra.mxu1 %v6483_v3  ;;  %4697 = vmatmul.msk.bf16.gmra.mxu3 %vm1541_vm3, %v6485_v63 }
 0x2c0   :  { %v6934_v54 = vadd.f32 %v1784_v33, %v1730_v41  ;;  %v4921_v33 = vld [vmem:[%s7974_s3 + $0x278] sm:$0x30] }
 0x2c1   :  { %v1733_v57 = vpop.f32.mrf.mxu0  ;;  %v4924_v27 = vor.u32 %v5516_v7, %v4921_v33 }
 0x2c2   :  { %v1971_v50 = vpop.f32.mrf.mxu3 }
 0x2c3   :  { %v6936_v6 = vadd.f32 %v1971_v50, %v1918_v29  ;;  %v2648_v29 = vsel %vm1569_vm2, %v4924_v27, 0  ;;  %v4905_v27 = vld [vmem:[%s7974_s3 + $0x258] sm:$0xf0] }
 0x2c4   :  { %v1919_v49 = vpop.f32.mrf.mxu1  ;;  %2059 = vmatmul.bf16.gmra.mxu0 %v6424_v11  ;;  %4705 = vmatmul.msk.bf16.gmra.mxu2 %vm1541_vm3, %v6426_v13 }
 0x2c5   :  { %v1920_v16 = vadd.f32 %v1919_v49, %v6697_v51  ;;  %2818 = vmatpush.bf16.msra.mxu2 %v2648_v29  ;;  %v4919_v51 = vld [vmem:[%s7974_s3 + $0x270] sm:$0xf]  ;;  %v5517_v49 = vld [vmem:[%s7974_s3 + $0x274] sm:$0x30] }
 0x2c6   :  { %v4920_v33 = vor.u32 %v5517_v49, %v4919_v51  ;;  %v4903_v51 = vld [vmem:[%s7974_s3 + $0x250] sm:$0xf] }
 0x2c7   :  { %v1787_v41 = vpop.f32.mrf.mxu2 }
 0x2c8   :  { %v6948_v50 = vadd.f32 %v1787_v41, %v1733_v57  ;;  %v5512_v57 = vld [vmem:[%s7974_s3 + $0x254] sm:$0xf]  ;;  %v2645_v29 = vsel %vm1569_vm2, %v4920_v33, 0 }
 0x2c9   :  { %v1735_v40 = vpop.f32.mrf.mxu0  ;;  %v4908_v41 = vor.u32 %v5512_v57, %v4905_v27  ;;  %2710 = vmatpush.bf16.msra.mxu3 %v2645_v29 }
 0x2ca   :  { %v1973_v24 = vpop.f32.mrf.mxu3 }
 0x2cb   :  { %v6951_v62 = vadd.f32 %v1973_v24, %v1920_v16  ;;  %2758 = vmatpush.bf16.msra.mxu0 %v4908_v41 }
 0x2cc   :  { %v1922_v7 = vpop.f32.mrf.mxu1 }
 0x2cd   :  { %7992 = vst [vmem:[#allocation6_spill] sm:$0xff] %v6951_v62  ;;  %v1923_v16 = vadd.f32 %v1922_v7, %v6723_v35  ;;  %v5513_v35 = vld [vmem:[%s7974_s3 + $0x254] sm:$0xf0] }
 0x2ce   :  { %v4904_v57 = vor.u32 %v5513_v35, %v4903_v51 }
 0x2cf   :  { %v1789_v24 = vpop.f32.mrf.mxu2  ;;  %2269 = vmatmul.bf16.vlgmr.msrb.gmra.mxu1 %v6159_v18  ;;  %4807 = vmatmul.msk.bf16.vlgmr.msrb.gmra.mxu3 %vm1541_vm3, %v6161_v23 }
 0x2d0   :  { %v6970_v62 = vadd.f32 %v1789_v24, %v1735_v40  ;;  %2650 = vmatpush.bf16.msra.mxu1 %v4904_v57  ;;  %v5510_v57 = vld [vmem:[%s7974_s3 + $0x244] sm:$0xf] }
 0x2d1   :  { %v2025_v49 = vpop.f32.mrf.mxu0 }
 0x2d2   :  { %7993 = vst [vmem:[#allocation7_spill] sm:$0xff] %v6970_v62  ;;  %v2026_v7 = vadd.f32 %v2025_v49, %v6728_v38  ;;  %v1976_v33 = vpop.f32.mrf.mxu3 }
 0x2d3   :  { %v6979_v27 = vadd.f32 %v1976_v33, %v1923_v16 }
 0x2d4   :  { %v1924_v40 = vpop.f32.mrf.mxu1  ;;  %2064 = vmatmul.bf16.gmra.mxu0 %v6483_v3  ;;  %4706 = vmatmul.msk.bf16.gmra.mxu2 %vm1541_vm3, %v6485_v63 }
 0x2d5   :  { %v1925_v41 = vadd.f32 %v1924_v40, %v6730_v26  ;;  %v4897_v26 = vld [vmem:[%s7974_s3 + $0x248] sm:$0xf0] }
 0x2d6   :  { %v4900_v33 = vor.u32 %v5510_v57, %v4897_v26 }
 0x2d7   :  { %v2079_v29 = vpop.f32.mrf.mxu2 }
 0x2d8   :  { %v6985_v24 = vadd.f32 %v2079_v29, %v2026_v7  ;;  %2759 = vmatpush.bf16.msra.mxu0 %v4900_v33  ;;  %v4895_v29 = vld [vmem:[%s7974_s3 + $0x240] sm:$0xf] }
 0x2d9   :  { %v2027_v62 = vpop.f32.mrf.mxu0 }
 0x2da   :  { %v2028_v51 = vadd.f32 %v2027_v62, %v6745_v36  ;;  %v1978_v35 = vpop.f32.mrf.mxu3 }
 0x2db   :  { %v6988_v38 = vadd.f32 %v1978_v35, %v1925_v41  ;;  %v5511_v35 = vld [vmem:[%s7974_s3 + $0x244] sm:$0xf0] }
 0x2dc   :  { %v1927_v16 = vpop.f32.mrf.mxu1 }
 0x2dd   :  { %v1928_v49 = vadd.f32 %v1927_v16, %v6747_v5 }
 0x2df   :  { %v2081_v7 = vpop.f32.mrf.mxu2  ;;  %2274 = vmatmul.bf16.gmra.mxu1 %v6218_v32  ;;  %4808 = vmatmul.msk.bf16.gmra.mxu3 %vm1541_vm3, %v6220_v31 }
 0x2e0   :  { %v7000_v36 = vadd.f32 %v2081_v7, %v2028_v51  ;;  %v4896_v51 = vor.u32 %v5511_v35, %v4895_v29 }
 0x2e1   :  { %v2030_v62 = vpop.f32.mrf.mxu0 }
 0x2e2   :  { %v2031_v5 = vadd.f32 %v2030_v62, %v6758_v22  ;;  %v1981_v40 = vpop.f32.mrf.mxu3  ;;  %2651 = vmatpush.bf16.msra.mxu1 %v4896_v51 }
 0x2e3   :  { %v7003_v41 = vadd.f32 %v1981_v40, %v1928_v49 }
 0x2e4   :  { %v1929_v16 = vpop.f32.mrf.mxu1  ;;  %2377 = vmatmul.bf16.vlgmr.msrb.gmra.mxu0 %v6159_v18  ;;  %4816 = vmatmul.msk.bf16.vlgmr.msrb.gmra.mxu2 %vm1541_vm3, %v6161_v23  ;;  %v5508_v18 = vld [vmem:[%s7974_s3 + $0x234] sm:$0xf]  ;;  %v4889_v23 = vld [vmem:[%s7974_s3 + $0x238] sm:$0xf0] }
 0x2e5   :  { %7994 = vst [vmem:[#allocation8_spill] sm:$0xff] %v7003_v41  ;;  %v1930_v22 = vadd.f32 %v1929_v16, %v6760_v9  ;;  %v4892_v9 = vor.u32 %v5508_v18, %v4889_v23 }
 0x2e7   :  { %v2084_v49 = vpop.f32.mrf.mxu2  ;;  %2760 = vmatpush.bf16.msra.mxu0 %v4892_v9 }
 0x2e8   :  { %v7015_v57 = vadd.f32 %v2084_v49, %v2031_v5  ;;  %v4887_v49 = vld [vmem:[%s7974_s3 + $0x230] sm:$0xf] }
 0x2e9   :  { %v2032_v26 = vpop.f32.mrf.mxu0 }
 0x2ea   :  { %v2033_v33 = vadd.f32 %v2032_v26, %v6771_v43  ;;  %v1983_v7 = vpop.f32.mrf.mxu3  ;;  %v5509_v26 = vld [vmem:[%s7974_s3 + $0x234] sm:$0xf0] }
 0x2eb   :  { %v7018_v62 = vadd.f32 %v1983_v7, %v1930_v22 }
 0x2ec   :  { %v1932_v40 = vpop.f32.mrf.mxu1 }
 0x2ed   :  { %v1933_v41 = vadd.f32 %v1932_v40, %v6773_v25 }
 0x2ef   :  { %v2086_v5 = vpop.f32.mrf.mxu2  ;;  %2279 = vmatmul.bf16.gmra.mxu1 %v6265_v47  ;;  %4809 = vmatmul.msk.bf16.gmra.mxu3 %vm1541_vm3, %v6267_v61 }
 0x2f0   :  { %v7030_v43 = vadd.f32 %v2086_v5, %v2033_v33 }
 0x2f1   :  { %v2035_v29 = vpop.f32.mrf.mxu0 }
 0x2f2   :  { %v2036_v25 = vadd.f32 %v2035_v29, %v6784_v19  ;;  %v1986_v35 = vpop.f32.mrf.mxu3  ;;  %v4888_v19 = vor.u32 %v5509_v26, %v4887_v49 }
 0x2f3   :  { %v7033_v16 = vadd.f32 %v1986_v35, %v1933_v41 }
 0x2f4   :  { %v1934_v51 = vpop.f32.mrf.mxu1  ;;  %2382 = vmatmul.bf16.gmra.mxu0 %v6218_v32  ;;  %4817 = vmatmul.msk.bf16.gmra.mxu2 %vm1541_vm3, %v6220_v31 }
 0x2f5   :  { %v1935_v22 = vadd.f32 %v1934_v51, %v6786_v48  ;;  %2652 = vmatpush.bf16.msra.mxu1 %v4888_v19 }
 0x2f7   :  { %v2089_v33 = vpop.f32.mrf.mxu2 }
 0x2f8   :  { %v7045_v41 = vadd.f32 %v2089_v33, %v2036_v25  ;;  %v5506_v25 = vld [vmem:[%s7974_s3 + $0x224] sm:$0xf]  ;;  %v4879_v33 = vld [vmem:[%s7974_s3 + $0x220] sm:$0xf] }
 0x2f9   :  { %v2037_v7 = vpop.f32.mrf.mxu0 }
 0x2fa   :  { %v2038_v40 = vadd.f32 %v2037_v7, %v6791_v8  ;;  %v1988_v18 = vpop.f32.mrf.mxu3  ;;  %v4881_v8 = vld [vmem:[%s7974_s3 + $0x228] sm:$0xf0] }
 0x2fb   :  { %v7048_v23 = vadd.f32 %v1988_v18, %v1935_v22  ;;  %v4884_v51 = vor.u32 %v5506_v25, %v4881_v8 }
 0x2fc   :  { %v1937_v48 = vpop.f32.mrf.mxu1 }
 0x2fd   :  { %v1938_v9 = vadd.f32 %v1937_v48, %v6799_v17  ;;  %2761 = vmatpush.bf16.msra.mxu0 %v4884_v51  ;;  %v4913_v51 = vld [vmem:[%s7974_s3 + $0x268] sm:$0xf0] }
 0x2ff   :  { %v2091_v5 = vpop.f32.mrf.mxu2  ;;  %2284 = vmatmul.bf16.gmra.mxu1 %v6320_v20  ;;  %4810 = vmatmul.msk.bf16.gmra.mxu3 %vm1541_vm3, %v6322_v10 }
 0x300   :  { %v7054_v29 = vadd.f32 %v2091_v5, %v2038_v40 }
 0x301   :  { %v2040_v35 = vpop.f32.mrf.mxu0 }
 0x302   :  { %v2041_v17 = vadd.f32 %v2040_v35, %v6810_v55  ;;  %v1991_v22 = vpop.f32.mrf.mxu3  ;;  %v5507_v55 = vld [vmem:[%s7974_s3 + $0x224] sm:$0xf0]  ;;  %v5514_v35 = vld [vmem:[%s7974_s3 + $0x264] sm:$0xf] }
 0x303   :  { %v7063_v49 = vadd.f32 %v1991_v22, %v1938_v9  ;;  %v4880_v7 = vor.u32 %v5507_v55, %v4879_v33  ;;  %v4911_v55 = vld [vmem:[%s7974_s3 + $0x260] sm:$0xf] }
 0x304   :  { %v1939_v26 = vpop.f32.mrf.mxu1  ;;  %2387 = vmatmul.bf16.gmra.mxu0 %v6265_v47  ;;  %4818 = vmatmul.msk.bf16.gmra.mxu2 %vm1541_vm3, %v6267_v61 }
 0x305   :  { %v1940_v19 = vadd.f32 %v1939_v26, %v6812_v53  ;;  %2653 = vmatpush.bf16.msra.mxu1 %v4880_v7  ;;  %v5515_v7 = vld [vmem:[%s7974_s3 + $0x264] sm:$0xf0] }
 0x307   :  { %v2094_v40 = vpop.f32.mrf.mxu2 }
 0x308   :  { %v7075_v18 = vadd.f32 %v2094_v40, %v2041_v17  ;;  %v4916_v17 = vor.u32 %v5514_v35, %v4913_v51  ;;  %v5504_v40 = vld [vmem:[%s7974_s3 + $0x214] sm:$0xf]  ;;  %v4871_v51 = vld [vmem:[%s7974_s3 + $0x210] sm:$0xf] }
 0x309   :  { %v2042_v48 = vpop.f32.mrf.mxu0 }
 0x30a   :  { %v2043_v9 = vadd.f32 %v2042_v48, %v6823_v14  ;;  %v1993_v5 = vpop.f32.mrf.mxu3  ;;  %2819 = vmatpush.bf16.msra.mxu2 %v4916_v17  ;;  %v5505_v17 = vld [vmem:[%s7974_s3 + $0x214] sm:$0xf0] }
 0x30b   :  { %v7078_v25 = vadd.f32 %v1993_v5, %v1940_v19 }
 0x30c   :  { %v1942_v53 = vpop.f32.mrf.mxu1 }
 0x30d   :  { %v1943_v8 = vadd.f32 %v1942_v53, %v6825_v45 }
 0x30f   :  { %v2096_v22 = vpop.f32.mrf.mxu2  ;;  %2289 = vmatmul.bf16.gmra.mxu1 %v6377_v30  ;;  %4811 = vmatmul.msk.bf16.gmra.mxu3 %vm1541_vm3, %v6379_v56 }
 0x310   :  { %v7090_v14 = vadd.f32 %v2096_v22, %v2043_v9  ;;  %v4873_v9 = vld [vmem:[%s7974_s3 + $0x218] sm:$0xf0] }
 0x311   :  { %v2045_v26 = vpop.f32.mrf.mxu0  ;;  %v4876_v53 = vor.u32 %v5504_v40, %v4873_v9 }
 0x312   :  { %v2046_v45 = vadd.f32 %v2045_v26, %v6842_v2  ;;  %v1996_v19 = vpop.f32.mrf.mxu3  ;;  %v4912_v2 = vor.u32 %v5515_v7, %v4911_v55  ;;  %v4872_v26 = vor.u32 %v5505_v17, %v4871_v51  ;;  %v4865_v51 = vld [vmem:[%s7974_s3 + $0x208] sm:$0xf0] }
 0x313   :  { %v7093_v33 = vadd.f32 %v1996_v19, %v1943_v8  ;;  %2762 = vmatpush.bf16.msra.mxu0 %v4876_v53 }
 0x314   :  { %v1944_v48 = vpop.f32.mrf.mxu1  ;;  %2392 = vmatmul.bf16.gmra.mxu0 %v6320_v20  ;;  %4819 = vmatmul.msk.bf16.gmra.mxu2 %vm1541_vm3, %v6322_v10 }
 0x315   :  { %v1945_v5 = vadd.f32 %v1944_v48, %v6850_v39  ;;  %2711 = vmatpush.bf16.msra.mxu3 %v4912_v2  ;;  %2654 = vmatpush.bf16.msra.mxu1 %v4872_v26 }
 0x317   :  { %v2099_v8 = vpop.f32.mrf.mxu2 }
 0x318   :  { %v7111_v35 = vadd.f32 %v2099_v8, %v2046_v45  ;;  %v5502_v8 = vld [vmem:[%s7974_s3 + $0x204] sm:$0xf] }
 0x319   :  { %v2047_v22 = vpop.f32.mrf.mxu0 }
 0x31a   :  { %v2048_v19 = vadd.f32 %v2047_v22, %v6855_v52  ;;  %v1998_v55 = vpop.f32.mrf.mxu3 }
 0x31b   :  { %v7120_v39 = vadd.f32 %v1998_v55, %v1945_v5 }
 0x31c   :  { %v1947_v7 = vpop.f32.mrf.mxu1 }
 0x31d   :  { %v1948_v45 = vadd.f32 %v1947_v7, %v6857_v58 }
 0x31f   :  { %v2101_v40 = vpop.f32.mrf.mxu2  ;;  %2294 = vmatmul.bf16.gmra.mxu1 %v6424_v11  ;;  %4812 = vmatmul.msk.bf16.gmra.mxu3 %vm1541_vm3, %v6426_v13 }
 0x320   :  { %v7126_v48 = vadd.f32 %v2101_v40, %v2048_v19 }
 0x321   :  { %v2050_v2 = vpop.f32.mrf.mxu0 }
 0x322   :  { %v2051_v9 = vadd.f32 %v2050_v2, %v6868_v60  ;;  %v2001_v53 = vpop.f32.mrf.mxu3  ;;  %v4868_v60 = vor.u32 %v5502_v8, %v4865_v51 }
 0x323   :  { %v7129_v52 = vadd.f32 %v2001_v53, %v1948_v45  ;;  %v5503_v45 = vld [vmem:[%s7974_s3 + $0x204] sm:$0xf0] }
 0x324   :  { %v1949_v5 = vpop.f32.mrf.mxu1  ;;  %2397 = vmatmul.bf16.gmra.mxu0 %v6377_v30  ;;  %4820 = vmatmul.msk.bf16.gmra.mxu2 %vm1541_vm3, %v6379_v56 }
 0x325   :  { %v1950_v58 = vadd.f32 %v1949_v5, %v6870_v15  ;;  %2763 = vmatpush.bf16.msra.mxu0 %v4868_v60  ;;  %v4863_v15 = vld [vmem:[%s7974_s3 + $0x200] sm:$0xf] }
 0x326   :  { %v4864_v2 = vor.u32 %v5503_v45, %v4863_v15 }
 0x327   :  { %v2104_v17 = vpop.f32.mrf.mxu2 }
 0x328   :  { %v7141_v22 = vadd.f32 %v2104_v17, %v2051_v9  ;;  %2655 = vmatpush.bf16.msra.mxu1 %v4864_v2  ;;  %v5500_v17 = vld [vmem:[%s7974_s3 + $0x1f4] sm:$0xf]  ;;  %v4847_v2 = vld [vmem:[%s7974_s3 + $0x1e0] sm:$0xf] }
 0x329   :  { %v2052_v26 = vpop.f32.mrf.mxu0 }
 0x32a   :  { %v2053_v19 = vadd.f32 %v2052_v26, %v6881_v0  ;;  %v2003_v55 = vpop.f32.mrf.mxu3  ;;  %v4857_v26 = vld [vmem:[%s7974_s3 + $0x1f8] sm:$0xf0] }
 0x32b   :  { %v7144_v7 = vadd.f32 %v2003_v55, %v1950_v58  ;;  %v5501_v55 = vld [vmem:[%s7974_s3 + $0x1f4] sm:$0xf0] }
 0x32c   :  { %v1952_v40 = vpop.f32.mrf.mxu1 }
 0x32d   :  { %v1953_v9 = vadd.f32 %v1952_v40, %v6883_v44 }
 0x32f   :  { %v2106_v53 = vpop.f32.mrf.mxu2  ;;  %2299 = vmatmul.bf16.gmra.mxu1 %v6483_v3  ;;  %4813 = vmatmul.msk.bf16.gmra.mxu3 %vm1541_vm3, %v6485_v63 }
 0x330   :  { %v7156_v0 = vadd.f32 %v2106_v53, %v2053_v19  ;;  %v4860_v19 = vor.u32 %v5500_v17, %v4857_v26 }
 0x331   :  { %v2055_v5 = vpop.f32.mrf.mxu0 }
 0x332   :  { %v2056_v58 = vadd.f32 %v2055_v5, %v6900_v1  ;;  %v2006_v8 = vpop.f32.mrf.mxu3  ;;  %v4855_v1 = vld [vmem:[%s7974_s3 + $0x1f0] sm:$0xf]  ;;  %2764 = vmatpush.bf16.msra.mxu0 %v4860_v19 }
 0x333   :  { %v7159_v51 = vadd.f32 %v2006_v8, %v1953_v9  ;;  %v4856_v45 = vor.u32 %v5501_v55, %v4855_v1  ;;  %v5499_v9 = vld [vmem:[%s7974_s3 + $0x1e4] sm:$0xf0] }
 0x334   :  { %v1954_v60 = vpop.f32.mrf.mxu1  ;;  %2402 = vmatmul.bf16.gmra.mxu0 %v6424_v11  ;;  %4821 = vmatmul.msk.bf16.gmra.mxu2 %vm1541_vm3, %v6426_v13  ;;  %v4848_v8 = vor.u32 %v5499_v9, %v4847_v2 }
 0x335   :  { %v1955_v44 = vadd.f32 %v1954_v60, %v6908_v34  ;;  %2656 = vmatpush.bf16.msra.mxu1 %v4856_v45 }
 0x337   :  { %v2109_v15 = vpop.f32.mrf.mxu2 }
 0x338   :  { %v7177_v34 = vadd.f32 %v2109_v15, %v2056_v58 }
 0x339   :  { %v2057_v40 = vpop.f32.mrf.mxu0  ;;  %2657 = vmatpush.bf16.msra.mxu1 %v4848_v8 }
 0x33a   :  { %v2058_v53 = vadd.f32 %v2057_v40, %v6913_v28  ;;  %v2008_v5 = vpop.f32.mrf.mxu3 }
 0x33b   :  { %v7186_v60 = vadd.f32 %v2008_v5, %v1955_v44  ;;  %v4849_v5 = vld [vmem:[%s7974_s3 + $0x1e8] sm:$0xf0] }
 0x33c   :  { %v1957_v17 = vpop.f32.mrf.mxu1 }
 0x33d   :  { %v1958_v58 = vadd.f32 %v1957_v17, %v6915_v21 }
 0x33f   :  { %v2111_v26 = vpop.f32.mrf.mxu2  ;;  %2304 = vmatmul.bf16.gmra.mxu1 %v6531_v4  ;;  %4814 = vmatmul.msk.bf16.gmra.mxu3 %vm1541_vm3, %v6533_v59 }
 0x340   :  { %v7192_v1 = vadd.f32 %v2111_v26, %v2058_v53 }
 0x341   :  { %v2060_v19 = vpop.f32.mrf.mxu0 }
 0x342   :  { %v2061_v55 = vadd.f32 %v2060_v19, %v6920_v42  ;;  %v2011_v28 = vpop.f32.mrf.mxu3  ;;  %v5498_v42 = vld [vmem:[%s7974_s3 + $0x1e4] sm:$0xf] }
 0x343   :  { %v7195_v15 = vadd.f32 %v2011_v28, %v1958_v58  ;;  %v4852_v17 = vor.u32 %v5498_v42, %v4849_v5 }
 0x344   :  { %v1959_v44 = vpop.f32.mrf.mxu1  ;;  %2407 = vmatmul.bf16.gmra.mxu0 %v6483_v3  ;;  %4822 = vmatmul.msk.bf16.gmra.mxu2 %vm1541_vm3, %v6485_v63 }
 0x345   :  { %v1960_v21 = vadd.f32 %v1959_v44, %v6928_v46  ;;  %2765 = vmatpush.bf16.msra.mxu0 %v4852_v17  ;;  %v7996_v17 = vld [vmem:[#allocation7_spill] sm:$0xff] }
 0x347   :  { %v2114_v45 = vpop.f32.mrf.mxu2 }
 0x348   :  { %v7201_v40 = vadd.f32 %v2114_v45, %v2061_v55  ;;  %v5536_v45 = vld [vmem:[%s7974_s3 + $0x314] sm:$0xf] }
 0x349   :  { %v2062_v2 = vpop.f32.mrf.mxu0 }
 0x34a   :  { %v2063_v9 = vadd.f32 %v2062_v2, %v6934_v54  ;;  %v2013_v53 = vpop.f32.mrf.mxu3  ;;  %v5039_v2 = vld [vmem:[%s7974_s3 + $0x318] sm:$0x30] }
 0x34b   :  { %v7210_v8 = vadd.f32 %v2013_v53, %v1960_v21 }
 0x34c   :  { %v2270_v58 = vpop.f32.mrf.mxu1 }
 0x34f   :  { %v2116_v46 = vpop.f32.mrf.mxu2  ;;  %2309 = vmatmul.bf16.gmra.mxu1 %v6611_v12  ;;  %4815 = vmatmul.msk.bf16.gmra.mxu3 %vm1541_vm3, %v6613_v37 }
 0x350   :  { %v7215_v54 = vadd.f32 %v2116_v46, %v2063_v9 }
 0x351   :  { %v2065_v26 = vpop.f32.mrf.mxu0 }
 0x352   :  { %v2066_v19 = vadd.f32 %v2065_v26, %v6948_v50  ;;  %v2324_v55 = vpop.f32.mrf.mxu3  ;;  %v5042_v50 = vor.u32 %v5536_v45, %v5039_v2  ;;  %v5532_v45 = vld [vmem:[%s7974_s3 + $0x2f4] sm:$0xf] }
 0x353   :  { %v2325_v28 = vadd.f32 %v2324_v55, %v2270_v58  ;;  %v7997_v55 = vld [vmem:[#allocation6_spill] sm:$0xff] }
 0x354   :  { %v2272_v44 = vpop.f32.mrf.mxu1  ;;  %2412 = vmatmul.bf16.gmra.mxu0 %v6531_v4  ;;  %4823 = vmatmul.msk.bf16.gmra.mxu2 %vm1541_vm3, %v6533_v59  ;;  %v3037_v42 = vsel %vm1569_vm2, %v5042_v50, 0 }
 0x355   :  { %v7222_v21 = vadd.f32 %v2325_v28, %v6936_v6  ;;  %3207 = vmatpush.bf16.msrb.mxu2 %v3037_v42 }
 0x357   :  { %7995 = vst [vmem:[#allocation9_spill] sm:$0xff] %v7222_v21  ;;  %v2119_v9 = vpop.f32.mrf.mxu2  ;;  %v5037_v21 = vld [vmem:[%s7974_s3 + $0x310] sm:$0xf] }
 0x358   :  { %v7230_v53 = vadd.f32 %v2119_v9, %v2066_v19  ;;  %v5537_v19 = vld [vmem:[%s7974_s3 + $0x314] sm:$0x30] }
 0x359   :  { %v2067_v5 = vpop.f32.mrf.mxu0  ;;  %v5038_v2 = vor.u32 %v5537_v19, %v5037_v21  ;;  %v5021_v21 = vld [vmem:[%s7974_s3 + $0x2f0] sm:$0xf] }
 0x35a   :  { %v2068_v58 = vadd.f32 %v2067_v5, %v7996_v17  ;;  %v2326_v6 = vpop.f32.mrf.mxu3 }
 0x35b   :  { %v2327_v46 = vadd.f32 %v2326_v6, %v2272_v44  ;;  %v5023_v44 = vld [vmem:[%s7974_s3 + $0x2f8] sm:$0xf0]  ;;  %v3034_v5 = vsel %vm1569_vm2, %v5038_v2, 0 }
 0x35c   :  { %v2275_v26 = vpop.f32.mrf.mxu1  ;;  %v5026_v9 = vor.u32 %v5532_v45, %v5023_v44  ;;  %3099 = vmatpush.bf16.msrb.mxu3 %v3034_v5 }
 0x35d   :  { %v7235_v28 = vadd.f32 %v2327_v46, %v7997_v55  ;;  %v5533_v46 = vld [vmem:[%s7974_s3 + $0x2f4] sm:$0xf0] }
 0x35e   :  { %3147 = vmatpush.bf16.msrb.mxu0 %v5026_v9  ;;  %v5022_v19 = vor.u32 %v5533_v46, %v5021_v21  ;;  %v5530_v21 = vld [vmem:[%s7974_s3 + $0x2e4] sm:$0xf] }
 0x35f   :  { %7998 = vst [vmem:[#allocation7_spill] sm:$0xff] %v7235_v28  ;;  %v2121_v50 = vpop.f32.mrf.mxu2  ;;  %2658 = vmatmul.bf16.vlgmr.msra.gmra.mxu1 %v6218_v32  ;;  %4925 = vmatmul.msk.bf16.vlgmr.msra.gmra.mxu3 %vm1541_vm3, %v6220_v31 }
 0x360   :  { %v7252_v42 = vadd.f32 %v2121_v50, %v2068_v58  ;;  %3039 = vmatpush.bf16.msrb.mxu1 %v5022_v19 }
 0x361   :  { %v2378_v17 = vpop.f32.mrf.mxu0 }
 0x362   :  { %v2329_v6 = vpop.f32.mrf.mxu3 }
 0x363   :  { %v2330_v55 = vadd.f32 %v2329_v6, %v2275_v26 }
 0x364   :  { %v2277_v28 = vpop.f32.mrf.mxu1  ;;  %2417 = vmatmul.bf16.gmra.mxu0 %v6611_v12  ;;  %4824 = vmatmul.msk.bf16.gmra.mxu2 %vm1541_vm3, %v6613_v37 }
 0x365   :  { %v7265_v58 = vadd.f32 %v2330_v55, %v6979_v27  ;;  %v5015_v27 = vld [vmem:[%s7974_s3 + $0x2e8] sm:$0xf0] }
 0x366   :  { %v5018_v46 = vor.u32 %v5530_v21, %v5015_v27 }
 0x367   :  { %v2432_v45 = vpop.f32.mrf.mxu2 }
 0x368   :  { %v2433_v2 = vadd.f32 %v2432_v45, %v2378_v17  ;;  %3148 = vmatpush.bf16.msrb.mxu0 %v5018_v46 }
 0x369   :  { %v2380_v44 = vpop.f32.mrf.mxu0 }
 0x36a   :  { %v7268_v50 = vadd.f32 %v2433_v2, %v6985_v24  ;;  %v2331_v9 = vpop.f32.mrf.mxu3  ;;  %v7999_v2 = vld [vmem:[#allocation8_spill] sm:$0xff] }
 0x36b   :  { %v2332_v5 = vadd.f32 %v2331_v9, %v2277_v28 }
 0x36c   :  { %v2280_v26 = vpop.f32.mrf.mxu1 }
 0x36d   :  { %v7271_v6 = vadd.f32 %v2332_v5, %v6988_v38 }
 0x36f   :  { %v2434_v17 = vpop.f32.mrf.mxu2  ;;  %2663 = vmatmul.bf16.gmra.mxu1 %v6265_v47  ;;  %4926 = vmatmul.msk.bf16.gmra.mxu3 %vm1541_vm3, %v6267_v61 }
 0x370   :  { %v2435_v24 = vadd.f32 %v2434_v17, %v2380_v44  ;;  %v5013_v44 = vld [vmem:[%s7974_s3 + $0x2e0] sm:$0xf] }
 0x371   :  { %v2383_v28 = vpop.f32.mrf.mxu0 }
 0x372   :  { %v7283_v38 = vadd.f32 %v2435_v24, %v7000_v36  ;;  %v2334_v55 = vpop.f32.mrf.mxu3  ;;  %v5531_v36 = vld [vmem:[%s7974_s3 + $0x2e4] sm:$0xf0] }
 0x373   :  { %v2335_v19 = vadd.f32 %v2334_v55, %v2280_v26  ;;  %v5014_v5 = vor.u32 %v5531_v36, %v5013_v44  ;;  %v5528_v55 = vld [vmem:[%s7974_s3 + $0x2d4] sm:$0xf] }
 0x374   :  { %v2282_v45 = vpop.f32.mrf.mxu1  ;;  %2766 = vmatmul.bf16.vlgmr.msra.gmra.mxu0 %v6218_v32  ;;  %4934 = vmatmul.msk.bf16.vlgmr.msra.gmra.mxu2 %vm1541_vm3, %v6220_v31 }
 0x375   :  { %v7289_v9 = vadd.f32 %v2335_v19, %v7999_v2  ;;  %3040 = vmatpush.bf16.msrb.mxu1 %v5014_v5  ;;  %v5007_v19 = vld [vmem:[%s7974_s3 + $0x2d8] sm:$0xf0] }
 0x377   :  { %v2437_v21 = vpop.f32.mrf.mxu2 }
 0x378   :  { %v2438_v26 = vadd.f32 %v2437_v21, %v2383_v28  ;;  %v5010_v28 = vor.u32 %v5528_v55, %v5007_v19 }
 0x379   :  { %v2385_v27 = vpop.f32.mrf.mxu0 }
 0x37a   :  { %v7298_v32 = vadd.f32 %v2438_v26, %v7015_v57  ;;  %v2336_v31 = vpop.f32.mrf.mxu3  ;;  %3149 = vmatpush.bf16.msrb.mxu0 %v5010_v28  ;;  %v5005_v26 = vld [vmem:[%s7974_s3 + $0x2d0] sm:$0xf] }
 0x37b   :  { %v2337_v46 = vadd.f32 %v2336_v31, %v2282_v45 }
 0x37c   :  { %v2285_v17 = vpop.f32.mrf.mxu1 }
 0x37d   :  { %v7301_v24 = vadd.f32 %v2337_v46, %v7018_v62 }
 0x37f   :  { %v2439_v2 = vpop.f32.mrf.mxu2  ;;  %2668 = vmatmul.bf16.gmra.mxu1 %v6320_v20  ;;  %4927 = vmatmul.msk.bf16.gmra.mxu3 %vm1541_vm3, %v6322_v10 }
 0x380   :  { %v2440_v57 = vadd.f32 %v2439_v2, %v2385_v27 }
 0x381   :  { %v2388_v45 = vpop.f32.mrf.mxu0 }
 0x382   :  { %v7313_v62 = vadd.f32 %v2440_v57, %v7030_v43  ;;  %v2339_v44 = vpop.f32.mrf.mxu3  ;;  %v5529_v43 = vld [vmem:[%s7974_s3 + $0x2d4] sm:$0xf0] }
 0x383   :  { %v2340_v36 = vadd.f32 %v2339_v44, %v2285_v17  ;;  %v5006_v27 = vor.u32 %v5529_v43, %v5005_v26 }
 0x384   :  { %v2287_v5 = vpop.f32.mrf.mxu1  ;;  %2771 = vmatmul.bf16.gmra.mxu0 %v6265_v47  ;;  %4935 = vmatmul.msk.bf16.gmra.mxu2 %vm1541_vm3, %v6267_v61 }
 0x385   :  { %v7319_v21 = vadd.f32 %v2340_v36, %v7033_v16  ;;  %3041 = vmatpush.bf16.msrb.mxu1 %v5006_v27 }
 0x387   :  { %v2442_v31 = vpop.f32.mrf.mxu2 }
 0x388   :  { %v2443_v46 = vadd.f32 %v2442_v31, %v2388_v45  ;;  %v4997_v31 = vld [vmem:[%s7974_s3 + $0x2c0] sm:$0xf] }
 0x389   :  { %v2390_v17 = vpop.f32.mrf.mxu0 }
 0x38a   :  { %v7328_v55 = vadd.f32 %v2443_v46, %v7045_v41  ;;  %v2341_v19 = vpop.f32.mrf.mxu3  ;;  %v5526_v41 = vld [vmem:[%s7974_s3 + $0x2c4] sm:$0xf]  ;;  %v5527_v46 = vld [vmem:[%s7974_s3 + $0x2c4] sm:$0xf0] }
 0x38b   :  { %v2342_v28 = vadd.f32 %v2341_v19, %v2287_v5 }
 0x38c   :  { %v2290_v16 = vpop.f32.mrf.mxu1 }
 0x38d   :  { %v7331_v2 = vadd.f32 %v2342_v28, %v7048_v23  ;;  %v4999_v23 = vld [vmem:[%s7974_s3 + $0x2c8] sm:$0xf0] }
 0x38e   :  { %v5002_v43 = vor.u32 %v5526_v41, %v4999_v23  ;;  %v5534_v23 = vld [vmem:[%s7974_s3 + $0x304] sm:$0xf] }
 0x38f   :  { %v2444_v57 = vpop.f32.mrf.mxu2  ;;  %2673 = vmatmul.bf16.gmra.mxu1 %v6377_v30  ;;  %4928 = vmatmul.msk.bf16.gmra.mxu3 %vm1541_vm3, %v6379_v56 }
 0x390   :  { %v2445_v44 = vadd.f32 %v2444_v57, %v2390_v17  ;;  %3150 = vmatpush.bf16.msrb.mxu0 %v5002_v43  ;;  %v4998_v17 = vor.u32 %v5527_v46, %v4997_v31 }
 0x391   :  { %v2393_v36 = vpop.f32.mrf.mxu0 }
 0x392   :  { %v7337_v45 = vadd.f32 %v2445_v44, %v7054_v29  ;;  %v2344_v26 = vpop.f32.mrf.mxu3  ;;  %3042 = vmatpush.bf16.msrb.mxu1 %v4998_v17 }
 0x393   :  { %v2345_v5 = vadd.f32 %v2344_v26, %v2290_v16 }
 0x394   :  { %v2292_v27 = vpop.f32.mrf.mxu1  ;;  %2776 = vmatmul.bf16.gmra.mxu0 %v6320_v20  ;;  %4936 = vmatmul.msk.bf16.gmra.mxu2 %vm1541_vm3, %v6322_v10 }
 0x395   :  { %v7349_v29 = vadd.f32 %v2345_v5, %v7063_v49  ;;  %v5031_v5 = vld [vmem:[%s7974_s3 + $0x308] sm:$0xf0] }
 0x397   :  { %v2447_v19 = vpop.f32.mrf.mxu2 }
 0x398   :  { %v2448_v28 = vadd.f32 %v2447_v19, %v2393_v36  ;;  %v5034_v36 = vor.u32 %v5534_v23, %v5031_v5 }
 0x399   :  { %v2395_v16 = vpop.f32.mrf.mxu0 }
 0x39a   :  { %v7358_v57 = vadd.f32 %v2448_v28, %v7075_v18  ;;  %v2346_v44 = vpop.f32.mrf.mxu3  ;;  %3208 = vmatpush.bf16.msrb.mxu2 %v5034_v36  ;;  %v5029_v28 = vld [vmem:[%s7974_s3 + $0x300] sm:$0xf] }
 0x39b   :  { %v2347_v49 = vadd.f32 %v2346_v44, %v2292_v27 }
 0x39c   :  { %v2295_v26 = vpop.f32.mrf.mxu1 }
 0x39d   :  { %v7361_v41 = vadd.f32 %v2347_v49, %v7078_v25  ;;  %v4991_v49 = vld [vmem:[%s7974_s3 + $0x2b8] sm:$0xf0] }
 0x39f   :  { %v2449_v43 = vpop.f32.mrf.mxu2  ;;  %2678 = vmatmul.bf16.gmra.mxu1 %v6424_v11  ;;  %4929 = vmatmul.msk.bf16.gmra.mxu3 %vm1541_vm3, %v6426_v13 }
 0x3a0   :  { %v2450_v18 = vadd.f32 %v2449_v43, %v2395_v16  ;;  %v5524_v16 = vld [vmem:[%s7974_s3 + $0x2b4] sm:$0xf] }
 0x3a1   :  { %v2398_v27 = vpop.f32.mrf.mxu0 }
 0x3a2   :  { %v7373_v25 = vadd.f32 %v2450_v18, %v7090_v14  ;;  %v2349_v31 = vpop.f32.mrf.mxu3  ;;  %v5535_v14 = vld [vmem:[%s7974_s3 + $0x304] sm:$0xf0]  ;;  %v4989_v18 = vld [vmem:[%s7974_s3 + $0x2b0] sm:$0xf] }
 0x3a3   :  { %v2350_v46 = vadd.f32 %v2349_v31, %v2295_v26  ;;  %v5030_v44 = vor.u32 %v5535_v14, %v5029_v28  ;;  %v5525_v31 = vld [vmem:[%s7974_s3 + $0x2b4] sm:$0xf0] }
 0x3a4   :  { %v2297_v17 = vpop.f32.mrf.mxu1  ;;  %2781 = vmatmul.bf16.gmra.mxu0 %v6377_v30  ;;  %4937 = vmatmul.msk.bf16.gmra.mxu2 %vm1541_vm3, %v6379_v56  ;;  %v4990_v28 = vor.u32 %v5525_v31, %v4989_v18 }
 0x3a5   :  { %v7379_v19 = vadd.f32 %v2350_v46, %v7093_v33  ;;  %v4994_v33 = vor.u32 %v5524_v16, %v4991_v49  ;;  %3100 = vmatpush.bf16.msrb.mxu3 %v5030_v44 }
 0x3a6   :  { %3043 = vmatpush.bf16.msrb.mxu1 %v4990_v28 }
 0x3a7   :  { %v2452_v26 = vpop.f32.mrf.mxu2  ;;  %3151 = vmatpush.bf16.msrb.mxu0 %v4994_v33 }
 0x3a8   :  { %v2453_v23 = vadd.f32 %v2452_v26, %v2398_v27 }
 0x3a9   :  { %v2400_v5 = vpop.f32.mrf.mxu0 }
 0x3aa   :  { %v7394_v36 = vadd.f32 %v2453_v23, %v7111_v35  ;;  %v2351_v43 = vpop.f32.mrf.mxu3  ;;  %v5522_v23 = vld [vmem:[%s7974_s3 + $0x2a4] sm:$0xf] }
 0x3ab   :  { %v2352_v46 = vadd.f32 %v2351_v43, %v2297_v17 }
 0x3ac   :  { %v2300_v14 = vpop.f32.mrf.mxu1 }
 0x3ad   :  { %v7403_v27 = vadd.f32 %v2352_v46, %v7120_v39 }
 0x3af   :  { %v2454_v16 = vpop.f32.mrf.mxu2  ;;  %2683 = vmatmul.bf16.gmra.mxu1 %v6483_v3  ;;  %4930 = vmatmul.msk.bf16.gmra.mxu3 %vm1541_vm3, %v6485_v63 }
 0x3b0   :  { %v2455_v35 = vadd.f32 %v2454_v16, %v2400_v5 }
 0x3b1   :  { %v2403_v44 = vpop.f32.mrf.mxu0 }
 0x3b2   :  { %v7409_v49 = vadd.f32 %v2455_v35, %v7126_v48  ;;  %v2354_v26 = vpop.f32.mrf.mxu3  ;;  %v4983_v48 = vld [vmem:[%s7974_s3 + $0x2a8] sm:$0xf0]  ;;  %v4981_v35 = vld [vmem:[%s7974_s3 + $0x2a0] sm:$0xf] }
 0x3b3   :  { %v2355_v33 = vadd.f32 %v2354_v26, %v2300_v14  ;;  %v4986_v5 = vor.u32 %v5522_v23, %v4983_v48  ;;  %v5523_v26 = vld [vmem:[%s7974_s3 + $0x2a4] sm:$0xf0] }
 0x3b4   :  { %v2302_v17 = vpop.f32.mrf.mxu1  ;;  %2786 = vmatmul.bf16.gmra.mxu0 %v6424_v11  ;;  %4938 = vmatmul.msk.bf16.gmra.mxu2 %vm1541_vm3, %v6426_v13 }
 0x3b5   :  { %v7415_v39 = vadd.f32 %v2355_v33, %v7129_v52  ;;  %3152 = vmatpush.bf16.msrb.mxu0 %v4986_v5 }
 0x3b7   :  { %v2457_v43 = vpop.f32.mrf.mxu2 }
 0x3b8   :  { %v2458_v18 = vadd.f32 %v2457_v43, %v2403_v44  ;;  %v4982_v44 = vor.u32 %v5523_v26, %v4981_v35 }
 0x3b9   :  { %v2405_v31 = vpop.f32.mrf.mxu0 }
 0x3ba   :  { %v7424_v46 = vadd.f32 %v2458_v18, %v7141_v22  ;;  %v2356_v28 = vpop.f32.mrf.mxu3  ;;  %3044 = vmatpush.bf16.msrb.mxu1 %v4982_v44  ;;  %v5520_v18 = vld [vmem:[%s7974_s3 + $0x294] sm:$0xf]  ;;  %v4965_v44 = vld [vmem:[%s7974_s3 + $0x280] sm:$0xf] }
 0x3bb   :  { %v2357_v14 = vadd.f32 %v2356_v28, %v2302_v17 }
 0x3bc   :  { %v2305_v52 = vpop.f32.mrf.mxu1 }
 0x3bd   :  { %v7427_v16 = vadd.f32 %v2357_v14, %v7144_v7  ;;  %v5521_v14 = vld [vmem:[%s7974_s3 + $0x294] sm:$0xf0] }
 0x3bf   :  { %v2459_v33 = vpop.f32.mrf.mxu2  ;;  %2688 = vmatmul.bf16.gmra.mxu1 %v6531_v4  ;;  %4931 = vmatmul.msk.bf16.gmra.mxu3 %vm1541_vm3, %v6533_v59 }
 0x3c0   :  { %v2460_v22 = vadd.f32 %v2459_v33, %v2405_v31  ;;  %v4973_v31 = vld [vmem:[%s7974_s3 + $0x290] sm:$0xf]  ;;  %v5519_v33 = vld [vmem:[%s7974_s3 + $0x284] sm:$0xf0] }
 0x3c1   :  { %v2408_v17 = vpop.f32.mrf.mxu0 }
 0x3c2   :  { %v7439_v7 = vadd.f32 %v2460_v22, %v7156_v0  ;;  %v2359_v23 = vpop.f32.mrf.mxu3  ;;  %v4975_v0 = vld [vmem:[%s7974_s3 + $0x298] sm:$0xf0] }
 0x3c3   :  { %v2360_v48 = vadd.f32 %v2359_v23, %v2305_v52  ;;  %v4978_v28 = vor.u32 %v5520_v18, %v4975_v0 }
 0x3c4   :  { %v2307_v5 = vpop.f32.mrf.mxu1  ;;  %2791 = vmatmul.bf16.gmra.mxu0 %v6483_v3  ;;  %4939 = vmatmul.msk.bf16.gmra.mxu2 %vm1541_vm3, %v6485_v63 }
 0x3c5   :  { %v7445_v43 = vadd.f32 %v2360_v48, %v7159_v51  ;;  %v4974_v51 = vor.u32 %v5521_v14, %v4973_v31  ;;  %3153 = vmatpush.bf16.msrb.mxu0 %v4978_v28  ;;  %v4966_v48 = vor.u32 %v5519_v33, %v4965_v44 }
 0x3c7   :  { %v2462_v52 = vpop.f32.mrf.mxu2  ;;  %3045 = vmatpush.bf16.msrb.mxu1 %v4974_v51 }
 0x3c8   :  { %v2463_v35 = vadd.f32 %v2462_v52, %v2408_v17 }
 0x3c9   :  { %v2410_v26 = vpop.f32.mrf.mxu0 }
 0x3ca   :  { %v7466_v22 = vadd.f32 %v2463_v35, %v7177_v34  ;;  %v2361_v23 = vpop.f32.mrf.mxu3 }
 0x3cb   :  { %v2362_v18 = vadd.f32 %v2361_v23, %v2307_v5  ;;  %3046 = vmatpush.bf16.msrb.mxu1 %v4966_v48  ;;  %v4967_v48 = vld [vmem:[%s7974_s3 + $0x288] sm:$0xf0] }
 0x3cc   :  { %v2310_v0 = vpop.f32.mrf.mxu1 }
 0x3cd   :  { %v7469_v17 = vadd.f32 %v2362_v18, %v7186_v60 }
 0x3cf   :  { %8000 = vst [vmem:[#allocation6_spill] sm:$0xff] %v7469_v17  ;;  %v2464_v31 = vpop.f32.mrf.mxu2  ;;  %2693 = vmatmul.bf16.gmra.mxu1 %v6611_v12  ;;  %4932 = vmatmul.msk.bf16.gmra.mxu3 %vm1541_vm3, %v6613_v37 }
 0x3d0   :  { %v2465_v28 = vadd.f32 %v2464_v31, %v2410_v26 }
 0x3d1   :  { %v2413_v14 = vpop.f32.mrf.mxu0 }
 0x3d2   :  { %v7475_v52 = vadd.f32 %v2465_v28, %v7192_v1  ;;  %v2364_v34 = vpop.f32.mrf.mxu3  ;;  %v5518_v1 = vld [vmem:[%s7974_s3 + $0x284] sm:$0xf] }
 0x3d3   :  { %v2365_v51 = vadd.f32 %v2364_v34, %v2310_v0  ;;  %v4970_v0 = vor.u32 %v5518_v1, %v4967_v48 }
 0x3d4   :  { %v2312_v35 = vpop.f32.mrf.mxu1  ;;  %2796 = vmatmul.bf16.gmra.mxu0 %v6531_v4  ;;  %4940 = vmatmul.msk.bf16.gmra.mxu2 %vm1541_vm3, %v6533_v59 }
 0x3d5   :  { %v7481_v60 = vadd.f32 %v2365_v51, %v7195_v15  ;;  %3154 = vmatpush.bf16.msrb.mxu0 %v4970_v0 }
 0x3d7   :  { %v2467_v5 = vpop.f32.mrf.mxu2 }
 0x3d8   :  { %v2468_v44 = vadd.f32 %v2467_v5, %v2413_v14  ;;  %v8001_v14 = vld [vmem:[#allocation2_spill] sm:$0xff] }
 0x3d9   :  { %v2415_v33 = vpop.f32.mrf.mxu0 }
 0x3da   :  { %v7484_v26 = vadd.f32 %v2468_v44, %v7201_v40  ;;  %v2366_v23 = vpop.f32.mrf.mxu3  ;;  %v8002_v40 = vld [vmem:[#allocation3_spill] sm:$0xff] }
 0x3db   :  { %v2367_v18 = vadd.f32 %v2366_v23, %v2312_v35 }
 0x3dc   :  { %v2659_v31 = vpop.f32.mrf.mxu1 }
 0x3dd   :  { %v7493_v15 = vadd.f32 %v2367_v18, %v7210_v8  ;;  %v8003_v8 = vld [vmem:[#allocation9_spill] sm:$0xff] }
 0x3df   :  { %v2469_v28 = vpop.f32.mrf.mxu2  ;;  %2698 = vmatmul.bf16.gmra.mxu1 %v8001_v14  ;;  %4933 = vmatmul.msk.bf16.gmra.mxu3 %vm1541_vm3, %v8002_v40 }
 0x3e0   :  { %v2470_v34 = vadd.f32 %v2469_v28, %v2415_v33 }
 0x3e1   :  { %v2418_v51 = vpop.f32.mrf.mxu0 }
 0x3e2   :  { %v7499_v5 = vadd.f32 %v2470_v34, %v7215_v54  ;;  %v2713_v44 = vpop.f32.mrf.mxu3  ;;  %v8004_v34 = vld [vmem:[#allocation7_spill] sm:$0xff] }
 0x3e3   :  { %v2714_v17 = vadd.f32 %v2713_v44, %v2659_v31 }
 0x3e4   :  { %v2661_v35 = vpop.f32.mrf.mxu1  ;;  %2801 = vmatmul.bf16.gmra.mxu0 %v6611_v12  ;;  %4941 = vmatmul.msk.bf16.gmra.mxu2 %vm1541_vm3, %v6613_v37 }
 0x3e5   :  { %v7505_v23 = vadd.f32 %v2714_v17, %v8003_v8 }
 0x3e7   :  { %v2472_v1 = vpop.f32.mrf.mxu2 }
 0x3e8   :  { %v2473_v48 = vadd.f32 %v2472_v1, %v2418_v51 }
 0x3e9   :  { %v2420_v18 = vpop.f32.mrf.mxu0 }
 0x3ea   :  { %v7508_v33 = vadd.f32 %v2473_v48, %v7230_v53  ;;  %v2715_v0 = vpop.f32.mrf.mxu3 }
 0x3eb   :  { %v2716_v54 = vadd.f32 %v2715_v0, %v2661_v35 }
 0x3ec   :  { %v2664_v28 = vpop.f32.mrf.mxu1 }
 0x3ed   :  { %v7511_v31 = vadd.f32 %v2716_v54, %v8004_v34 }
 0x3ef   :  { %v2474_v44 = vpop.f32.mrf.mxu2  ;;  %3047 = vmatmul.bf16.vlgmr.msrb.gmra.mxu1 %v6265_v47  ;;  %5043 = vmatmul.msk.bf16.vlgmr.msrb.gmra.mxu3 %vm1541_vm3, %v6267_v61 }
 0x3f0   :  { %v2475_v17 = vadd.f32 %v2474_v44, %v2420_v18 }
 0x3f1   :  { %v2767_v8 = vpop.f32.mrf.mxu0 }
 0x3f2   :  { %v7517_v51 = vadd.f32 %v2475_v17, %v7252_v42  ;;  %v2718_v1 = vpop.f32.mrf.mxu3 }
 0x3f3   :  { %v2719_v53 = vadd.f32 %v2718_v1, %v2664_v28 }
 0x3f4   :  { %v2666_v48 = vpop.f32.mrf.mxu1  ;;  %2806 = vmatmul.bf16.gmra.mxu0 %v8001_v14  ;;  %4942 = vmatmul.msk.bf16.gmra.mxu2 %vm1541_vm3, %v8002_v40 }
 0x3f5   :  { %v7523_v35 = vadd.f32 %v2719_v53, %v7265_v58 }
 0x3f7   :  { %v2821_v0 = vpop.f32.mrf.mxu2 }
 0x3f8   :  { %v2822_v54 = vadd.f32 %v2821_v0, %v2767_v8 }
 0x3f9   :  { %v2769_v34 = vpop.f32.mrf.mxu0 }
 0x3fa   :  { %v7526_v18 = vadd.f32 %v2822_v54, %v7268_v50  ;;  %v2720_v44 = vpop.f32.mrf.mxu3 }
 0x3fb   :  { %v2721_v42 = vadd.f32 %v2720_v44, %v2666_v48 }
 0x3fc   :  { %v2669_v17 = vpop.f32.mrf.mxu1 }
 0x3fd   :  { %v7529_v28 = vadd.f32 %v2721_v42, %v7271_v6 }
 0x3ff   :  { %v2823_v1 = vpop.f32.mrf.mxu2  ;;  %3052 = vmatmul.bf16.gmra.mxu1 %v6320_v20  ;;  %5044 = vmatmul.msk.bf16.gmra.mxu3 %vm1541_vm3, %v6322_v10 }
 0x400   :  { %v2824_v58 = vadd.f32 %v2823_v1, %v2769_v34 }
 0x401   :  { %v2772_v53 = vpop.f32.mrf.mxu0 }
 0x402   :  { %v7535_v8 = vadd.f32 %v2824_v58, %v7283_v38  ;;  %v2723_v0 = vpop.f32.mrf.mxu3 }
 0x403   :  { %v2724_v50 = vadd.f32 %v2723_v0, %v2669_v17 }
 0x404   :  { %v2671_v54 = vpop.f32.mrf.mxu1  ;;  %3155 = vmatmul.bf16.vlgmr.msrb.gmra.mxu0 %v6265_v47  ;;  %5052 = vmatmul.msk.bf16.vlgmr.msrb.gmra.mxu2 %vm1541_vm3, %v6267_v61 }
 0x405   :  { %v7541_v6 = vadd.f32 %v2724_v50, %v7289_v9 }
 0x407   :  { %v2826_v48 = vpop.f32.mrf.mxu2 }
 0x408   :  { %v2827_v44 = vadd.f32 %v2826_v48, %v2772_v53 }
 0x409   :  { %v2774_v42 = vpop.f32.mrf.mxu0 }
 0x40a   :  { %v7544_v34 = vadd.f32 %v2827_v44, %v7298_v32  ;;  %v2725_v1 = vpop.f32.mrf.mxu3 }
 0x40b   :  { %v2726_v38 = vadd.f32 %v2725_v1, %v2671_v54 }
 0x40c   :  { %v2674_v58 = vpop.f32.mrf.mxu1 }
 0x40d   :  { %v7547_v17 = vadd.f32 %v2726_v38, %v7301_v24 }
 0x40f   :  { %v2828_v0 = vpop.f32.mrf.mxu2  ;;  %3057 = vmatmul.bf16.gmra.mxu1 %v6377_v30  ;;  %5045 = vmatmul.msk.bf16.gmra.mxu3 %vm1541_vm3, %v6379_v56 }
 0x410   :  { %v2829_v47 = vadd.f32 %v2828_v0, %v2774_v42 }
 0x411   :  { %v2777_v61 = vpop.f32.mrf.mxu0 }
 0x412   :  { %v7553_v9 = vadd.f32 %v2829_v47, %v7313_v62  ;;  %v2728_v53 = vpop.f32.mrf.mxu3 }
 0x413   :  { %v2729_v32 = vadd.f32 %v2728_v53, %v2674_v58 }
 0x414   :  { %v2676_v50 = vpop.f32.mrf.mxu1  ;;  %3160 = vmatmul.bf16.gmra.mxu0 %v6320_v20  ;;  %5053 = vmatmul.msk.bf16.gmra.mxu2 %vm1541_vm3, %v6322_v10 }
 0x415   :  { %v7559_v24 = vadd.f32 %v2729_v32, %v7319_v21 }
 0x417   :  { %v2831_v54 = vpop.f32.mrf.mxu2 }
 0x418   :  { %v2832_v48 = vadd.f32 %v2831_v54, %v2777_v61 }
 0x419   :  { %v2779_v44 = vpop.f32.mrf.mxu0 }
 0x41a   :  { %v7562_v42 = vadd.f32 %v2832_v48, %v7328_v55  ;;  %v2730_v1 = vpop.f32.mrf.mxu3 }
 0x41b   :  { %v2731_v62 = vadd.f32 %v2730_v1, %v2676_v50 }
 0x41c   :  { %v2679_v38 = vpop.f32.mrf.mxu1 }
 0x41d   :  { %v7565_v58 = vadd.f32 %v2731_v62, %v7331_v2 }
 0x41f   :  { %v2833_v0 = vpop.f32.mrf.mxu2  ;;  %3062 = vmatmul.bf16.gmra.mxu1 %v6424_v11  ;;  %5046 = vmatmul.msk.bf16.gmra.mxu3 %vm1541_vm3, %v6426_v13 }
 0x420   :  { %v2834_v20 = vadd.f32 %v2833_v0, %v2779_v44 }
 0x421   :  { %v2782_v10 = vpop.f32.mrf.mxu0 }
 0x422   :  { %v7571_v21 = vadd.f32 %v2834_v20, %v7337_v45  ;;  %v2733_v47 = vpop.f32.mrf.mxu3 }
 0x423   :  { %v2734_v55 = vadd.f32 %v2733_v47, %v2679_v38 }
 0x424   :  { %v2681_v61 = vpop.f32.mrf.mxu1  ;;  %3165 = vmatmul.bf16.gmra.mxu0 %v6377_v30  ;;  %5054 = vmatmul.msk.bf16.gmra.mxu2 %vm1541_vm3, %v6379_v56 }
 0x425   :  { %v7577_v2 = vadd.f32 %v2734_v55, %v7349_v29 }
 0x427   :  { %v2836_v53 = vpop.f32.mrf.mxu2 }
 0x428   :  { %v2837_v32 = vadd.f32 %v2836_v53, %v2782_v10 }
 0x429   :  { %v2784_v50 = vpop.f32.mrf.mxu0 }
 0x42a   :  { %v7580_v54 = vadd.f32 %v2837_v32, %v7358_v57  ;;  %v2735_v48 = vpop.f32.mrf.mxu3 }
 0x42b   :  { %v2736_v45 = vadd.f32 %v2735_v48, %v2681_v61 }
 0x42c   :  { %v2684_v44 = vpop.f32.mrf.mxu1 }
 0x42d   :  { %v7583_v1 = vadd.f32 %v2736_v45, %v7361_v41 }
 0x42f   :  { %v2838_v62 = vpop.f32.mrf.mxu2  ;;  %3067 = vmatmul.bf16.gmra.mxu1 %v6483_v3  ;;  %5047 = vmatmul.msk.bf16.gmra.mxu3 %vm1541_vm3, %v6485_v63 }
 0x430   :  { %v2839_v30 = vadd.f32 %v2838_v62, %v2784_v50 }
 0x431   :  { %v2787_v56 = vpop.f32.mrf.mxu0 }
 0x432   :  { %v7589_v29 = vadd.f32 %v2839_v30, %v7373_v25  ;;  %v2738_v38 = vpop.f32.mrf.mxu3 }
 0x433   :  { %v2739_v57 = vadd.f32 %v2738_v38, %v2684_v44 }
 0x434   :  { %v2686_v0 = vpop.f32.mrf.mxu1  ;;  %3170 = vmatmul.bf16.gmra.mxu0 %v6424_v11  ;;  %5055 = vmatmul.msk.bf16.gmra.mxu2 %vm1541_vm3, %v6426_v13 }
 0x435   :  { %v7595_v41 = vadd.f32 %v2739_v57, %v7379_v19  ;;  %v5555_v57 = vld [vmem:[%s7976_s5 + $0x88] sm:$0xff] }
 0x436   :  { %3525 = vmatpush.bf16.msra.mxu3 %v5555_v57  ;;  %v5541_v57 = vld [vmem:[%s7976_s5 + $0x18] sm:$0xff] }
 0x437   :  { %v2841_v20 = vpop.f32.mrf.mxu2 }
 0x438   :  { %v2842_v10 = vadd.f32 %v2841_v20, %v2787_v56 }
 0x439   :  { %v2789_v47 = vpop.f32.mrf.mxu0 }
 0x43a   :  { %v7598_v55 = vadd.f32 %v2842_v10, %v7394_v36  ;;  %v2740_v61 = vpop.f32.mrf.mxu3  ;;  %v5545_v10 = vld [vmem:[%s7976_s5 + $0x38] sm:$0xff] }
 0x43b   :  { %v2741_v25 = vadd.f32 %v2740_v61, %v2686_v0  ;;  %3589 = vmatpush.bf16.msra.mxu0 %v5545_v10 }
 0x43c   :  { %v2689_v53 = vpop.f32.mrf.mxu1 }
 0x43d   :  { %v7601_v32 = vadd.f32 %v2741_v25, %v7403_v27 }
 0x43f   :  { %v2843_v50 = vpop.f32.mrf.mxu2  ;;  %3072 = vmatmul.bf16.gmra.mxu1 %v6531_v4  ;;  %5048 = vmatmul.msk.bf16.gmra.mxu3 %vm1541_vm3, %v6533_v59 }
 0x440   :  { %v2844_v11 = vadd.f32 %v2843_v50, %v2789_v47 }
 0x441   :  { %v2792_v13 = vpop.f32.mrf.mxu0 }
 0x442   :  { %v7607_v19 = vadd.f32 %v2844_v11, %v7409_v49  ;;  %v2743_v48 = vpop.f32.mrf.mxu3 }
 0x443   :  { %v2744_v36 = vadd.f32 %v2743_v48, %v2689_v53 }
 0x444   :  { %v7609_v45 = vpop.f32.mrf.mxu1  ;;  %3175 = vmatmul.bf16.gmra.mxu0 %v6483_v3  ;;  %5056 = vmatmul.msk.bf16.gmra.mxu2 %vm1541_vm3, %v6485_v63 }
 0x445   :  { %v7615_v27 = vadd.f32 %v2744_v36, %v7415_v39 }
 0x447   :  { %v2846_v44 = vpop.f32.mrf.mxu2 }
 0x448   :  { %v2847_v62 = vadd.f32 %v2846_v44, %v2792_v13 }
 0x449   :  { %v2794_v30 = vpop.f32.mrf.mxu0 }
 0x44a   :  { %v7618_v56 = vadd.f32 %v2847_v62, %v7424_v46  ;;  %v7620_v49 = vpop.f32.mrf.mxu3 }
 0x44c   :  { %v2694_v38 = vpop.f32.mrf.mxu1 }
 0x44f   :  { %v2848_v3 = vpop.f32.mrf.mxu2  ;;  %3077 = vmatmul.bf16.gmra.mxu1 %v6611_v12  ;;  %5049 = vmatmul.msk.bf16.gmra.mxu3 %vm1541_vm3, %v6613_v37 }
 0x450   :  { %v2849_v63 = vadd.f32 %v2848_v3, %v2794_v30 }
 0x451   :  { %v2797_v39 = vpop.f32.mrf.mxu0 }
 0x452   :  { %v7629_v0 = vadd.f32 %v2849_v63, %v7439_v7  ;;  %v2748_v46 = vpop.f32.mrf.mxu3  ;;  %v5544_v7 = vld [vmem:[%s7976_s5 + $0x30] sm:$0xff] }
 0x453   :  { %v2749_v20 = vadd.f32 %v2748_v46, %v2694_v38  ;;  %3590 = vmatpush.bf16.msra.mxu0 %v5544_v7  ;;  %v5540_v46 = vld [vmem:[%s7976_s5 + $0x10] sm:$0xff] }
 0x454   :  { %v7634_v47 = vpop.f32.mrf.mxu1  ;;  %3180 = vmatmul.bf16.gmra.mxu0 %v6531_v4  ;;  %5057 = vmatmul.msk.bf16.gmra.mxu2 %vm1541_vm3, %v6533_v59  ;;  %v5554_v4 = vld [vmem:[%s7976_s5 + $0x80] sm:$0xff]  ;;  %v5543_v59 = vld [vmem:[%s7976_s5 + $0x28] sm:$0xff] }
 0x455   :  { %v7640_v61 = vadd.f32 %v2749_v20, %v7445_v43  ;;  %3504 = vmatpush.bf16.msra.mxu1 %v5554_v4  ;;  %v8006_v4 = vld [vmem:[#allocation5_spill] sm:$0xff] }
 0x457   :  { %v2851_v25 = vpop.f32.mrf.mxu2  ;;  %3591 = vmatpush.bf16.msra.mxu0 %v5543_v59  ;;  %v5552_v59 = vld [vmem:[%s7976_s5 + $0x70] sm:$0xff] }
 0x458   :  { %v2852_v53 = vadd.f32 %v2851_v25, %v2797_v39  ;;  %v5539_v25 = vld [vmem:[%s7976_s5 + $0x8] sm:$0xff] }
 0x459   :  { %v2799_v50 = vpop.f32.mrf.mxu0 }
 0x45a   :  { %v7646_v11 = vadd.f32 %v2852_v53, %v7466_v22  ;;  %v7648_v13 = vpop.f32.mrf.mxu3  ;;  %v5542_v22 = vld [vmem:[%s7976_s5 + $0x20] sm:$0xff] }
 0x45b   :  { %3592 = vmatpush.bf16.msra.mxu0 %v5542_v22 }
 0x45c   :  { %v2699_v43 = vpop.f32.mrf.mxu1 }
 0x45f   :  { %v2853_v48 = vpop.f32.mrf.mxu2  ;;  %3082 = vmatmul.bf16.gmra.mxu1 %v8001_v14  ;;  %5050 = vmatmul.msk.bf16.gmra.mxu3 %vm1541_vm3, %v8002_v40 }
 0x460   :  { %v2854_v36 = vadd.f32 %v2853_v48, %v2799_v50  ;;  %3593 = vmatpush.bf16.msra.mxu0 %v5541_v57  ;;  %v8005_v50 = vld [vmem:[#allocation4_spill] sm:$0xff] }
 0x461   :  { %v2802_v44 = vpop.f32.mrf.mxu0 }
 0x462   :  { %v7663_v62 = vadd.f32 %v2854_v36, %v7475_v52  ;;  %v2753_v30 = vpop.f32.mrf.mxu3  ;;  %v5563_v52 = vld [vmem:[%s7976_s5 + $0xc8] sm:$0xff]  ;;  %v3291_v36 = vld [vmem:[%s7977_s4] sm:$0x3] }
 0x463   :  { %v2754_v38 = vadd.f32 %v2753_v30, %v2699_v43  ;;  %3695 = vmatpush.bf16.msra.mxu2 %v5563_v52  ;;  %v5551_v30 = vld [vmem:[%s7976_s5 + $0x68] sm:$0xff]  ;;  %v7716_v57 = vperm.slane %v3291_v36, 0 }
 0x464   :  { %v7668_v3 = vpop.f32.mrf.mxu1  ;;  %3185 = vmatmul.bf16.gmra.mxu0 %v6611_v12  ;;  %5058 = vmatmul.msk.bf16.gmra.mxu2 %vm1541_vm3, %v6613_v37  ;;  %v5553_v12 = vld [vmem:[%s7976_s5 + $0x78] sm:$0xff] }
 0x465   :  { %v7674_v63 = vadd.f32 %v2754_v38, %v7481_v60  ;;  %3594 = vmatpush.bf16.msra.mxu0 %v5540_v46  ;;  %3505 = vmatpush.bf16.msra.mxu1 %v5553_v12  ;;  %v5550_v46 = vld [vmem:[%s7976_s5 + $0x60] sm:$0xff] }
 0x466   :  { %v5562_v12 = vld [vmem:[%s7976_s5 + $0xc0] sm:$0xff] }
 0x467   :  { %v2856_v39 = vpop.f32.mrf.mxu2  ;;  %3696 = vmatpush.bf16.msra.mxu2 %v5562_v12 }
 0x468   :  { %v2857_v20 = vadd.f32 %v2856_v39, %v2802_v44 }
 0x469   :  { %v7682_v10 = vpop.f32.mrf.mxu0  ;;  %3595 = vmatpush.bf16.msra.mxu0 %v5539_v25  ;;  %3506 = vmatpush.bf16.msra.mxu1 %v5552_v59 }
 0x46a   :  { %v7688_v37 = vadd.f32 %v2857_v20, %v7484_v26  ;;  %v7690_v60 = vpop.f32.mrf.mxu3  ;;  %v5538_v26 = vld [vmem:[%s7976_s5] sm:$0xff] }
 0x46c   :  { %v3048_v7 = vpop.f32.mrf.mxu1 }
 0x46d   :  { %3596 = vmatpush.bf16.msra.mxu0 %v5538_v26  ;;  %3507 = vmatpush.bf16.msra.mxu1 %v5551_v30  ;;  %v5549_v26 = vld [vmem:[%s7976_s5 + $0x58] sm:$0xff]  ;;  %v5548_v30 = vld [vmem:[%s7976_s5 + $0x50] sm:$0xff] }
 0x46f   :  { %v7695_v53 = vpop.f32.mrf.mxu2  ;;  %3087 = vmatmul.bf16.gmra.mxu1 %v8005_v50  ;;  %5051 = vmatmul.msk.bf16.gmra.mxu3 %vm1541_vm3, %v8006_v4 }
 0x471   :  { %v2807_v43 = vpop.f32.mrf.mxu0  ;;  %3508 = vmatpush.bf16.msra.mxu1 %v5550_v46 }
 0x472   :  { %v3102_v48 = vpop.f32.mrf.mxu3 }
 0x473   :  { %v3103_v22 = vadd.f32 %v3102_v48, %v3048_v7 }
 0x474   :  { %v3050_v44 = vpop.f32.mrf.mxu1  ;;  %3190 = vmatmul.bf16.gmra.mxu0 %v8001_v14  ;;  %5059 = vmatmul.msk.bf16.gmra.mxu2 %vm1541_vm3, %v8002_v40 }
 0x475   :  { %v3255_v38 = vadd.f32 %v3103_v22, %v7505_v23  ;;  %3509 = vmatpush.bf16.msra.mxu1 %v5549_v26  ;;  %v5561_v26 = vld [vmem:[%s7976_s5 + $0xb8] sm:$0xff] }
 0x476   :  { %3697 = vmatpush.bf16.msra.mxu2 %v5561_v26 }
 0x477   :  { %v2861_v52 = vpop.f32.mrf.mxu2  ;;  %v3297_v23 = vadd.f32 %v7716_v57, %v3255_v38 }
 0x478   :  { %v2862_v39 = vadd.f32 %v2861_v52, %v2807_v43 }
 0x479   :  { %v2809_v20 = vpop.f32.mrf.mxu0  ;;  %3510 = vmatpush.bf16.msra.mxu1 %v5548_v30 }
 0x47a   :  { %v7722_v14 = vadd.f32 %v2862_v39, %v7508_v33  ;;  %v3104_v40 = vpop.f32.mrf.mxu3  ;;  %v3333_v33 = vmax.f32 %v3297_v23, 0.0 }
 0x47b   :  { %v3105_v25 = vadd.f32 %v3104_v40, %v3050_v44 }
 0x47c   :  { %v3053_v7 = vpop.f32.mrf.mxu1  ;;  %v3369_v46 = vmul.f32 0.5, %v3333_v33  ;;  %v7749_v33 = vperm.slane %v3291_v36, 1  ;;  %v5546_v36 = vld [vmem:[%s7976_s5 + $0x40] sm:$0xff] }
 0x47d   :  { %v3257_v59 = vadd.f32 %v3105_v25, %v7511_v31 }
 0x47f   :  { %v3299_v43 = vadd.f32 %v7716_v57, %v3257_v59  ;;  %v2863_v48 = vpop.f32.mrf.mxu2 }
 0x480   :  { %v2864_v22 = vadd.f32 %v2863_v48, %v2809_v20  ;;  %v5547_v20 = vld [vmem:[%s7976_s5 + $0x48] sm:$0xff] }
 0x481   :  { %v3335_v38 = vmax.f32 %v3299_v43, 0.0  ;;  %v3156_v44 = vpop.f32.mrf.mxu0  ;;  %3511 = vmatpush.bf16.msra.mxu1 %v5547_v20 }
 0x482   :  { %v7737_v52 = vadd.f32 %v2864_v22, %v7517_v51  ;;  %v3107_v39 = vpop.f32.mrf.mxu3 }
 0x483   :  { %v3371_v40 = vmul.f32 0.5, %v3335_v38  ;;  %v3108_v43 = vadd.f32 %v3107_v39, %v3053_v7 }
 0x484   :  { %8007 = vst [vmem:[#allocation8_spill] sm:$0xff] %v7737_v52  ;;  %v3055_v31 = vpop.f32.mrf.mxu1  ;;  %3195 = vmatmul.bf16.gmra.mxu0 %v8005_v50  ;;  %5060 = vmatmul.msk.bf16.gmra.mxu2 %vm1541_vm3, %v8006_v4 }
 0x485   :  { %v3405_v12 = vpack.c.bf16 %v3371_v40, %v3369_v46  ;;  %v3259_v38 = vadd.f32 %v3108_v43, %v7523_v35  ;;  %3610 = vmatpush.bf16.msrb.mxu1 %v5546_v36 }
 0x487   :  { %v3210_v23 = vpop.f32.mrf.mxu2  ;;  %v3301_v35 = vadd.f32 %v7716_v57, %v3259_v38 }
 0x488   :  { %v3211_v25 = vadd.f32 %v3210_v23, %v3156_v44 }
 0x489   :  { %v3158_v51 = vpop.f32.mrf.mxu0  ;;  %v3337_v43 = vmax.f32 %v3301_v35, 0.0 }
 0x48a   :  { %v3109_v59 = vpop.f32.mrf.mxu3  ;;  %v3256_v50 = vadd.f32 %v3211_v25, %v7526_v18  ;;  %v5560_v18 = vld [vmem:[%s7976_s5 + $0xb0] sm:$0xff] }
 0x48b   :  { %v3110_v7 = vadd.f32 %v3109_v59, %v3055_v31  ;;  %3698 = vmatpush.bf16.msra.mxu2 %v5560_v18  ;;  %v5557_v18 = vld [vmem:[%s7976_s5 + $0x98] sm:$0xff] }
 0x48c   :  { %v3058_v4 = vpop.f32.mrf.mxu1  ;;  %v3298_v22 = vadd.f32 %v7749_v33, %v3256_v50 }
 0x48e   :  { %v3334_v23 = vmax.f32 %v3298_v22, 0.0 }
 0x48f   :  { %v3212_v48 = vpop.f32.mrf.mxu2 }
 0x490   :  { %v3213_v30 = vadd.f32 %v3212_v48, %v3158_v51  ;;  %v3261_v48 = vadd.f32 %v3110_v7, %v7529_v28 }
 0x491   :  { %v3161_v44 = vpop.f32.mrf.mxu0 }
 0x492   :  { %v3258_v46 = vadd.f32 %v3213_v30, %v7535_v8  ;;  %v3112_v40 = vpop.f32.mrf.mxu3 }
 0x493   :  { %v3113_v20 = vadd.f32 %v3112_v40, %v3058_v4  ;;  %v5559_v4 = vld [vmem:[%s7976_s5 + $0xa8] sm:$0xff]  ;;  %v5558_v40 = vld [vmem:[%s7976_s5 + $0xa0] sm:$0xff] }
 0x494   :  { %v3300_v26 = vadd.f32 %v7749_v33, %v3258_v46  ;;  %v3060_v52 = vpop.f32.mrf.mxu1  ;;  %3597 = vmatmul.bf16.vlgmr.msra.gmra.mxu0 %v3405_v12  ;;  %v7764_v12 = vmul.f32 0.5, %v3334_v23  ;;  %3699 = vmatpush.bf16.msra.mxu2 %v5559_v4 }
 0x495   :  { %v3263_v8 = vadd.f32 %v3113_v20, %v7541_v6  ;;  %v3303_v20 = vadd.f32 %v7716_v57, %v3261_v48 }
 0x496   :  { %v3336_v39 = vmax.f32 %v3300_v26, 0.0 }
 0x497   :  { %v3305_v25 = vadd.f32 %v7716_v57, %v3263_v8  ;;  %v3215_v51 = vpop.f32.mrf.mxu2  ;;  %v3339_v36 = vmax.f32 %v3303_v20, 0.0 }
 0x498   :  { %v7766_v50 = vmul.f32 0.5, %v3336_v39  ;;  %3700 = vmatpush.bf16.msra.mxu2 %v5558_v40  ;;  %v3216_v7 = vadd.f32 %v3215_v51, %v3161_v44  ;;  %v5572_v44 = vld [vmem:[%s7976_s5 + $0x110] sm:$0xff] }
 0x499   :  { %v3341_v31 = vmax.f32 %v3305_v25, 0.0  ;;  %v3163_v59 = vpop.f32.mrf.mxu0 }
 0x49a   :  { %v3406_v6 = vpack.c.bf16 %v7766_v50, %v7764_v12  ;;  %v3114_v22 = vpop.f32.mrf.mxu3  ;;  %v3260_v48 = vadd.f32 %v3216_v7, %v7544_v34 }
 0x49b   :  { %v3373_v30 = vadd.f32 %v3341_v31, %v3337_v43  ;;  %v3115_v38 = vadd.f32 %v3114_v22, %v3060_v52 }
 0x49c   :  { %v3063_v46 = vpop.f32.mrf.mxu1  ;;  %3701 = vmatpush.bf16.msra.mxu2 %v5557_v18  ;;  %v3302_v40 = vadd.f32 %v7749_v33, %v3260_v48  ;;  %v5571_v18 = vld [vmem:[%s7976_s5 + $0x108] sm:$0xff] }
 0x49d   :  { %v3265_v23 = vadd.f32 %v3115_v38, %v7547_v17  ;;  %v5556_v17 = vld [vmem:[%s7976_s5 + $0x90] sm:$0xff]  ;;  %v3377_v4 = vmul.f32 0.5, %v3373_v30 }
 0x49f   :  { %v3307_v28 = vadd.f32 %v7716_v57, %v3265_v23  ;;  %v3217_v26 = vpop.f32.mrf.mxu2 }
 0x4a0   :  { %3702 = vmatpush.bf16.msra.mxu2 %v5556_v17  ;;  %v3218_v20 = vadd.f32 %v3217_v26, %v3163_v59 }
 0x4a1   :  { %v3343_v35 = vmax.f32 %v3307_v28, 0.0  ;;  %v3166_v52 = vpop.f32.mrf.mxu0 }
 0x4a2   :  { %v3117_v8 = vpop.f32.mrf.mxu3 }
 0x4a3   :  { %v3375_v39 = vadd.f32 %v3343_v35, %v3339_v36  ;;  %v3118_v36 = vadd.f32 %v3117_v8, %v3063_v46  ;;  %v3338_v35 = vmax.f32 %v3302_v40, 0.0 }
 0x4a4   :  { %v3065_v25 = vpop.f32.mrf.mxu1 }
 0x4a5   :  { %v3379_v43 = vmul.f32 0.5, %v3375_v39  ;;  %v3267_v26 = vadd.f32 %v3118_v36, %v7559_v24 }
 0x4a7   :  { %v3425_v31 = vpack.c.bf16 %v3379_v43, %v3377_v4  ;;  %v3220_v22 = vpop.f32.mrf.mxu2 }
 0x4a8   :  { %v3221_v38 = vadd.f32 %v3220_v22, %v3166_v52  ;;  %v3262_v52 = vadd.f32 %v3218_v20, %v7553_v9  ;;  %v5569_v22 = vld [vmem:[%s7976_s5 + $0xf8] sm:$0xff] }
 0x4a9   :  { %v3168_v51 = vpop.f32.mrf.mxu0  ;;  %3512 = vmatmul.bf16.vlgmr.msra.gmra.mxu1 %v3425_v31 }
 0x4aa   :  { %v3264_v23 = vadd.f32 %v3221_v38, %v7562_v42  ;;  %v3119_v28 = vpop.f32.mrf.mxu3  ;;  %3803 = vmatpush.bf16.msra.mxu1 %v5572_v44  ;;  %v5570_v42 = vld [vmem:[%s7976_s5 + $0x100] sm:$0xff]  ;;  %v3304_v43 = vadd.f32 %v7749_v33, %v3262_v52  ;;  %v3309_v38 = vadd.f32 %v7716_v57, %v3267_v26 }
 0x4ab   :  { %v3120_v44 = vadd.f32 %v3119_v28, %v3065_v25  ;;  %v5566_v26 = vld [vmem:[%s7976_s5 + $0xe0] sm:$0xff] }
 0x4ac   :  { %v3306_v30 = vadd.f32 %v7749_v33, %v3264_v23  ;;  %v3068_v34 = vpop.f32.mrf.mxu1 }
 0x4ae   :  { %v3342_v7 = vmax.f32 %v3306_v30, 0.0  ;;  %3804 = vmatpush.bf16.msra.mxu1 %v5571_v18  ;;  %v5568_v30 = vld [vmem:[%s7976_s5 + $0xf0] sm:$0xff]  ;;  %v3269_v18 = vadd.f32 %v3120_v44, %v7565_v58 }
 0x4af   :  { %v3222_v39 = vpop.f32.mrf.mxu2 }
 0x4b0   :  { %v3374_v17 = vadd.f32 %v3342_v7, %v3338_v35  ;;  %v3223_v59 = vadd.f32 %v3222_v39, %v3168_v51  ;;  %v3340_v51 = vmax.f32 %v3304_v43, 0.0  ;;  %v3311_v12 = vadd.f32 %v7716_v57, %v3269_v18 }
 0x4b1   :  { %v3171_v4 = vpop.f32.mrf.mxu0 }
 0x4b2   :  { %v3266_v48 = vadd.f32 %v3223_v59, %v7571_v21  ;;  %v3122_v46 = vpop.f32.mrf.mxu3  ;;  %3805 = vmatpush.bf16.msra.mxu1 %v5570_v42  ;;  %v3378_v25 = vmul.f32 0.5, %v3374_v17  ;;  %v5567_v42 = vld [vmem:[%s7976_s5 + $0xe8] sm:$0xff]  ;;  %v3347_v43 = vmax.f32 %v3311_v12, 0.0 }
 0x4b3   :  { %v3123_v8 = vadd.f32 %v3122_v46, %v3068_v34  ;;  %v3345_v34 = vmax.f32 %v3309_v38, 0.0 }
 0x4b4   :  { %v3308_v9 = vadd.f32 %v7749_v33, %v3266_v48  ;;  %v3070_v31 = vpop.f32.mrf.mxu1 }
 0x4b5   :  { %v3271_v24 = vadd.f32 %v3123_v8, %v7577_v2  ;;  %v5564_v2 = vld [vmem:[%s7976_s5 + $0xd0] sm:$0xff] }
 0x4b6   :  { %v3344_v40 = vmax.f32 %v3308_v9, 0.0  ;;  %3806 = vmatpush.bf16.msra.mxu1 %v5569_v22  ;;  %3716 = vmatpush.bf16.msrb.mxu3 %v5564_v2  ;;  %v5580_v2 = vld [vmem:[%s7976_s5 + $0x150] sm:$0xff] }
 0x4b7   :  { %v3313_v21 = vadd.f32 %v7716_v57, %v3271_v24  ;;  %v3225_v20 = vpop.f32.mrf.mxu2 }
 0x4b8   :  { %v3376_v23 = vadd.f32 %v3344_v40, %v3340_v51  ;;  %v3226_v8 = vadd.f32 %v3225_v20, %v3171_v4  ;;  %v5581_v4 = vld [vmem:[%s7976_s5 + $0x158] sm:$0xff] }
 0x4b9   :  { %v3349_v36 = vmax.f32 %v3313_v21, 0.0  ;;  %v3173_v35 = vpop.f32.mrf.mxu0  ;;  %5152 = vmatmul.msk.bf16.vlgmr.msrb.gmra.mxu1 %vm3500_vm4, %v3406_v6  ;;  %3911 = vmatpush.bf16.msrb.mxu0 %v5581_v4 }
 0x4ba   :  { %v3380_v28 = vmul.f32 0.5, %v3376_v23  ;;  %v3124_v52 = vpop.f32.mrf.mxu3  ;;  %3807 = vmatpush.bf16.msra.mxu1 %v5568_v30  ;;  %v3268_v24 = vadd.f32 %v3226_v8, %v7580_v54 }
 0x4bb   :  { %v3381_v7 = vadd.f32 %v3349_v36, %v3345_v34  ;;  %v3125_v39 = vadd.f32 %v3124_v52, %v3070_v31 }
 0x4bc   :  { %v3426_v59 = vpack.c.bf16 %v3380_v28, %v3378_v25  ;;  %v3073_v58 = vpop.f32.mrf.mxu1  ;;  %v3310_v23 = vadd.f32 %v7749_v33, %v3268_v24 }
 0x4bd   :  { %v3273_v50 = vadd.f32 %v3125_v39, %v7583_v1  ;;  %v5565_v1 = vld [vmem:[%s7976_s5 + $0xd8] sm:$0xff]  ;;  %v3385_v38 = vmul.f32 0.5, %v3381_v7  ;;  %3912 = vmatpush.bf16.msrb.mxu0 %v5580_v2 }
 0x4be   :  { %5115 = vmatmul.msk.bf16.vlgmr.msra.gmra.mxu3 %vm3500_vm4, %v3426_v59  ;;  %3808 = vmatpush.bf16.msra.mxu1 %v5567_v42  ;;  %v3346_v28 = vmax.f32 %v3310_v23, 0.0 }
 0x4bf   :  { %v3315_v6 = vadd.f32 %v7716_v57, %v3273_v50  ;;  %v3227_v17 = vpop.f32.mrf.mxu2 }
 0x4c0   :  { %v3228_v30 = vadd.f32 %v3227_v17, %v3173_v35 }
 0x4c1   :  { %v3351_v48 = vmax.f32 %v3315_v6, 0.0  ;;  %v3176_v46 = vpop.f32.mrf.mxu0 }
 0x4c2   :  { %v3127_v9 = vpop.f32.mrf.mxu3  ;;  %3809 = vmatpush.bf16.msra.mxu1 %v5566_v26  ;;  %v3270_v52 = vadd.f32 %v3228_v30, %v7589_v29 }
 0x4c3   :  { %v3383_v31 = vadd.f32 %v3351_v48, %v3347_v43  ;;  %v3128_v25 = vadd.f32 %v3127_v9, %v3073_v58  ;;  %v5578_v43 = vld [vmem:[%s7976_s5 + $0x140] sm:$0xff] }
 0x4c4   :  { %v3075_v22 = vpop.f32.mrf.mxu1  ;;  %v3312_v50 = vadd.f32 %v7749_v33, %v3270_v52 }
 0x4c5   :  { %v3387_v44 = vmul.f32 0.5, %v3383_v31  ;;  %v3275_v42 = vadd.f32 %v3128_v25, %v7595_v41 }
 0x4c6   :  { %3810 = vmatpush.bf16.msra.mxu1 %v5565_v1  ;;  %v3348_v8 = vmax.f32 %v3312_v50, 0.0 }
 0x4c7   :  { %v3617_v51 = vpack.c.bf16 %v3387_v44, %v3385_v38  ;;  %v3230_v40 = vpop.f32.mrf.mxu2  ;;  %v3317_v48 = vadd.f32 %v7716_v57, %v3275_v42  ;;  %v5577_v44 = vld [vmem:[%s7976_s5 + $0x138] sm:$0xff] }
 0x4c8   :  { %v3231_v21 = vadd.f32 %v3230_v40, %v3176_v46 }
 0x4c9   :  { %v3178_v20 = vpop.f32.mrf.mxu0  ;;  %3703 = vmatmul.bf16.vlgmr.msra.gmra.mxu2 %v3617_v51  ;;  %v3353_v24 = vmax.f32 %v3317_v48, 0.0 }
 0x4ca   :  { %v3272_v34 = vadd.f32 %v3231_v21, %v7598_v55  ;;  %v3129_v18 = vpop.f32.mrf.mxu3  ;;  %v5579_v55 = vld [vmem:[%s7976_s5 + $0x148] sm:$0xff] }
 0x4cb   :  { %3913 = vmatpush.bf16.msrb.mxu0 %v5579_v55  ;;  %v3130_v46 = vadd.f32 %v3129_v18, %v3075_v22 }
 0x4cc   :  { %v3314_v36 = vadd.f32 %v7749_v33, %v3272_v34  ;;  %v3078_v54 = vpop.f32.mrf.mxu1 }
 0x4cd   :  { %v3277_v51 = vadd.f32 %v3130_v46, %v7601_v32  ;;  %v5576_v32 = vld [vmem:[%s7976_s5 + $0x130] sm:$0xff] }
 0x4ce   :  { %v3350_v7 = vmax.f32 %v3314_v36, 0.0 }
 0x4cf   :  { %v3232_v39 = vpop.f32.mrf.mxu2  ;;  %3914 = vmatpush.bf16.msrb.mxu0 %v5578_v43  ;;  %v3319_v18 = vadd.f32 %v7716_v57, %v3277_v51 }
 0x4d0   :  { %v3382_v59 = vadd.f32 %v3350_v7, %v3346_v28  ;;  %v3233_v35 = vadd.f32 %v3232_v39, %v3178_v20 }
 0x4d1   :  { %v3181_v12 = vpop.f32.mrf.mxu0  ;;  %v3355_v25 = vmax.f32 %v3319_v18, 0.0 }
 0x4d2   :  { %v3274_v6 = vadd.f32 %v3233_v35, %v7607_v19  ;;  %v3132_v58 = vpop.f32.mrf.mxu3  ;;  %v2746_v19 = vadd.f32 %v7620_v49, %v7609_v45  ;;  %v3386_v21 = vmul.f32 0.5, %v3382_v59  ;;  %v5574_v35 = vld [vmem:[%s7976_s5 + $0x120] sm:$0xff] }
 0x4d3   :  { %v3133_v17 = vadd.f32 %v3132_v58, %v3078_v54  ;;  %3915 = vmatpush.bf16.msrb.mxu0 %v5577_v44 }
 0x4d4   :  { %v3316_v29 = vadd.f32 %v7749_v33, %v3274_v6  ;;  %v3080_v26 = vpop.f32.mrf.mxu1  ;;  %v2892_v49 = vadd.f32 %v2746_v19, %v7427_v16  ;;  %v5575_v16 = vld [vmem:[%s7976_s5 + $0x128] sm:$0xff] }
 0x4d5   :  { %v3279_v41 = vadd.f32 %v3133_v17, %v7615_v27  ;;  %v5573_v27 = vld [vmem:[%s7976_s5 + $0x118] sm:$0xff] }
 0x4d6   :  { %v3352_v9 = vmax.f32 %v3316_v29, 0.0  ;;  %3824 = vmatpush.bf16.msra.mxu3 %v5573_v27  ;;  %v5582_v27 = vld [vmem:[%s7976_s5 + $0x160] sm:$0xff] }
 0x4d7   :  { %v3321_v31 = vadd.f32 %v7716_v57, %v3279_v41  ;;  %v3235_v1 = vpop.f32.mrf.mxu2  ;;  %3916 = vmatpush.bf16.msrb.mxu0 %v5576_v32  ;;  %3932 = vmatpush.bf16.msrb.mxu2 %v5582_v27 }
 0x4d8   :  { %v3384_v38 = vadd.f32 %v3352_v9, %v3348_v8  ;;  %v3236_v7 = vadd.f32 %v3235_v1, %v3181_v12 }
 0x4d9   :  { %v3357_v22 = vmax.f32 %v3321_v31, 0.0  ;;  %v3183_v40 = vpop.f32.mrf.mxu0 }
 0x4da   :  { %v3388_v4 = vmul.f32 0.5, %v3384_v38  ;;  %v3134_v45 = vpop.f32.mrf.mxu3  ;;  %v3276_v50 = vadd.f32 %v3236_v7, %v7618_v56 }
 0x4db   :  { %v3389_v20 = vadd.f32 %v3357_v22, %v3353_v24  ;;  %v3135_v23 = vadd.f32 %v3134_v45, %v3080_v26  ;;  %3917 = vmatpush.bf16.msrb.mxu0 %v5575_v16 }
 0x4dc   :  { %v3618_v30 = vpack.c.bf16 %v3388_v4, %v3386_v21  ;;  %v3083_v34 = vpop.f32.mrf.mxu1  ;;  %v3318_v12 = vadd.f32 %v7749_v33, %v3276_v50 }
 0x4dd   :  { %v3281_v36 = vadd.f32 %v3135_v23, %v2892_v49  ;;  %v3393_v55 = vmul.f32 0.5, %v3389_v20 }
 0x4de   :  { %5207 = vmatmul.msk.bf16.vlgmr.msrb.gmra.mxu3 %vm3500_vm4, %v3618_v30  ;;  %v3354_v9 = vmax.f32 %v3318_v12, 0.0 }
 0x4df   :  { %v3323_v54 = vadd.f32 %v7716_v57, %v3281_v36  ;;  %v3237_v2 = vpop.f32.mrf.mxu2  ;;  %3918 = vmatpush.bf16.msrb.mxu0 %v5574_v35 }
 0x4e0   :  { %v3238_v43 = vadd.f32 %v3237_v2, %v3183_v40 }
 0x4e1   :  { %v3359_v28 = vmax.f32 %v3323_v54, 0.0  ;;  %v3186_v52 = vpop.f32.mrf.mxu0 }
 0x4e2   :  { %v3137_v39 = vpop.f32.mrf.mxu3  ;;  %v3278_v19 = vadd.f32 %v3238_v43, %v7629_v0  ;;  %v2751_v0 = vadd.f32 %v7648_v13, %v7634_v47 }
 0x4e3   :  { %v3391_v59 = vadd.f32 %v3359_v28, %v3355_v25  ;;  %v3138_v8 = vadd.f32 %v3137_v39, %v3083_v34  ;;  %v2756_v34 = vadd.f32 %v7690_v60, %v7668_v3 }
 0x4e4   :  { %v3085_v6 = vpop.f32.mrf.mxu1  ;;  %v3320_v22 = vadd.f32 %v7749_v33, %v3278_v19 }
 0x4e5   :  { %v3395_v42 = vmul.f32 0.5, %v3391_v59  ;;  %v3283_v24 = vadd.f32 %v3138_v8, %v7640_v61 }
 0x4e6   :  { %v3356_v20 = vmax.f32 %v3320_v22, 0.0 }
 0x4e7   :  { %v3725_v58 = vpack.c.bf16 %v3395_v42, %v3393_v55  ;;  %v3240_v17 = vpop.f32.mrf.mxu2  ;;  %v3325_v45 = vadd.f32 %v7716_v57, %v3283_v24 }
 0x4e8   :  { %v3241_v29 = vadd.f32 %v3240_v17, %v3186_v52 }
 0x4e9   :  { %v3188_v26 = vpop.f32.mrf.mxu0  ;;  %3811 = vmatmul.bf16.vlgmr.msra.gmra.mxu1 %v3725_v58  ;;  %v3361_v13 = vmax.f32 %v3325_v45, 0.0 }
 0x4ea   :  { %v3280_v48 = vadd.f32 %v3241_v29, %v7646_v11  ;;  %v3139_v46 = vpop.f32.mrf.mxu3 }
 0x4eb   :  { %v3140_v61 = vadd.f32 %v3139_v46, %v3085_v6 }
 0x4ec   :  { %v3322_v41 = vadd.f32 %v7749_v33, %v3280_v48  ;;  %v3088_v38 = vpop.f32.mrf.mxu1  ;;  %v2859_v48 = vadd.f32 %v7695_v53, %v7682_v10  ;;  %v8009_v53 = vld [vmem:[#allocation8_spill] sm:$0xff] }
 0x4ee   :  { %v3358_v56 = vmax.f32 %v3322_v41, 0.0 }
 0x4ef   :  { %v3242_v31 = vpop.f32.mrf.mxu2 }
 0x4f0   :  { %v3390_v1 = vadd.f32 %v3358_v56, %v3354_v9  ;;  %v3243_v44 = vadd.f32 %v3242_v31, %v3188_v26  ;;  %v2897_v9 = vadd.f32 %v2859_v48, %v7499_v5 }
 0x4f1   :  { %v3191_v51 = vpop.f32.mrf.mxu0 }
 0x4f2   :  { %v3282_v40 = vadd.f32 %v3243_v44, %v7663_v62  ;;  %v3142_v11 = vpop.f32.mrf.mxu3  ;;  %v8008_v62 = vld [vmem:[#allocation6_spill] sm:$0xff]  ;;  %v3394_v2 = vmul.f32 0.5, %v3390_v1 }
 0x4f3   :  { %v3143_v21 = vadd.f32 %v3142_v11, %v3088_v38  ;;  %v2896_v30 = vadd.f32 %v2751_v0, %v8008_v62 }
 0x4f4   :  { %v3324_v4 = vadd.f32 %v7749_v33, %v3282_v40  ;;  %v3090_v25 = vpop.f32.mrf.mxu1 }
 0x4f5   :  { %v3287_v49 = vadd.f32 %v3143_v21, %v7674_v63  ;;  %v3285_v36 = vadd.f32 %v3140_v61, %v2896_v30  ;;  %v2900_v63 = vadd.f32 %v2756_v34, %v7493_v15  ;;  %v3964_v21 = vld [vmem:[%s7980_s7 + $0x38] sm:$0xf]  ;;  %v5587_v34 = vld [vmem:[%s7980_s7 + $0x20] sm:$0xff] }
 0x4f6   :  { %v3360_v23 = vmax.f32 %v3324_v4, 0.0  ;;  %v3998_v4 = vunpack.c.l.b16 %v3964_v21 }
 0x4f7   :  { %v3329_v32 = vadd.f32 %v7716_v57, %v3287_v49  ;;  %v3245_v18 = vpop.f32.mrf.mxu2  ;;  %v3327_v35 = vadd.f32 %v7716_v57, %v3285_v36  ;;  %v5584_v36 = vld [vmem:[%s7980_s7 + $0x8] sm:$0xff] }
 0x4f8   :  { %v3392_v47 = vadd.f32 %v3360_v23, %v3356_v20  ;;  %v3246_v6 = vadd.f32 %v3245_v18, %v3191_v51  ;;  %v4006_v45 = vpack.c.b16 %v3998_v4, %v3998_v4  ;;  %v5588_v23 = vld [vmem:[%s7980_s7 + $0x28] sm:$0xff]  ;;  %v5596_v4 = vld [vmem:[%s7979_s8] ss:$0 sm:$0xff] }
 0x4f9   :  { %v3365_v54 = vmax.f32 %v3329_v32, 0.0  ;;  %v3193_v7 = vpop.f32.mrf.mxu0  ;;  %v3363_v42 = vmax.f32 %v3327_v35, 0.0  ;;  %v5586_v32 = vld [vmem:[%s7980_s7 + $0x18] sm:$0xff] }
 0x4fa   :  { %v3396_v16 = vmul.f32 0.5, %v3392_v47  ;;  %v3144_v28 = vpop.f32.mrf.mxu3  ;;  %v3284_v15 = vadd.f32 %v3246_v6, %v7688_v37  ;;  %v4020_v61 = vsel %vm4018_vm5, %v4006_v45, 0  ;;  %v5585_v47 = vld [vmem:[%s7980_s7 + $0x10] sm:$0xff] }
 0x4fb   :  { %v3397_v52 = vadd.f32 %v3365_v54, %v3361_v13  ;;  %v3145_v39 = vadd.f32 %v3144_v28, %v3090_v25  ;;  %4022 = vmatpush.bf16.msrb.mxu3 %v4020_v61 }
 0x4fc   :  { %v3726_v59 = vpack.c.bf16 %v3396_v16, %v3394_v2  ;;  %v3326_v41 = vadd.f32 %v7749_v33, %v3284_v15  ;;  %v5583_v16 = vld [vmem:[%s7980_s7] sm:$0xff] }
 0x4fd   :  { %v3289_v3 = vadd.f32 %v3145_v39, %v2900_v63  ;;  %v3401_v17 = vmul.f32 0.5, %v3397_v52  ;;  %v4049_v63 = vld [vmem:[%s7981_s9 + $0x28] sm:$0x3] }
 0x4fe   :  { %5262 = vmatmul.msk.bf16.vlgmr.msra.gmra.mxu3 %vm3500_vm4, %v3726_v59  ;;  %v3362_v56 = vmax.f32 %v3326_v41, 0.0  ;;  %v4075_v52 = vunpack.c.l.b16 %v4049_v63 }
 0x4ff   :  { %v3331_v60 = vadd.f32 %v7716_v57, %v3289_v3  ;;  %v3247_v55 = vpop.f32.mrf.mxu2 }
 0x500   :  { %v3248_v57 = vadd.f32 %v3247_v55, %v3193_v7  ;;  %v4081_v39 = vpack.c.b16 %v4075_v52, %v4075_v52  ;;  %v5594_v55 = vld [vmem:[%s7981_s9 + $0x20] sm:$0xff] }
 0x501   :  { %v3367_v50 = vmax.f32 %v3331_v60, 0.0  ;;  %v3196_v26 = vpop.f32.mrf.mxu0 }
 0x502   :  { %v3286_v31 = vadd.f32 %v3248_v57, %v2897_v9  ;;  %v4093_v3 = vsel %vm4091_vm6, %v4081_v39, 0 }
 0x503   :  { %v3399_v58 = vadd.f32 %v3367_v50, %v3363_v42  ;;  %4097 = vmatpush.bf16.msra.mxu2 %v4093_v3 }
 0x504   :  { %v3328_v10 = vadd.f32 %v7749_v33, %v3286_v31 }
 0x505   :  { %v3403_v29 = vmul.f32 0.5, %v3399_v58 }
 0x506   :  { %v3364_v40 = vmax.f32 %v3328_v10, 0.0 }
 0x507   :  { %v3833_v12 = vpack.c.bf16 %v3403_v29, %v3401_v17  ;;  %v3250_v43 = vpop.f32.mrf.mxu2  ;;  %4098 = vmatpush.bf16.msra.mxu2 %v5594_v55 }
 0x508   :  { %v3251_v46 = vadd.f32 %v3250_v43, %v3196_v26 }
 0x509   :  { %3919 = vmatmul.bf16.vlgmr.msrb.gmra.mxu0 %v3833_v12  ;;  %v3198_v37 = vpop.f32.mrf.mxu0 }
 0x50a   :  { %v3288_v8 = vadd.f32 %v3251_v46, %v7722_v14 }
 0x50c   :  { %v3330_v19 = vadd.f32 %v7749_v33, %v3288_v8 }
 0x50e   :  { %v3366_v1 = vmax.f32 %v3330_v19, 0.0 }
 0x50f   :  { %v3252_v38 = vpop.f32.mrf.mxu2 }
 0x510   :  { %v3398_v44 = vadd.f32 %v3366_v1, %v3362_v56  ;;  %v3253_v24 = vadd.f32 %v3252_v38, %v3198_v37  ;;  %v5595_v1 = vld [vmem:[%s7978_s6] ss:$0 sm:$0xff] }
 0x511   :  { %v3598_v54 = vpop.f32.mrf.mxu0 }
 0x512   :  { %v3290_v51 = vadd.f32 %v3253_v24, %v8009_v53  ;;  %v3402_v27 = vmul.f32 0.5, %v3398_v44 }
 0x514   :  { %v3332_v22 = vadd.f32 %v7749_v33, %v3290_v51  ;;  %v5589_v33 = vld [vmem:[%s7980_s7 + $0x30] sm:$0xff] }
 0x515   :  { %4023 = vmatpush.bf16.msrb.mxu3 %v5589_v33 }
 0x516   :  { %v3368_v11 = vmax.f32 %v3332_v22, 0.0 }
 0x518   :  { %v3400_v14 = vadd.f32 %v3368_v11, %v3364_v40 }
 0x519   :  { %4024 = vmatpush.bf16.msrb.mxu3 %v5588_v23  ;;  %v3600_v7 = vpop.f32.mrf.mxu0 }
 0x51a   :  { %v3404_v5 = vmul.f32 0.5, %v3400_v14  ;;  %v5593_v14 = vld [vmem:[%s7981_s9 + $0x18] sm:$0xff] }
 0x51b   :  { %4099 = vmatpush.bf16.msra.mxu2 %v5593_v14 }
 0x51c   :  { %v3834_v0 = vpack.c.bf16 %v3404_v5, %v3402_v27  ;;  %v5592_v27 = vld [vmem:[%s7981_s9 + $0x10] sm:$0xff]  ;;  %v5591_v5 = vld [vmem:[%s7981_s9 + $0x8] sm:$0xff] }
 0x51d   :  { %4025 = vmatpush.bf16.msrb.mxu3 %v5587_v34 }
 0x51e   :  { %5317 = vmatmul.msk.bf16.vlgmr.msrb.gmra.mxu2 %vm3500_vm4, %v3834_v0  ;;  %v5590_v0 = vld [vmem:[%s7981_s9] sm:$0xff] }
 0x51f   :  { %4100 = vmatpush.bf16.msra.mxu2 %v5592_v27 }
 0x521   :  { %4026 = vmatpush.bf16.msrb.mxu3 %v5586_v32 }
 0x523   :  { %4101 = vmatpush.bf16.msra.mxu2 %v5591_v5 }
 0x525   :  { %4027 = vmatpush.bf16.msrb.mxu3 %v5585_v47 }
 0x526   :  { %v3513_v49 = vpop.f32.mrf.mxu1 }
 0x527   :  { %4102 = vmatpush.bf16.msra.mxu2 %v5590_v0 }
 0x529   :  { %4028 = vmatpush.bf16.msrb.mxu3 %v5584_v36 }
 0x52d   :  { %4029 = vmatpush.bf16.msrb.mxu3 %v5583_v16 }
 0x52e   :  { %v3515_v62 = vpop.f32.mrf.mxu1 }
 0x536   :  { %v3612_v13 = vpop.f32.mrf.mxu1 }
 0x53e   :  { %v3614_v28 = vpop.f32.mrf.mxu1 }
 0x541   :  { %v3527_v20 = vpop.f32.mrf.mxu3 }
 0x542   :  { %v3528_v60 = vadd.f32 %v3527_v20, %v3513_v49 }
 0x544   :  { %v3599_v50 = vadd.f32 %v3598_v54, %v3528_v60 }
 0x546   :  { %v3613_v15 = vadd.f32 %v3612_v13, %v3599_v50 }
 0x549   :  { %v3529_v30 = vpop.f32.mrf.mxu3 }
 0x54a   :  { %v3530_v6 = vadd.f32 %v3529_v30, %v3515_v62  ;;  %v5597_v62 = vld [vmem:[%s7982_s10] ss:$0 sm:$0xff] }
 0x54c   :  { %v3704_v2 = vpop.f32.mrf.mxu2  ;;  %v3601_v26 = vadd.f32 %v3600_v7, %v3530_v6 }
 0x54e   :  { %v3615_v8 = vadd.f32 %v3614_v28, %v3601_v26 }
 0x554   :  { %v3706_v59 = vpop.f32.mrf.mxu2 }
 0x561   :  { %v3718_v18 = vpop.f32.mrf.mxu3 }
 0x562   :  { %v3719_v17 = vadd.f32 %v3718_v18, %v3704_v2 }
 0x564   :  { %v3723_v48 = vadd.f32 %v3719_v17, %v3613_v15 }
 0x566   :  { %v3812_v42 = vpop.f32.mrf.mxu1 }
 0x569   :  { %v3720_v25 = vpop.f32.mrf.mxu3 }
 0x56a   :  { %v3721_v46 = vadd.f32 %v3720_v25, %v3706_v59 }
 0x56c   :  { %v3724_v56 = vadd.f32 %v3721_v46, %v3615_v8 }
 0x56e   :  { %v3814_v57 = vpop.f32.mrf.mxu1 }
 0x581   :  { %v3826_v35 = vpop.f32.mrf.mxu3 }
 0x582   :  { %v3827_v12 = vadd.f32 %v3826_v35, %v3812_v42 }
 0x584   :  { %v3831_v9 = vadd.f32 %v3827_v12, %v3723_v48 }
 0x586   :  { %v3920_v58 = vpop.f32.mrf.mxu0 }
 0x589   :  { %v3828_v43 = vpop.f32.mrf.mxu3 }
 0x58a   :  { %v3829_v19 = vadd.f32 %v3828_v43, %v3814_v57 }
 0x58c   :  { %v3832_v44 = vadd.f32 %v3829_v19, %v3724_v56 }
 0x58e   :  { %v3922_v37 = vpop.f32.mrf.mxu0 }
 0x5a1   :  { %v3934_v29 = vpop.f32.mrf.mxu2 }
 0x5a2   :  { %v3935_v41 = vadd.f32 %v3934_v29, %v3920_v58 }
 0x5a4   :  { %v3939_v31 = vadd.f32 %v3935_v41, %v3831_v9 }
 0x5a6   :  { %v3945_v10 = vadd.f32 %v5595_v1, %v3939_v31 }
 0x5a8   :  { %v3947_v22 = vmax.f32 %v3945_v10, 0.0 }
 0x5a9   :  { %v3936_v38 = vpop.f32.mrf.mxu2 }
 0x5aa   :  { %v3937_v24 = vadd.f32 %v3936_v38, %v3922_v37 }
 0x5ac   :  { %v3940_v53 = vadd.f32 %v3937_v24, %v3832_v44 }
 0x5ae   :  { %v3946_v51 = vadd.f32 %v5595_v1, %v3940_v53 }
 0x5b0   :  { %v3948_v40 = vmax.f32 %v3946_v51, 0.0 }
 0x5b2   :  { %v3949_v11 = vpack.c.bf16 %v3948_v40, %v3947_v22 }
 0x5b4   :  { %5346 = vmatmul.msk.bf16.vlgmr.msrb.gmra.mxu3 %vm4014_vm7, %v3949_v11 }
 0x637   :  { %v4031_v21 = vpop.f32.mrf.mxu3 }
 0x638   :  { %v4032_v45 = vadd.f32 %v5596_v4, %v4031_v21 }
 0x63a   :  { %v4036_v49 = vmax.f32 %v4032_v45, 0.0 }
 0x63f   :  { %v4033_v61 = vpop.f32.mrf.mxu3 }
 0x640   :  { %v4034_v33 = vadd.f32 %v5596_v4, %v4033_v61 }
 0x642   :  { %v4037_v20 = vmax.f32 %v4034_v33, 0.0 }
 0x644   :  { %v4038_v23 = vpack.c.bf16 %v4037_v20, %v4036_v49 }
 0x646   :  { %5367 = vmatmul.msk.bf16.vlgmr.msra.gmra.mxu2 %vm4087_vm8, %v4038_v23 }
 0x6c9   :  { %v4104_v30 = vpop.f32.mrf.mxu2 }
 0x6ca   :  { %v4105_v34 = vadd.f32 %v5597_v62, %v4104_v30 }
 0x6cc   :  { %4109 = vmax.xlane.f32.xlu0 %v4105_v34 }
 0x6d1   :  { %v4106_v32 = vpop.f32.mrf.mxu2 }
 0x6d2   :  { %v4107_v18 = vadd.f32 %v5597_v62, %v4106_v32 }
 0x6d4   :  { %4111 = vmax.xlane.f32.xlu0 %v4107_v18 }
 0x73f   :  { %v4110_v47 = vpop.xlane.xlu0 %4109 }
 0x740   :  { %v4113_v13 = vsub.f32 %v4105_v34, %v4110_v47 }
 0x742   :  { %v4115_v36 = vmul.f32 1.442695, %v4113_v13 }
 0x744   :  { %5598 = vpow2.f32 %v4115_v36 }
 0x747   :  { %v4112_v54 = vpop.xlane.xlu0 %4111 }
 0x748   :  { %v4114_v2 = vsub.f32 %v4107_v18, %v4112_v54 }
 0x74a   :  { %v5599_v16 = vpop.eup %5598  ;;  %v4117_v25 = vmul.f32 1.442695, %v4114_v2 }
 0x74b   :  { %4119 = vadd.xlane.f32.xlu1 %v5599_v16 }
 0x74c   :  { %5600 = vpow2.f32 %v4117_v25 }
 0x752   :  { %v5601_v28 = vpop.eup %5600 }
 0x753   :  { %4121 = vadd.xlane.f32.xlu1 %v5601_v28 }
 0x7be   :  { %v4120_v63 = vpop.xlane.xlu1 %4119 }
 0x7bf   :  { %5602 = vrcp.f32 %v4120_v63  ;;  %v4134_v35 = vand.u32 2147483648, %v4120_v63  ;;  %v4132_v60 = vand.u32 2147483647, %v4120_v63  ;;  %vm4128_vm10 = vweird.f32 %v4120_v63 }
 0x7c1   :  { %v4135_v50 = vor.u32 1.1754944e-38, %v4134_v35  ;;  %vm4133_vm12 = vcmp.eq.f32.partialorder %v4132_v60, 8.507059e+37 }
 0x7c5   :  { %v5603_v52 = vpop.eup %5602 }
 0x7c6   :  { %v4124_v7 = vmul.f32 %v5603_v52, %v4120_v63  ;;  %v4122_v39 = vpop.xlane.xlu1 %4121  ;;  %vm4129_vm9 = vweird.f32 %v5603_v52 }
 0x7c7   :  { %5604 = vrcp.f32 %v4122_v39  ;;  %vm4130_vm11 = vmor %vm4128_vm10, %vm4129_vm9  ;;  %v4148_v15 = vand.u32 2147483648, %v4122_v39  ;;  %v4146_v43 = vand.u32 2147483647, %v4122_v39  ;;  %vm4142_vm14 = vweird.f32 %v4122_v39 }
 0x7c8   :  { %v4125_v59 = vsub.f32 1.0, %v4124_v7 }
 0x7c9   :  { %v4149_v46 = vor.u32 1.1754944e-38, %v4148_v15  ;;  %vm4147_vm0 = vcmp.eq.f32.partialorder %v4146_v43, 8.507059e+37 }
 0x7ca   :  { %v4126_v3 = vmul.f32 %v5603_v52, %v4125_v59 }
 0x7cc   :  { %v4127_v55 = vadd.f32 %v5603_v52, %v4126_v3 }
 0x7cd   :  { %v5605_v42 = vpop.eup %5604 }
 0x7ce   :  { %v4131_v6 = vsel %vm4130_vm11, %v5603_v52, %v4127_v55  ;;  %v4138_v58 = vmul.f32 %v5605_v42, %v4122_v39  ;;  %vm4143_vm13 = vweird.f32 %v5605_v42 }
 0x7cf   :  { %v4136_v17 = vsel %vm4133_vm12, %v4135_v50, %v4131_v6  ;;  %vm4144_vm15 = vmor %vm4142_vm14, %vm4143_vm13 }
 0x7d0   :  { %v4151_v29 = vmul.f32 %v5599_v16, %v4136_v17  ;;  %v4139_v26 = vsub.f32 1.0, %v4138_v58 }
 0x7d2   :  { %4153 = vst [vmem:[%s7983_s11] sm:$0xff] %v4151_v29  ;;  %v4140_v12 = vmul.f32 %v5605_v42, %v4139_v26 }
 0x7d4   :  { %v4141_v48 = vadd.f32 %v5605_v42, %v4140_v12 }
 0x7d6   :  { %v4145_v41 = vsel %vm4144_vm15, %v5605_v42, %v4141_v48 }
 0x7d7   :  { %v4150_v57 = vsel %vm4147_vm0, %v4149_v46, %v4145_v41 }
 0x7d8   :  { %v4152_v8 = vmul.f32 %v5601_v28, %v4150_v57 }
 0x7da   :  { %4154 = vst [vmem:[%s7983_s11 + $0x8] sm:$0xff] %v4152_v8 }

</bundles_post_ra>
